<compile_context>
chip_gen: v7x
topology: tpu7x:2x2x1
jax: 0.10.0
libtpu: 0.0.40
codegen_flags: <defaults>
</compile_context>

<pallas_src>
import math
import functools

import jax
import jax.numpy as jnp
from jax.experimental import pallas as pl
from jax.experimental.pallas import tpu as pltpu

EPS = 1e-05


def _round_up(v, m):
    return ((v + m - 1) // m) * m


# ----------------------------- invariants (elementwise, run inside kernel) ---
def _E_inv(E, Ex, Ey, El, Elx, Ely, Ell, Ellx, Elly):
    return Ex ** 2 + Ey ** 2 + Elx ** 2 + Ely ** 2 + Ellx ** 2 + Elly ** 2


def _W_inv(E, Ex, Ey, El, Elx, Ely, Ell, Ellx, Elly):
    r = 1.0 / (E + EPS)                       # shared reciprocal (1 divide)
    return ((Ex * r) ** 2 + (Ey * r) ** 2 + (Elx * r) ** 2
            + (Ely * r) ** 2 + (Ellx * r) ** 2 + (Elly * r) ** 2)


def _C_inv(E, Ex, Ey, El, Elx, Ely, Ell, Ellx, Elly):
    r = 1.0 / (E * E + 1e-05)
    Clx = (Elx * E - El * Ex) * r
    Cly = (Ely * E - El * Ey) * r
    Cllx = (Ellx * E - Ell * Ex) * r
    Clly = (Elly * E - Ell * Ey) * r
    return Clx ** 2 + Cly ** 2 + Cllx ** 2 + Clly ** 2


def _N_inv(E, Ex, Ey, El, Elx, Ely, Ell, Ellx, Elly):
    E2 = E * E
    r2 = 1.0 / (E2 + 1e-05)
    r3 = 1.0 / (E2 * E + 1e-05)
    Nlx = (Elx * E - El * Ex) * r2
    Nly = (Ely * E - El * Ey) * r2
    Nllx = (Ellx * E2 - Ell * Ex * E - 2 * Elx * El * E + 2 * El * El * Ex) * r3
    Nlly = (Elly * E2 - Ell * Ey * E - 2 * Ely * El * E + 2 * El * El * Ey) * r3
    return Nlx ** 2 + Nly ** 2 + Nllx ** 2 + Nlly ** 2


def _H_inv(E, Ex, Ey, El, Elx, Ely, Ell, Ellx, Elly):
    r = 1.0 / (El * El + Ell * Ell + 1e-05)
    Hx = (Ell * Elx - El * Ellx) * r
    Hy = (Ell * Ely - El * Elly) * r
    return Hx ** 2 + Hy ** 2


INV_SWITCHER = {'E': _E_inv, 'W': _W_inv, 'C': _C_inv, 'N': _N_inv, 'H': _H_inv}


# ----------------------------- 1-D separable Gaussian basis (param setup) ----
def gaussian_basis_1d(scale, k=3):
    """The 2-D basis filters of the PyTorch reference factor exactly:
         g     = gv (rows) x gv (cols)
         dg/dx = dv (rows) x gv (cols)
         dg/dy = gv (rows) x dv (cols)
       (normalization by sum / sum-of-abs also factorizes)."""
    std = float(2.0 ** scale)
    filtersize = int(math.ceil(k * std + 0.5))
    x = jnp.arange(-filtersize, filtersize + 1, dtype=jnp.float32)
    u = jnp.exp(-(x / std) ** 2 / 2.0)
    gv = u / jnp.sum(u)
    dv_un = -x * u / (std ** 3 * 2.0 * math.pi)
    dv = dv_un / jnp.sum(jnp.abs(dv_un))
    return gv, dv                      # each (K,), K = 2*filtersize + 1


# ----------------------------- main Pallas kernel (one row tile) -------------
def _ciconv_tile_kernel(tile_ref, gcm_ref, kv_ref, logv_ref, stats_ref,
                        *, H, W, K, TH, inv_fn, fuse_norm):
    """tile_ref : (1, 1, 3, THh, Wp) VMEM  halo'd input row tile (zero padded)
       gcm_ref  : (3, 3)             SMEM  color transform matrix
       kv_ref   : (2, K)             SMEM  row 0 = gv (smooth), row 1 = dv (deriv)
       logv_ref : (1, TH, Wp)        VMEM  log-invariant tile (normalized iff fuse_norm)
       stats_ref: (1, 1, 1, 128)     VMEM  lane0 = masked sum, lane1 = masked sumsq
    """
    r = pl.program_id(1)
    P = K // 2
    Wp = tile_ref.shape[-1]
    x = tile_ref[0, 0]                                   # (3, THh, Wp)
    x0, x1, x2 = x[0], x[1], x[2]

    outs = []
    for c in range(3):
        # ---- color transform (scalar taps from SMEM, broadcast on VPU) ----
        Tc = gcm_ref[c, 0] * x0 + gcm_ref[c, 1] * x1 + gcm_ref[c, 2] * x2

        # ---- horizontal K-tap pass via lane rolls (wrap columns are zero) --
        hg = jnp.zeros_like(Tc)
        hd = jnp.zeros_like(Tc)
        for j in range(K):
            shift = (P - j) % Wp
            tap = pltpu.roll(Tc, shift, axis=1) if shift else Tc
            hg = hg + kv_ref[0, j] * tap
            hd = hd + kv_ref[1, j] * tap

        # ---- vertical K-tap pass via static halo-row slices ----------------
        sm = jnp.zeros((TH, Wp), jnp.float32)
        d1 = jnp.zeros((TH, Wp), jnp.float32)
        d2 = jnp.zeros((TH, Wp), jnp.float32)
        for i in range(K):
            g_sl = hg[i:i + TH, :]
            d_sl = hd[i:i + TH, :]
            sm = sm + kv_ref[0, i] * g_sl     # g  filter
            d1 = d1 + kv_ref[1, i] * g_sl     # dg/dx filter (row derivative)
            d2 = d2 + kv_ref[0, i] * d_sl     # dg/dy filter (col derivative)
        outs.append((sm, d1, d2))

    (E, Ex, Ey), (El, Elx, Ely), (Ell, Ellx, Elly) = outs
    inv = inv_fn(E, Ex, Ey, El, Elx, Ely, Ell, Ellx, Elly)
    logv = jnp.log(inv + EPS)

    # ---- fused masked statistics for the instance norm ----------------------
    row = jax.lax.broadcasted_iota(jnp.int32, (TH, Wp), 0) + r * TH
    col = jax.lax.broadcasted_iota(jnp.int32, (TH, Wp), 1)
    valid = (row < H) & (col < W)
    v = jnp.where(valid, logv, 0.0)
    s0 = jnp.sum(v)
    s1 = jnp.sum(v * v)

    lane = jax.lax.broadcasted_iota(jnp.int32, (1, 128), 1)
    stats_ref[0, 0] = jnp.where(lane == 0, s0, jnp.where(lane == 1, s1, 0.0))

    if fuse_norm:  # single row tile covers the whole image -> finalize here
        npix = float(H * W)
        mu = s0 / npix
        var = jnp.maximum(s1 / npix - mu * mu, 0.0)
        logv = (logv - mu) * jax.lax.rsqrt(var + EPS)
    logv_ref[0] = logv


# ----------------------------- normalization pass (multi-tile path) ----------
def _instnorm_kernel(musig_ref, logv_ref, out_ref):
    """musig_ref: (N, 2) SMEM  per-image (mean, 1/std)
       logv_ref : (1, TH, Wp) VMEM
       out_ref  : (1, TH, Wp) VMEM
    """
    n = pl.program_id(0)
    mu = musig_ref[n, 0]
    istd = musig_ref[n, 1]
    out_ref[0] = (logv_ref[0] - mu) * istd


# ----------------------------- wrapper ---------------------------------------
def ciconv2d(x, *, invariant='W', k=3, scale=0.0, tile_rows=None):
    """x: (N, 3, H, W) float32 NCHW.  Returns (N, 1, H, W) float32."""
    N, C, H, W = x.shape
    assert C == 3, "CIConv2d expects 3 input (RGB) channels"
    assert invariant in INV_SWITCHER, "invalid invariant"

    # scale parameter, clamped like the PyTorch forward()
    scale = float(min(max(scale, -2.5), 2.5))

    gv, dv = gaussian_basis_1d(scale, k=k)
    K = int(gv.shape[0])
    P = K // 2
    kv = jnp.stack([gv, dv], axis=0).astype(jnp.float32)          # (2, K)
    gcm = jnp.array([[0.06, 0.63, 0.27],
                     [0.30, 0.04, -0.35],
                     [0.34, -0.60, 0.17]], dtype=jnp.float32)

    # lane-dense width, halo rows rounded to sublane multiple
    Wp = _round_up(W + P, 128)
    halo = _round_up(2 * P, 8)

    # row tile chosen from a VMEM budget (also fits v7x's smaller VMEM)
    if tile_rows is None:
        budget = 16 * 1024 * 1024
        cap = max(8, (budget // (112 * Wp)) // 8 * 8)
        tile_rows = min(cap, 512)
    TH = max(8, _round_up(int(tile_rows), 8))
    TH = min(TH, _round_up(H, 8))
    NR = -(-H // TH)
    Hout = NR * TH
    THh = TH + halo
    Hsrc = Hout + halo

    # zero-pad once in the wrapper: image sits at row offset P, col offset 0
    xpad = jnp.pad(x.astype(jnp.float32),
                   ((0, 0), (0, 0), (P, Hsrc - P - H), (0, Wp - W)))
    # halo'd row tiles: (N, NR, 3, THh, Wp); tile r = source rows [r*TH, r*TH+THh)
    tiles = jnp.stack([xpad[:, :, r * TH: r * TH + THh, :] for r in range(NR)],
                      axis=1)

    fuse_norm = (NR == 1)
    kernel = functools.partial(_ciconv_tile_kernel, H=H, W=W, K=K, TH=TH,
                               inv_fn=INV_SWITCHER[invariant],
                               fuse_norm=fuse_norm)

    cost = pl.CostEstimate(
        flops=int(N * Hout * Wp * (15 + 10 * K + 40)),
        transcendentals=int(N * Hout * Wp),
        bytes_accessed=int(4 * (tiles.size + 2 * N * Hout * Wp)))

    logv, pstats = pl.pallas_call(
        kernel,
        out_shape=(jax.ShapeDtypeStruct((N, Hout, Wp), jnp.float32),
                   jax.ShapeDtypeStruct((N, NR, 1, 128), jnp.float32)),
        grid=(N, NR),
        in_specs=[
            pl.BlockSpec((1, 1, 3, THh, Wp), lambda n, r: (n, r, 0, 0, 0)),
            pl.BlockSpec(memory_space=pltpu.MemorySpace.SMEM),
            pl.BlockSpec(memory_space=pltpu.MemorySpace.SMEM),
        ],
        out_specs=(
            pl.BlockSpec((1, TH, Wp), lambda n, r: (n, r, 0)),
            pl.BlockSpec((1, 1, 1, 128), lambda n, r: (n, r, 0, 0)),
        ),
        compiler_params=pltpu.CompilerParams(
            dimension_semantics=("parallel", "parallel"),
            vmem_limit_bytes=48 * 1024 * 1024),
        cost_estimate=cost,
    )(tiles, gcm, kv)

    if fuse_norm:
        out = logv
    else:
        # combine per-tile partials -> per-image (mean, 1/std), then one light
        # lane-dense normalization sweep.
        npix = float(H * W)
        s0 = jnp.sum(pstats[:, :, 0, 0], axis=1)
        s1 = jnp.sum(pstats[:, :, 0, 1], axis=1)
        mu = s0 / npix
        var = jnp.maximum(s1 / npix - mu * mu, 0.0)
        istd = jax.lax.rsqrt(var + EPS)
        musig = jnp.stack([mu, istd], axis=1).astype(jnp.float32)   # (N, 2)

        out = pl.pallas_call(
            _instnorm_kernel,
            out_shape=jax.ShapeDtypeStruct((N, Hout, Wp), jnp.float32),
            grid=(N, NR),
            in_specs=[
                pl.BlockSpec(memory_space=pltpu.MemorySpace.SMEM),
                pl.BlockSpec((1, TH, Wp), lambda n, r: (n, r, 0)),
            ],
            out_specs=pl.BlockSpec((1, TH, Wp), lambda n, r: (n, r, 0)),
            compiler_params=pltpu.CompilerParams(
                dimension_semantics=("parallel", "parallel")),
        )(musig, logv)

    # crop the lane/sublane padding and restore NCHW
    return out[:, :H, :W].reshape(N, 1, H, W)


if __name__ == "__main__":
    key = jax.random.PRNGKey(0)
    # CIConv2d operates on RGB images -> channels must be 3.
    x = jax.random.uniform(key, (2, 3, 16, 16), dtype=jnp.float32)

    # default path: one row tile per image -> fused instance norm
    out = ciconv2d(x, invariant='W', k=3, scale=0.0)
    jax.block_until_ready(out)
    assert out.shape == (2, 1, 16, 16)
    assert bool(jnp.all(jnp.isfinite(out)))

    # force multiple row tiles to exercise the halo'd / two-pass path and
    # check it matches the fused path.
    out_tiled = ciconv2d(x, invariant='W', k=3, scale=0.0, tile_rows=8)
    jax.block_until_ready(out_tiled)
    assert out_tiled.shape == (2, 1, 16, 16)
    assert bool(jnp.all(jnp.isfinite(out_tiled)))
    assert bool(jnp.max(jnp.abs(out_tiled - out)) < 1e-3)

    print("KERNEL_OK")
</pallas_src>

<mosaic_0001>
module attributes {stable_mosaic.version = 11 : i64} {
  func.func @_ciconv_tile_kernel(%arg0: i32, %arg1: i32, %arg2: memref<1x1x3x24x128xf32, #tpu.memory_space<vmem>>, %arg3: memref<3x3xf32, #tpu.memory_space<smem>>, %arg4: memref<2x9xf32, #tpu.memory_space<smem>>, %arg5: memref<1x16x128xf32, #tpu.memory_space<vmem>>, %arg6: memref<1x1x1x128xf32, #tpu.memory_space<vmem>>) attributes {dimension_semantics = [#tpu.dimension_semantics<parallel>, #tpu.dimension_semantics<parallel>], iteration_bounds = array<i64: 2, 1>, scalar_prefetch = 0 : i64, scratch_operands = 0 : i64, tpu.core_type = #tpu.core_type<tc>, window_params = [{transform_indices = @transform_0, window_bounds = array<i64: 1, 1, 3, 24, 128>}, {transform_indices = @transform_1, window_bounds = array<i64: 3, 3>}, {transform_indices = @transform_2, window_bounds = array<i64: 2, 9>}, {transform_indices = @transform_3, window_bounds = array<i64: 1, 16, 128>}, {transform_indices = @transform_4, window_bounds = array<i64: 1, 1, 1, 128>}]} {
    %c0 = arith.constant 0 : index
    %c0_0 = arith.constant 0 : index
    %c0_1 = arith.constant 0 : index
    %c0_2 = arith.constant 0 : index
    %c0_3 = arith.constant 0 : index
    %0 = vector.load %arg2[%c0, %c0_0, %c0_1, %c0_2, %c0_3] : memref<1x1x3x24x128xf32, #tpu.memory_space<vmem>>, vector<1x1x3x24x128xf32>
    %1 = vector.shape_cast %0 : vector<1x1x3x24x128xf32> to vector<3x24x128xf32>
    %2 = vector.extract_strided_slice %1 {offsets = [0, 0, 0], sizes = [1, 24, 128], strides = [1, 1, 1]} : vector<3x24x128xf32> to vector<1x24x128xf32>
    %3 = vector.shape_cast %2 : vector<1x24x128xf32> to vector<24x128xf32>
    %4 = vector.extract_strided_slice %1 {offsets = [1, 0, 0], sizes = [1, 24, 128], strides = [1, 1, 1]} : vector<3x24x128xf32> to vector<1x24x128xf32>
    %5 = vector.shape_cast %4 : vector<1x24x128xf32> to vector<24x128xf32>
    %6 = vector.extract_strided_slice %1 {offsets = [2, 0, 0], sizes = [1, 24, 128], strides = [1, 1, 1]} : vector<3x24x128xf32> to vector<1x24x128xf32>
    %7 = vector.shape_cast %6 : vector<1x24x128xf32> to vector<24x128xf32>
    %c0_4 = arith.constant 0 : index
    %c0_5 = arith.constant 0 : index
    %8 = memref.load %arg3[%c0_4, %c0_5] : memref<3x3xf32, #tpu.memory_space<smem>>
    %9 = vector.broadcast %8 : f32 to vector<24x128xf32>
    %10 = arith.mulf %9, %3 : vector<24x128xf32>
    %c0_6 = arith.constant 0 : index
    %c1 = arith.constant 1 : index
    %11 = memref.load %arg3[%c0_6, %c1] : memref<3x3xf32, #tpu.memory_space<smem>>
    %12 = vector.broadcast %11 : f32 to vector<24x128xf32>
    %13 = arith.mulf %12, %5 : vector<24x128xf32>
    %14 = arith.addf %10, %13 : vector<24x128xf32>
    %c0_7 = arith.constant 0 : index
    %c2 = arith.constant 2 : index
    %15 = memref.load %arg3[%c0_7, %c2] : memref<3x3xf32, #tpu.memory_space<smem>>
    %16 = vector.broadcast %15 : f32 to vector<24x128xf32>
    %17 = arith.mulf %16, %7 : vector<24x128xf32>
    %18 = arith.addf %14, %17 : vector<24x128xf32>
    %cst = arith.constant 0.000000e+00 : f32
    %19 = vector.broadcast %cst : f32 to vector<24x128xf32>
    %cst_8 = arith.constant 0.000000e+00 : f32
    %20 = vector.broadcast %cst_8 : f32 to vector<24x128xf32>
    %c4_i32 = arith.constant 4 : i32
    %21 = tpu.dynamic_rotate %18 by %c4_i32 dim 1 : vector<24x128xf32>, i32 -> vector<24x128xf32>
    %c0_9 = arith.constant 0 : index
    %c0_10 = arith.constant 0 : index
    %22 = memref.load %arg4[%c0_9, %c0_10] : memref<2x9xf32, #tpu.memory_space<smem>>
    %23 = vector.broadcast %22 : f32 to vector<24x128xf32>
    %24 = arith.mulf %23, %21 : vector<24x128xf32>
    %25 = arith.addf %19, %24 : vector<24x128xf32>
    %c1_11 = arith.constant 1 : index
    %c0_12 = arith.constant 0 : index
    %26 = memref.load %arg4[%c1_11, %c0_12] : memref<2x9xf32, #tpu.memory_space<smem>>
    %27 = vector.broadcast %26 : f32 to vector<24x128xf32>
    %28 = arith.mulf %27, %21 : vector<24x128xf32>
    %29 = arith.addf %20, %28 : vector<24x128xf32>
    %c3_i32 = arith.constant 3 : i32
    %30 = tpu.dynamic_rotate %18 by %c3_i32 dim 1 : vector<24x128xf32>, i32 -> vector<24x128xf32>
    %c0_13 = arith.constant 0 : index
    %c1_14 = arith.constant 1 : index
    %31 = memref.load %arg4[%c0_13, %c1_14] : memref<2x9xf32, #tpu.memory_space<smem>>
    %32 = vector.broadcast %31 : f32 to vector<24x128xf32>
    %33 = arith.mulf %32, %30 : vector<24x128xf32>
    %34 = arith.addf %25, %33 : vector<24x128xf32>
    %c1_15 = arith.constant 1 : index
    %c1_16 = arith.constant 1 : index
    %35 = memref.load %arg4[%c1_15, %c1_16] : memref<2x9xf32, #tpu.memory_space<smem>>
    %36 = vector.broadcast %35 : f32 to vector<24x128xf32>
    %37 = arith.mulf %36, %30 : vector<24x128xf32>
    %38 = arith.addf %29, %37 : vector<24x128xf32>
    %c2_i32 = arith.constant 2 : i32
    %39 = tpu.dynamic_rotate %18 by %c2_i32 dim 1 : vector<24x128xf32>, i32 -> vector<24x128xf32>
    %c0_17 = arith.constant 0 : index
    %c2_18 = arith.constant 2 : index
    %40 = memref.load %arg4[%c0_17, %c2_18] : memref<2x9xf32, #tpu.memory_space<smem>>
    %41 = vector.broadcast %40 : f32 to vector<24x128xf32>
    %42 = arith.mulf %41, %39 : vector<24x128xf32>
    %43 = arith.addf %34, %42 : vector<24x128xf32>
    %c1_19 = arith.constant 1 : index
    %c2_20 = arith.constant 2 : index
    %44 = memref.load %arg4[%c1_19, %c2_20] : memref<2x9xf32, #tpu.memory_space<smem>>
    %45 = vector.broadcast %44 : f32 to vector<24x128xf32>
    %46 = arith.mulf %45, %39 : vector<24x128xf32>
    %47 = arith.addf %38, %46 : vector<24x128xf32>
    %c1_i32 = arith.constant 1 : i32
    %48 = tpu.dynamic_rotate %18 by %c1_i32 dim 1 : vector<24x128xf32>, i32 -> vector<24x128xf32>
    %c0_21 = arith.constant 0 : index
    %c3 = arith.constant 3 : index
    %49 = memref.load %arg4[%c0_21, %c3] : memref<2x9xf32, #tpu.memory_space<smem>>
    %50 = vector.broadcast %49 : f32 to vector<24x128xf32>
    %51 = arith.mulf %50, %48 : vector<24x128xf32>
    %52 = arith.addf %43, %51 : vector<24x128xf32>
    %c1_22 = arith.constant 1 : index
    %c3_23 = arith.constant 3 : index
    %53 = memref.load %arg4[%c1_22, %c3_23] : memref<2x9xf32, #tpu.memory_space<smem>>
    %54 = vector.broadcast %53 : f32 to vector<24x128xf32>
    %55 = arith.mulf %54, %48 : vector<24x128xf32>
    %56 = arith.addf %47, %55 : vector<24x128xf32>
    %c0_24 = arith.constant 0 : index
    %c4 = arith.constant 4 : index
    %57 = memref.load %arg4[%c0_24, %c4] : memref<2x9xf32, #tpu.memory_space<smem>>
    %58 = vector.broadcast %57 : f32 to vector<24x128xf32>
    %59 = arith.mulf %58, %18 : vector<24x128xf32>
    %60 = arith.addf %52, %59 : vector<24x128xf32>
    %c1_25 = arith.constant 1 : index
    %c4_26 = arith.constant 4 : index
    %61 = memref.load %arg4[%c1_25, %c4_26] : memref<2x9xf32, #tpu.memory_space<smem>>
    %62 = vector.broadcast %61 : f32 to vector<24x128xf32>
    %63 = arith.mulf %62, %18 : vector<24x128xf32>
    %64 = arith.addf %56, %63 : vector<24x128xf32>
    %c127_i32 = arith.constant 127 : i32
    %65 = tpu.dynamic_rotate %18 by %c127_i32 dim 1 : vector<24x128xf32>, i32 -> vector<24x128xf32>
    %c0_27 = arith.constant 0 : index
    %c5 = arith.constant 5 : index
    %66 = memref.load %arg4[%c0_27, %c5] : memref<2x9xf32, #tpu.memory_space<smem>>
    %67 = vector.broadcast %66 : f32 to vector<24x128xf32>
    %68 = arith.mulf %67, %65 : vector<24x128xf32>
    %69 = arith.addf %60, %68 : vector<24x128xf32>
    %c1_28 = arith.constant 1 : index
    %c5_29 = arith.constant 5 : index
    %70 = memref.load %arg4[%c1_28, %c5_29] : memref<2x9xf32, #tpu.memory_space<smem>>
    %71 = vector.broadcast %70 : f32 to vector<24x128xf32>
    %72 = arith.mulf %71, %65 : vector<24x128xf32>
    %73 = arith.addf %64, %72 : vector<24x128xf32>
    %c126_i32 = arith.constant 126 : i32
    %74 = tpu.dynamic_rotate %18 by %c126_i32 dim 1 : vector<24x128xf32>, i32 -> vector<24x128xf32>
    %c0_30 = arith.constant 0 : index
    %c6 = arith.constant 6 : index
    %75 = memref.load %arg4[%c0_30, %c6] : memref<2x9xf32, #tpu.memory_space<smem>>
    %76 = vector.broadcast %75 : f32 to vector<24x128xf32>
    %77 = arith.mulf %76, %74 : vector<24x128xf32>
    %78 = arith.addf %69, %77 : vector<24x128xf32>
    %c1_31 = arith.constant 1 : index
    %c6_32 = arith.constant 6 : index
    %79 = memref.load %arg4[%c1_31, %c6_32] : memref<2x9xf32, #tpu.memory_space<smem>>
    %80 = vector.broadcast %79 : f32 to vector<24x128xf32>
    %81 = arith.mulf %80, %74 : vector<24x128xf32>
    %82 = arith.addf %73, %81 : vector<24x128xf32>
    %c125_i32 = arith.constant 125 : i32
    %83 = tpu.dynamic_rotate %18 by %c125_i32 dim 1 : vector<24x128xf32>, i32 -> vector<24x128xf32>
    %c0_33 = arith.constant 0 : index
    %c7 = arith.constant 7 : index
    %84 = memref.load %arg4[%c0_33, %c7] : memref<2x9xf32, #tpu.memory_space<smem>>
    %85 = vector.broadcast %84 : f32 to vector<24x128xf32>
    %86 = arith.mulf %85, %83 : vector<24x128xf32>
    %87 = arith.addf %78, %86 : vector<24x128xf32>
    %c1_34 = arith.constant 1 : index
    %c7_35 = arith.constant 7 : index
    %88 = memref.load %arg4[%c1_34, %c7_35] : memref<2x9xf32, #tpu.memory_space<smem>>
    %89 = vector.broadcast %88 : f32 to vector<24x128xf32>
    %90 = arith.mulf %89, %83 : vector<24x128xf32>
    %91 = arith.addf %82, %90 : vector<24x128xf32>
    %c124_i32 = arith.constant 124 : i32
    %92 = tpu.dynamic_rotate %18 by %c124_i32 dim 1 : vector<24x128xf32>, i32 -> vector<24x128xf32>
    %c0_36 = arith.constant 0 : index
    %c8 = arith.constant 8 : index
    %93 = memref.load %arg4[%c0_36, %c8] : memref<2x9xf32, #tpu.memory_space<smem>>
    %94 = vector.broadcast %93 : f32 to vector<24x128xf32>
    %95 = arith.mulf %94, %92 : vector<24x128xf32>
    %96 = arith.addf %87, %95 : vector<24x128xf32>
    %c1_37 = arith.constant 1 : index
    %c8_38 = arith.constant 8 : index
    %97 = memref.load %arg4[%c1_37, %c8_38] : memref<2x9xf32, #tpu.memory_space<smem>>
    %98 = vector.broadcast %97 : f32 to vector<24x128xf32>
    %99 = arith.mulf %98, %92 : vector<24x128xf32>
    %100 = arith.addf %91, %99 : vector<24x128xf32>
    %cst_39 = arith.constant 0.000000e+00 : f32
    %101 = vector.broadcast %cst_39 : f32 to vector<16x128xf32>
    %cst_40 = arith.constant 0.000000e+00 : f32
    %102 = vector.broadcast %cst_40 : f32 to vector<16x128xf32>
    %cst_41 = arith.constant 0.000000e+00 : f32
    %103 = vector.broadcast %cst_41 : f32 to vector<16x128xf32>
    %104 = vector.extract_strided_slice %96 {offsets = [0, 0], sizes = [16, 128], strides = [1, 1]} : vector<24x128xf32> to vector<16x128xf32>
    %105 = vector.extract_strided_slice %100 {offsets = [0, 0], sizes = [16, 128], strides = [1, 1]} : vector<24x128xf32> to vector<16x128xf32>
    %c0_42 = arith.constant 0 : index
    %c0_43 = arith.constant 0 : index
    %106 = memref.load %arg4[%c0_42, %c0_43] : memref<2x9xf32, #tpu.memory_space<smem>>
    %107 = vector.broadcast %106 : f32 to vector<16x128xf32>
    %108 = arith.mulf %107, %104 : vector<16x128xf32>
    %109 = arith.addf %101, %108 : vector<16x128xf32>
    %c1_44 = arith.constant 1 : index
    %c0_45 = arith.constant 0 : index
    %110 = memref.load %arg4[%c1_44, %c0_45] : memref<2x9xf32, #tpu.memory_space<smem>>
    %111 = vector.broadcast %110 : f32 to vector<16x128xf32>
    %112 = arith.mulf %111, %104 : vector<16x128xf32>
    %113 = arith.addf %102, %112 : vector<16x128xf32>
    %c0_46 = arith.constant 0 : index
    %c0_47 = arith.constant 0 : index
    %114 = memref.load %arg4[%c0_46, %c0_47] : memref<2x9xf32, #tpu.memory_space<smem>>
    %115 = vector.broadcast %114 : f32 to vector<16x128xf32>
    %116 = arith.mulf %115, %105 : vector<16x128xf32>
    %117 = arith.addf %103, %116 : vector<16x128xf32>
    %118 = vector.extract_strided_slice %96 {offsets = [1, 0], sizes = [16, 128], strides = [1, 1]} : vector<24x128xf32> to vector<16x128xf32>
    %119 = vector.extract_strided_slice %100 {offsets = [1, 0], sizes = [16, 128], strides = [1, 1]} : vector<24x128xf32> to vector<16x128xf32>
    %c0_48 = arith.constant 0 : index
    %c1_49 = arith.constant 1 : index
    %120 = memref.load %arg4[%c0_48, %c1_49] : memref<2x9xf32, #tpu.memory_space<smem>>
    %121 = vector.broadcast %120 : f32 to vector<16x128xf32>
    %122 = arith.mulf %121, %118 : vector<16x128xf32>
    %123 = arith.addf %109, %122 : vector<16x128xf32>
    %c1_50 = arith.constant 1 : index
    %c1_51 = arith.constant 1 : index
    %124 = memref.load %arg4[%c1_50, %c1_51] : memref<2x9xf32, #tpu.memory_space<smem>>
    %125 = vector.broadcast %124 : f32 to vector<16x128xf32>
    %126 = arith.mulf %125, %118 : vector<16x128xf32>
    %127 = arith.addf %113, %126 : vector<16x128xf32>
    %c0_52 = arith.constant 0 : index
    %c1_53 = arith.constant 1 : index
    %128 = memref.load %arg4[%c0_52, %c1_53] : memref<2x9xf32, #tpu.memory_space<smem>>
    %129 = vector.broadcast %128 : f32 to vector<16x128xf32>
    %130 = arith.mulf %129, %119 : vector<16x128xf32>
    %131 = arith.addf %117, %130 : vector<16x128xf32>
    %132 = vector.extract_strided_slice %96 {offsets = [2, 0], sizes = [16, 128], strides = [1, 1]} : vector<24x128xf32> to vector<16x128xf32>
    %133 = vector.extract_strided_slice %100 {offsets = [2, 0], sizes = [16, 128], strides = [1, 1]} : vector<24x128xf32> to vector<16x128xf32>
    %c0_54 = arith.constant 0 : index
    %c2_55 = arith.constant 2 : index
    %134 = memref.load %arg4[%c0_54, %c2_55] : memref<2x9xf32, #tpu.memory_space<smem>>
    %135 = vector.broadcast %134 : f32 to vector<16x128xf32>
    %136 = arith.mulf %135, %132 : vector<16x128xf32>
    %137 = arith.addf %123, %136 : vector<16x128xf32>
    %c1_56 = arith.constant 1 : index
    %c2_57 = arith.constant 2 : index
    %138 = memref.load %arg4[%c1_56, %c2_57] : memref<2x9xf32, #tpu.memory_space<smem>>
    %139 = vector.broadcast %138 : f32 to vector<16x128xf32>
    %140 = arith.mulf %139, %132 : vector<16x128xf32>
    %141 = arith.addf %127, %140 : vector<16x128xf32>
    %c0_58 = arith.constant 0 : index
    %c2_59 = arith.constant 2 : index
    %142 = memref.load %arg4[%c0_58, %c2_59] : memref<2x9xf32, #tpu.memory_space<smem>>
    %143 = vector.broadcast %142 : f32 to vector<16x128xf32>
    %144 = arith.mulf %143, %133 : vector<16x128xf32>
    %145 = arith.addf %131, %144 : vector<16x128xf32>
    %146 = vector.extract_strided_slice %96 {offsets = [3, 0], sizes = [16, 128], strides = [1, 1]} : vector<24x128xf32> to vector<16x128xf32>
    %147 = vector.extract_strided_slice %100 {offsets = [3, 0], sizes = [16, 128], strides = [1, 1]} : vector<24x128xf32> to vector<16x128xf32>
    %c0_60 = arith.constant 0 : index
    %c3_61 = arith.constant 3 : index
    %148 = memref.load %arg4[%c0_60, %c3_61] : memref<2x9xf32, #tpu.memory_space<smem>>
    %149 = vector.broadcast %148 : f32 to vector<16x128xf32>
    %150 = arith.mulf %149, %146 : vector<16x128xf32>
    %151 = arith.addf %137, %150 : vector<16x128xf32>
    %c1_62 = arith.constant 1 : index
    %c3_63 = arith.constant 3 : index
    %152 = memref.load %arg4[%c1_62, %c3_63] : memref<2x9xf32, #tpu.memory_space<smem>>
    %153 = vector.broadcast %152 : f32 to vector<16x128xf32>
    %154 = arith.mulf %153, %146 : vector<16x128xf32>
    %155 = arith.addf %141, %154 : vector<16x128xf32>
    %c0_64 = arith.constant 0 : index
    %c3_65 = arith.constant 3 : index
    %156 = memref.load %arg4[%c0_64, %c3_65] : memref<2x9xf32, #tpu.memory_space<smem>>
    %157 = vector.broadcast %156 : f32 to vector<16x128xf32>
    %158 = arith.mulf %157, %147 : vector<16x128xf32>
    %159 = arith.addf %145, %158 : vector<16x128xf32>
    %160 = vector.extract_strided_slice %96 {offsets = [4, 0], sizes = [16, 128], strides = [1, 1]} : vector<24x128xf32> to vector<16x128xf32>
    %161 = vector.extract_strided_slice %100 {offsets = [4, 0], sizes = [16, 128], strides = [1, 1]} : vector<24x128xf32> to vector<16x128xf32>
    %c0_66 = arith.constant 0 : index
    %c4_67 = arith.constant 4 : index
    %162 = memref.load %arg4[%c0_66, %c4_67] : memref<2x9xf32, #tpu.memory_space<smem>>
    %163 = vector.broadcast %162 : f32 to vector<16x128xf32>
    %164 = arith.mulf %163, %160 : vector<16x128xf32>
    %165 = arith.addf %151, %164 : vector<16x128xf32>
    %c1_68 = arith.constant 1 : index
    %c4_69 = arith.constant 4 : index
    %166 = memref.load %arg4[%c1_68, %c4_69] : memref<2x9xf32, #tpu.memory_space<smem>>
    %167 = vector.broadcast %166 : f32 to vector<16x128xf32>
    %168 = arith.mulf %167, %160 : vector<16x128xf32>
    %169 = arith.addf %155, %168 : vector<16x128xf32>
    %c0_70 = arith.constant 0 : index
    %c4_71 = arith.constant 4 : index
    %170 = memref.load %arg4[%c0_70, %c4_71] : memref<2x9xf32, #tpu.memory_space<smem>>
    %171 = vector.broadcast %170 : f32 to vector<16x128xf32>
    %172 = arith.mulf %171, %161 : vector<16x128xf32>
    %173 = arith.addf %159, %172 : vector<16x128xf32>
    %174 = vector.extract_strided_slice %96 {offsets = [5, 0], sizes = [16, 128], strides = [1, 1]} : vector<24x128xf32> to vector<16x128xf32>
    %175 = vector.extract_strided_slice %100 {offsets = [5, 0], sizes = [16, 128], strides = [1, 1]} : vector<24x128xf32> to vector<16x128xf32>
    %c0_72 = arith.constant 0 : index
    %c5_73 = arith.constant 5 : index
    %176 = memref.load %arg4[%c0_72, %c5_73] : memref<2x9xf32, #tpu.memory_space<smem>>
    %177 = vector.broadcast %176 : f32 to vector<16x128xf32>
    %178 = arith.mulf %177, %174 : vector<16x128xf32>
    %179 = arith.addf %165, %178 : vector<16x128xf32>
    %c1_74 = arith.constant 1 : index
    %c5_75 = arith.constant 5 : index
    %180 = memref.load %arg4[%c1_74, %c5_75] : memref<2x9xf32, #tpu.memory_space<smem>>
    %181 = vector.broadcast %180 : f32 to vector<16x128xf32>
    %182 = arith.mulf %181, %174 : vector<16x128xf32>
    %183 = arith.addf %169, %182 : vector<16x128xf32>
    %c0_76 = arith.constant 0 : index
    %c5_77 = arith.constant 5 : index
    %184 = memref.load %arg4[%c0_76, %c5_77] : memref<2x9xf32, #tpu.memory_space<smem>>
    %185 = vector.broadcast %184 : f32 to vector<16x128xf32>
    %186 = arith.mulf %185, %175 : vector<16x128xf32>
    %187 = arith.addf %173, %186 : vector<16x128xf32>
    %188 = vector.extract_strided_slice %96 {offsets = [6, 0], sizes = [16, 128], strides = [1, 1]} : vector<24x128xf32> to vector<16x128xf32>
    %189 = vector.extract_strided_slice %100 {offsets = [6, 0], sizes = [16, 128], strides = [1, 1]} : vector<24x128xf32> to vector<16x128xf32>
    %c0_78 = arith.constant 0 : index
    %c6_79 = arith.constant 6 : index
    %190 = memref.load %arg4[%c0_78, %c6_79] : memref<2x9xf32, #tpu.memory_space<smem>>
    %191 = vector.broadcast %190 : f32 to vector<16x128xf32>
    %192 = arith.mulf %191, %188 : vector<16x128xf32>
    %193 = arith.addf %179, %192 : vector<16x128xf32>
    %c1_80 = arith.constant 1 : index
    %c6_81 = arith.constant 6 : index
    %194 = memref.load %arg4[%c1_80, %c6_81] : memref<2x9xf32, #tpu.memory_space<smem>>
    %195 = vector.broadcast %194 : f32 to vector<16x128xf32>
    %196 = arith.mulf %195, %188 : vector<16x128xf32>
    %197 = arith.addf %183, %196 : vector<16x128xf32>
    %c0_82 = arith.constant 0 : index
    %c6_83 = arith.constant 6 : index
    %198 = memref.load %arg4[%c0_82, %c6_83] : memref<2x9xf32, #tpu.memory_space<smem>>
    %199 = vector.broadcast %198 : f32 to vector<16x128xf32>
    %200 = arith.mulf %199, %189 : vector<16x128xf32>
    %201 = arith.addf %187, %200 : vector<16x128xf32>
    %202 = vector.extract_strided_slice %96 {offsets = [7, 0], sizes = [16, 128], strides = [1, 1]} : vector<24x128xf32> to vector<16x128xf32>
    %203 = vector.extract_strided_slice %100 {offsets = [7, 0], sizes = [16, 128], strides = [1, 1]} : vector<24x128xf32> to vector<16x128xf32>
    %c0_84 = arith.constant 0 : index
    %c7_85 = arith.constant 7 : index
    %204 = memref.load %arg4[%c0_84, %c7_85] : memref<2x9xf32, #tpu.memory_space<smem>>
    %205 = vector.broadcast %204 : f32 to vector<16x128xf32>
    %206 = arith.mulf %205, %202 : vector<16x128xf32>
    %207 = arith.addf %193, %206 : vector<16x128xf32>
    %c1_86 = arith.constant 1 : index
    %c7_87 = arith.constant 7 : index
    %208 = memref.load %arg4[%c1_86, %c7_87] : memref<2x9xf32, #tpu.memory_space<smem>>
    %209 = vector.broadcast %208 : f32 to vector<16x128xf32>
    %210 = arith.mulf %209, %202 : vector<16x128xf32>
    %211 = arith.addf %197, %210 : vector<16x128xf32>
    %c0_88 = arith.constant 0 : index
    %c7_89 = arith.constant 7 : index
    %212 = memref.load %arg4[%c0_88, %c7_89] : memref<2x9xf32, #tpu.memory_space<smem>>
    %213 = vector.broadcast %212 : f32 to vector<16x128xf32>
    %214 = arith.mulf %213, %203 : vector<16x128xf32>
    %215 = arith.addf %201, %214 : vector<16x128xf32>
    %216 = vector.extract_strided_slice %96 {offsets = [8, 0], sizes = [16, 128], strides = [1, 1]} : vector<24x128xf32> to vector<16x128xf32>
    %217 = vector.extract_strided_slice %100 {offsets = [8, 0], sizes = [16, 128], strides = [1, 1]} : vector<24x128xf32> to vector<16x128xf32>
    %c0_90 = arith.constant 0 : index
    %c8_91 = arith.constant 8 : index
    %218 = memref.load %arg4[%c0_90, %c8_91] : memref<2x9xf32, #tpu.memory_space<smem>>
    %219 = vector.broadcast %218 : f32 to vector<16x128xf32>
    %220 = arith.mulf %219, %216 : vector<16x128xf32>
    %221 = arith.addf %207, %220 : vector<16x128xf32>
    %c1_92 = arith.constant 1 : index
    %c8_93 = arith.constant 8 : index
    %222 = memref.load %arg4[%c1_92, %c8_93] : memref<2x9xf32, #tpu.memory_space<smem>>
    %223 = vector.broadcast %222 : f32 to vector<16x128xf32>
    %224 = arith.mulf %223, %216 : vector<16x128xf32>
    %225 = arith.addf %211, %224 : vector<16x128xf32>
    %c0_94 = arith.constant 0 : index
    %c8_95 = arith.constant 8 : index
    %226 = memref.load %arg4[%c0_94, %c8_95] : memref<2x9xf32, #tpu.memory_space<smem>>
    %227 = vector.broadcast %226 : f32 to vector<16x128xf32>
    %228 = arith.mulf %227, %217 : vector<16x128xf32>
    %229 = arith.addf %215, %228 : vector<16x128xf32>
    %c1_96 = arith.constant 1 : index
    %c0_97 = arith.constant 0 : index
    %230 = memref.load %arg3[%c1_96, %c0_97] : memref<3x3xf32, #tpu.memory_space<smem>>
    %231 = vector.broadcast %230 : f32 to vector<24x128xf32>
    %232 = arith.mulf %231, %3 : vector<24x128xf32>
    %c1_98 = arith.constant 1 : index
    %c1_99 = arith.constant 1 : index
    %233 = memref.load %arg3[%c1_98, %c1_99] : memref<3x3xf32, #tpu.memory_space<smem>>
    %234 = vector.broadcast %233 : f32 to vector<24x128xf32>
    %235 = arith.mulf %234, %5 : vector<24x128xf32>
    %236 = arith.addf %232, %235 : vector<24x128xf32>
    %c1_100 = arith.constant 1 : index
    %c2_101 = arith.constant 2 : index
    %237 = memref.load %arg3[%c1_100, %c2_101] : memref<3x3xf32, #tpu.memory_space<smem>>
    %238 = vector.broadcast %237 : f32 to vector<24x128xf32>
    %239 = arith.mulf %238, %7 : vector<24x128xf32>
    %240 = arith.addf %236, %239 : vector<24x128xf32>
    %cst_102 = arith.constant 0.000000e+00 : f32
    %241 = vector.broadcast %cst_102 : f32 to vector<24x128xf32>
    %cst_103 = arith.constant 0.000000e+00 : f32
    %242 = vector.broadcast %cst_103 : f32 to vector<24x128xf32>
    %c4_i32_104 = arith.constant 4 : i32
    %243 = tpu.dynamic_rotate %240 by %c4_i32_104 dim 1 : vector<24x128xf32>, i32 -> vector<24x128xf32>
    %c0_105 = arith.constant 0 : index
    %c0_106 = arith.constant 0 : index
    %244 = memref.load %arg4[%c0_105, %c0_106] : memref<2x9xf32, #tpu.memory_space<smem>>
    %245 = vector.broadcast %244 : f32 to vector<24x128xf32>
    %246 = arith.mulf %245, %243 : vector<24x128xf32>
    %247 = arith.addf %241, %246 : vector<24x128xf32>
    %c1_107 = arith.constant 1 : index
    %c0_108 = arith.constant 0 : index
    %248 = memref.load %arg4[%c1_107, %c0_108] : memref<2x9xf32, #tpu.memory_space<smem>>
    %249 = vector.broadcast %248 : f32 to vector<24x128xf32>
    %250 = arith.mulf %249, %243 : vector<24x128xf32>
    %251 = arith.addf %242, %250 : vector<24x128xf32>
    %c3_i32_109 = arith.constant 3 : i32
    %252 = tpu.dynamic_rotate %240 by %c3_i32_109 dim 1 : vector<24x128xf32>, i32 -> vector<24x128xf32>
    %c0_110 = arith.constant 0 : index
    %c1_111 = arith.constant 1 : index
    %253 = memref.load %arg4[%c0_110, %c1_111] : memref<2x9xf32, #tpu.memory_space<smem>>
    %254 = vector.broadcast %253 : f32 to vector<24x128xf32>
    %255 = arith.mulf %254, %252 : vector<24x128xf32>
    %256 = arith.addf %247, %255 : vector<24x128xf32>
    %c1_112 = arith.constant 1 : index
    %c1_113 = arith.constant 1 : index
    %257 = memref.load %arg4[%c1_112, %c1_113] : memref<2x9xf32, #tpu.memory_space<smem>>
    %258 = vector.broadcast %257 : f32 to vector<24x128xf32>
    %259 = arith.mulf %258, %252 : vector<24x128xf32>
    %260 = arith.addf %251, %259 : vector<24x128xf32>
    %c2_i32_114 = arith.constant 2 : i32
    %261 = tpu.dynamic_rotate %240 by %c2_i32_114 dim 1 : vector<24x128xf32>, i32 -> vector<24x128xf32>
    %c0_115 = arith.constant 0 : index
    %c2_116 = arith.constant 2 : index
    %262 = memref.load %arg4[%c0_115, %c2_116] : memref<2x9xf32, #tpu.memory_space<smem>>
    %263 = vector.broadcast %262 : f32 to vector<24x128xf32>
    %264 = arith.mulf %263, %261 : vector<24x128xf32>
    %265 = arith.addf %256, %264 : vector<24x128xf32>
    %c1_117 = arith.constant 1 : index
    %c2_118 = arith.constant 2 : index
    %266 = memref.load %arg4[%c1_117, %c2_118] : memref<2x9xf32, #tpu.memory_space<smem>>
    %267 = vector.broadcast %266 : f32 to vector<24x128xf32>
    %268 = arith.mulf %267, %261 : vector<24x128xf32>
    %269 = arith.addf %260, %268 : vector<24x128xf32>
    %c1_i32_119 = arith.constant 1 : i32
    %270 = tpu.dynamic_rotate %240 by %c1_i32_119 dim 1 : vector<24x128xf32>, i32 -> vector<24x128xf32>
    %c0_120 = arith.constant 0 : index
    %c3_121 = arith.constant 3 : index
    %271 = memref.load %arg4[%c0_120, %c3_121] : memref<2x9xf32, #tpu.memory_space<smem>>
    %272 = vector.broadcast %271 : f32 to vector<24x128xf32>
    %273 = arith.mulf %272, %270 : vector<24x128xf32>
    %274 = arith.addf %265, %273 : vector<24x128xf32>
    %c1_122 = arith.constant 1 : index
    %c3_123 = arith.constant 3 : index
    %275 = memref.load %arg4[%c1_122, %c3_123] : memref<2x9xf32, #tpu.memory_space<smem>>
    %276 = vector.broadcast %275 : f32 to vector<24x128xf32>
    %277 = arith.mulf %276, %270 : vector<24x128xf32>
    %278 = arith.addf %269, %277 : vector<24x128xf32>
    %c0_124 = arith.constant 0 : index
    %c4_125 = arith.constant 4 : index
    %279 = memref.load %arg4[%c0_124, %c4_125] : memref<2x9xf32, #tpu.memory_space<smem>>
    %280 = vector.broadcast %279 : f32 to vector<24x128xf32>
    %281 = arith.mulf %280, %240 : vector<24x128xf32>
    %282 = arith.addf %274, %281 : vector<24x128xf32>
    %c1_126 = arith.constant 1 : index
    %c4_127 = arith.constant 4 : index
    %283 = memref.load %arg4[%c1_126, %c4_127] : memref<2x9xf32, #tpu.memory_space<smem>>
    %284 = vector.broadcast %283 : f32 to vector<24x128xf32>
    %285 = arith.mulf %284, %240 : vector<24x128xf32>
    %286 = arith.addf %278, %285 : vector<24x128xf32>
    %c127_i32_128 = arith.constant 127 : i32
    %287 = tpu.dynamic_rotate %240 by %c127_i32_128 dim 1 : vector<24x128xf32>, i32 -> vector<24x128xf32>
    %c0_129 = arith.constant 0 : index
    %c5_130 = arith.constant 5 : index
    %288 = memref.load %arg4[%c0_129, %c5_130] : memref<2x9xf32, #tpu.memory_space<smem>>
    %289 = vector.broadcast %288 : f32 to vector<24x128xf32>
    %290 = arith.mulf %289, %287 : vector<24x128xf32>
    %291 = arith.addf %282, %290 : vector<24x128xf32>
    %c1_131 = arith.constant 1 : index
    %c5_132 = arith.constant 5 : index
    %292 = memref.load %arg4[%c1_131, %c5_132] : memref<2x9xf32, #tpu.memory_space<smem>>
    %293 = vector.broadcast %292 : f32 to vector<24x128xf32>
    %294 = arith.mulf %293, %287 : vector<24x128xf32>
    %295 = arith.addf %286, %294 : vector<24x128xf32>
    %c126_i32_133 = arith.constant 126 : i32
    %296 = tpu.dynamic_rotate %240 by %c126_i32_133 dim 1 : vector<24x128xf32>, i32 -> vector<24x128xf32>
    %c0_134 = arith.constant 0 : index
    %c6_135 = arith.constant 6 : index
    %297 = memref.load %arg4[%c0_134, %c6_135] : memref<2x9xf32, #tpu.memory_space<smem>>
    %298 = vector.broadcast %297 : f32 to vector<24x128xf32>
    %299 = arith.mulf %298, %296 : vector<24x128xf32>
    %300 = arith.addf %291, %299 : vector<24x128xf32>
    %c1_136 = arith.constant 1 : index
    %c6_137 = arith.constant 6 : index
    %301 = memref.load %arg4[%c1_136, %c6_137] : memref<2x9xf32, #tpu.memory_space<smem>>
    %302 = vector.broadcast %301 : f32 to vector<24x128xf32>
    %303 = arith.mulf %302, %296 : vector<24x128xf32>
    %304 = arith.addf %295, %303 : vector<24x128xf32>
    %c125_i32_138 = arith.constant 125 : i32
    %305 = tpu.dynamic_rotate %240 by %c125_i32_138 dim 1 : vector<24x128xf32>, i32 -> vector<24x128xf32>
    %c0_139 = arith.constant 0 : index
    %c7_140 = arith.constant 7 : index
    %306 = memref.load %arg4[%c0_139, %c7_140] : memref<2x9xf32, #tpu.memory_space<smem>>
    %307 = vector.broadcast %306 : f32 to vector<24x128xf32>
    %308 = arith.mulf %307, %305 : vector<24x128xf32>
    %309 = arith.addf %300, %308 : vector<24x128xf32>
    %c1_141 = arith.constant 1 : index
    %c7_142 = arith.constant 7 : index
    %310 = memref.load %arg4[%c1_141, %c7_142] : memref<2x9xf32, #tpu.memory_space<smem>>
    %311 = vector.broadcast %310 : f32 to vector<24x128xf32>
    %312 = arith.mulf %311, %305 : vector<24x128xf32>
    %313 = arith.addf %304, %312 : vector<24x128xf32>
    %c124_i32_143 = arith.constant 124 : i32
    %314 = tpu.dynamic_rotate %240 by %c124_i32_143 dim 1 : vector<24x128xf32>, i32 -> vector<24x128xf32>
    %c0_144 = arith.constant 0 : index
    %c8_145 = arith.constant 8 : index
    %315 = memref.load %arg4[%c0_144, %c8_145] : memref<2x9xf32, #tpu.memory_space<smem>>
    %316 = vector.broadcast %315 : f32 to vector<24x128xf32>
    %317 = arith.mulf %316, %314 : vector<24x128xf32>
    %318 = arith.addf %309, %317 : vector<24x128xf32>
    %c1_146 = arith.constant 1 : index
    %c8_147 = arith.constant 8 : index
    %319 = memref.load %arg4[%c1_146, %c8_147] : memref<2x9xf32, #tpu.memory_space<smem>>
    %320 = vector.broadcast %319 : f32 to vector<24x128xf32>
    %321 = arith.mulf %320, %314 : vector<24x128xf32>
    %322 = arith.addf %313, %321 : vector<24x128xf32>
    %cst_148 = arith.constant 0.000000e+00 : f32
    %323 = vector.broadcast %cst_148 : f32 to vector<16x128xf32>
    %cst_149 = arith.constant 0.000000e+00 : f32
    %324 = vector.broadcast %cst_149 : f32 to vector<16x128xf32>
    %325 = vector.extract_strided_slice %318 {offsets = [0, 0], sizes = [16, 128], strides = [1, 1]} : vector<24x128xf32> to vector<16x128xf32>
    %326 = vector.extract_strided_slice %322 {offsets = [0, 0], sizes = [16, 128], strides = [1, 1]} : vector<24x128xf32> to vector<16x128xf32>
    %c1_150 = arith.constant 1 : index
    %c0_151 = arith.constant 0 : index
    %327 = memref.load %arg4[%c1_150, %c0_151] : memref<2x9xf32, #tpu.memory_space<smem>>
    %328 = vector.broadcast %327 : f32 to vector<16x128xf32>
    %329 = arith.mulf %328, %325 : vector<16x128xf32>
    %330 = arith.addf %323, %329 : vector<16x128xf32>
    %c0_152 = arith.constant 0 : index
    %c0_153 = arith.constant 0 : index
    %331 = memref.load %arg4[%c0_152, %c0_153] : memref<2x9xf32, #tpu.memory_space<smem>>
    %332 = vector.broadcast %331 : f32 to vector<16x128xf32>
    %333 = arith.mulf %332, %326 : vector<16x128xf32>
    %334 = arith.addf %324, %333 : vector<16x128xf32>
    %335 = vector.extract_strided_slice %318 {offsets = [1, 0], sizes = [16, 128], strides = [1, 1]} : vector<24x128xf32> to vector<16x128xf32>
    %336 = vector.extract_strided_slice %322 {offsets = [1, 0], sizes = [16, 128], strides = [1, 1]} : vector<24x128xf32> to vector<16x128xf32>
    %c1_154 = arith.constant 1 : index
    %c1_155 = arith.constant 1 : index
    %337 = memref.load %arg4[%c1_154, %c1_155] : memref<2x9xf32, #tpu.memory_space<smem>>
    %338 = vector.broadcast %337 : f32 to vector<16x128xf32>
    %339 = arith.mulf %338, %335 : vector<16x128xf32>
    %340 = arith.addf %330, %339 : vector<16x128xf32>
    %c0_156 = arith.constant 0 : index
    %c1_157 = arith.constant 1 : index
    %341 = memref.load %arg4[%c0_156, %c1_157] : memref<2x9xf32, #tpu.memory_space<smem>>
    %342 = vector.broadcast %341 : f32 to vector<16x128xf32>
    %343 = arith.mulf %342, %336 : vector<16x128xf32>
    %344 = arith.addf %334, %343 : vector<16x128xf32>
    %345 = vector.extract_strided_slice %318 {offsets = [2, 0], sizes = [16, 128], strides = [1, 1]} : vector<24x128xf32> to vector<16x128xf32>
    %346 = vector.extract_strided_slice %322 {offsets = [2, 0], sizes = [16, 128], strides = [1, 1]} : vector<24x128xf32> to vector<16x128xf32>
    %c1_158 = arith.constant 1 : index
    %c2_159 = arith.constant 2 : index
    %347 = memref.load %arg4[%c1_158, %c2_159] : memref<2x9xf32, #tpu.memory_space<smem>>
    %348 = vector.broadcast %347 : f32 to vector<16x128xf32>
    %349 = arith.mulf %348, %345 : vector<16x128xf32>
    %350 = arith.addf %340, %349 : vector<16x128xf32>
    %c0_160 = arith.constant 0 : index
    %c2_161 = arith.constant 2 : index
    %351 = memref.load %arg4[%c0_160, %c2_161] : memref<2x9xf32, #tpu.memory_space<smem>>
    %352 = vector.broadcast %351 : f32 to vector<16x128xf32>
    %353 = arith.mulf %352, %346 : vector<16x128xf32>
    %354 = arith.addf %344, %353 : vector<16x128xf32>
    %355 = vector.extract_strided_slice %318 {offsets = [3, 0], sizes = [16, 128], strides = [1, 1]} : vector<24x128xf32> to vector<16x128xf32>
    %356 = vector.extract_strided_slice %322 {offsets = [3, 0], sizes = [16, 128], strides = [1, 1]} : vector<24x128xf32> to vector<16x128xf32>
    %c1_162 = arith.constant 1 : index
    %c3_163 = arith.constant 3 : index
    %357 = memref.load %arg4[%c1_162, %c3_163] : memref<2x9xf32, #tpu.memory_space<smem>>
    %358 = vector.broadcast %357 : f32 to vector<16x128xf32>
    %359 = arith.mulf %358, %355 : vector<16x128xf32>
    %360 = arith.addf %350, %359 : vector<16x128xf32>
    %c0_164 = arith.constant 0 : index
    %c3_165 = arith.constant 3 : index
    %361 = memref.load %arg4[%c0_164, %c3_165] : memref<2x9xf32, #tpu.memory_space<smem>>
    %362 = vector.broadcast %361 : f32 to vector<16x128xf32>
    %363 = arith.mulf %362, %356 : vector<16x128xf32>
    %364 = arith.addf %354, %363 : vector<16x128xf32>
    %365 = vector.extract_strided_slice %318 {offsets = [4, 0], sizes = [16, 128], strides = [1, 1]} : vector<24x128xf32> to vector<16x128xf32>
    %366 = vector.extract_strided_slice %322 {offsets = [4, 0], sizes = [16, 128], strides = [1, 1]} : vector<24x128xf32> to vector<16x128xf32>
    %c1_166 = arith.constant 1 : index
    %c4_167 = arith.constant 4 : index
    %367 = memref.load %arg4[%c1_166, %c4_167] : memref<2x9xf32, #tpu.memory_space<smem>>
    %368 = vector.broadcast %367 : f32 to vector<16x128xf32>
    %369 = arith.mulf %368, %365 : vector<16x128xf32>
    %370 = arith.addf %360, %369 : vector<16x128xf32>
    %c0_168 = arith.constant 0 : index
    %c4_169 = arith.constant 4 : index
    %371 = memref.load %arg4[%c0_168, %c4_169] : memref<2x9xf32, #tpu.memory_space<smem>>
    %372 = vector.broadcast %371 : f32 to vector<16x128xf32>
    %373 = arith.mulf %372, %366 : vector<16x128xf32>
    %374 = arith.addf %364, %373 : vector<16x128xf32>
    %375 = vector.extract_strided_slice %318 {offsets = [5, 0], sizes = [16, 128], strides = [1, 1]} : vector<24x128xf32> to vector<16x128xf32>
    %376 = vector.extract_strided_slice %322 {offsets = [5, 0], sizes = [16, 128], strides = [1, 1]} : vector<24x128xf32> to vector<16x128xf32>
    %c1_170 = arith.constant 1 : index
    %c5_171 = arith.constant 5 : index
    %377 = memref.load %arg4[%c1_170, %c5_171] : memref<2x9xf32, #tpu.memory_space<smem>>
    %378 = vector.broadcast %377 : f32 to vector<16x128xf32>
    %379 = arith.mulf %378, %375 : vector<16x128xf32>
    %380 = arith.addf %370, %379 : vector<16x128xf32>
    %c0_172 = arith.constant 0 : index
    %c5_173 = arith.constant 5 : index
    %381 = memref.load %arg4[%c0_172, %c5_173] : memref<2x9xf32, #tpu.memory_space<smem>>
    %382 = vector.broadcast %381 : f32 to vector<16x128xf32>
    %383 = arith.mulf %382, %376 : vector<16x128xf32>
    %384 = arith.addf %374, %383 : vector<16x128xf32>
    %385 = vector.extract_strided_slice %318 {offsets = [6, 0], sizes = [16, 128], strides = [1, 1]} : vector<24x128xf32> to vector<16x128xf32>
    %386 = vector.extract_strided_slice %322 {offsets = [6, 0], sizes = [16, 128], strides = [1, 1]} : vector<24x128xf32> to vector<16x128xf32>
    %c1_174 = arith.constant 1 : index
    %c6_175 = arith.constant 6 : index
    %387 = memref.load %arg4[%c1_174, %c6_175] : memref<2x9xf32, #tpu.memory_space<smem>>
    %388 = vector.broadcast %387 : f32 to vector<16x128xf32>
    %389 = arith.mulf %388, %385 : vector<16x128xf32>
    %390 = arith.addf %380, %389 : vector<16x128xf32>
    %c0_176 = arith.constant 0 : index
    %c6_177 = arith.constant 6 : index
    %391 = memref.load %arg4[%c0_176, %c6_177] : memref<2x9xf32, #tpu.memory_space<smem>>
    %392 = vector.broadcast %391 : f32 to vector<16x128xf32>
    %393 = arith.mulf %392, %386 : vector<16x128xf32>
    %394 = arith.addf %384, %393 : vector<16x128xf32>
    %395 = vector.extract_strided_slice %318 {offsets = [7, 0], sizes = [16, 128], strides = [1, 1]} : vector<24x128xf32> to vector<16x128xf32>
    %396 = vector.extract_strided_slice %322 {offsets = [7, 0], sizes = [16, 128], strides = [1, 1]} : vector<24x128xf32> to vector<16x128xf32>
    %c1_178 = arith.constant 1 : index
    %c7_179 = arith.constant 7 : index
    %397 = memref.load %arg4[%c1_178, %c7_179] : memref<2x9xf32, #tpu.memory_space<smem>>
    %398 = vector.broadcast %397 : f32 to vector<16x128xf32>
    %399 = arith.mulf %398, %395 : vector<16x128xf32>
    %400 = arith.addf %390, %399 : vector<16x128xf32>
    %c0_180 = arith.constant 0 : index
    %c7_181 = arith.constant 7 : index
    %401 = memref.load %arg4[%c0_180, %c7_181] : memref<2x9xf32, #tpu.memory_space<smem>>
    %402 = vector.broadcast %401 : f32 to vector<16x128xf32>
    %403 = arith.mulf %402, %396 : vector<16x128xf32>
    %404 = arith.addf %394, %403 : vector<16x128xf32>
    %405 = vector.extract_strided_slice %318 {offsets = [8, 0], sizes = [16, 128], strides = [1, 1]} : vector<24x128xf32> to vector<16x128xf32>
    %406 = vector.extract_strided_slice %322 {offsets = [8, 0], sizes = [16, 128], strides = [1, 1]} : vector<24x128xf32> to vector<16x128xf32>
    %c1_182 = arith.constant 1 : index
    %c8_183 = arith.constant 8 : index
    %407 = memref.load %arg4[%c1_182, %c8_183] : memref<2x9xf32, #tpu.memory_space<smem>>
    %408 = vector.broadcast %407 : f32 to vector<16x128xf32>
    %409 = arith.mulf %408, %405 : vector<16x128xf32>
    %410 = arith.addf %400, %409 : vector<16x128xf32>
    %c0_184 = arith.constant 0 : index
    %c8_185 = arith.constant 8 : index
    %411 = memref.load %arg4[%c0_184, %c8_185] : memref<2x9xf32, #tpu.memory_space<smem>>
    %412 = vector.broadcast %411 : f32 to vector<16x128xf32>
    %413 = arith.mulf %412, %406 : vector<16x128xf32>
    %414 = arith.addf %404, %413 : vector<16x128xf32>
    %c2_186 = arith.constant 2 : index
    %c0_187 = arith.constant 0 : index
    %415 = memref.load %arg3[%c2_186, %c0_187] : memref<3x3xf32, #tpu.memory_space<smem>>
    %416 = vector.broadcast %415 : f32 to vector<24x128xf32>
    %417 = arith.mulf %416, %3 : vector<24x128xf32>
    %c2_188 = arith.constant 2 : index
    %c1_189 = arith.constant 1 : index
    %418 = memref.load %arg3[%c2_188, %c1_189] : memref<3x3xf32, #tpu.memory_space<smem>>
    %419 = vector.broadcast %418 : f32 to vector<24x128xf32>
    %420 = arith.mulf %419, %5 : vector<24x128xf32>
    %421 = arith.addf %417, %420 : vector<24x128xf32>
    %c2_190 = arith.constant 2 : index
    %c2_191 = arith.constant 2 : index
    %422 = memref.load %arg3[%c2_190, %c2_191] : memref<3x3xf32, #tpu.memory_space<smem>>
    %423 = vector.broadcast %422 : f32 to vector<24x128xf32>
    %424 = arith.mulf %423, %7 : vector<24x128xf32>
    %425 = arith.addf %421, %424 : vector<24x128xf32>
    %cst_192 = arith.constant 0.000000e+00 : f32
    %426 = vector.broadcast %cst_192 : f32 to vector<24x128xf32>
    %cst_193 = arith.constant 0.000000e+00 : f32
    %427 = vector.broadcast %cst_193 : f32 to vector<24x128xf32>
    %c4_i32_194 = arith.constant 4 : i32
    %428 = tpu.dynamic_rotate %425 by %c4_i32_194 dim 1 : vector<24x128xf32>, i32 -> vector<24x128xf32>
    %c0_195 = arith.constant 0 : index
    %c0_196 = arith.constant 0 : index
    %429 = memref.load %arg4[%c0_195, %c0_196] : memref<2x9xf32, #tpu.memory_space<smem>>
    %430 = vector.broadcast %429 : f32 to vector<24x128xf32>
    %431 = arith.mulf %430, %428 : vector<24x128xf32>
    %432 = arith.addf %426, %431 : vector<24x128xf32>
    %c1_197 = arith.constant 1 : index
    %c0_198 = arith.constant 0 : index
    %433 = memref.load %arg4[%c1_197, %c0_198] : memref<2x9xf32, #tpu.memory_space<smem>>
    %434 = vector.broadcast %433 : f32 to vector<24x128xf32>
    %435 = arith.mulf %434, %428 : vector<24x128xf32>
    %436 = arith.addf %427, %435 : vector<24x128xf32>
    %c3_i32_199 = arith.constant 3 : i32
    %437 = tpu.dynamic_rotate %425 by %c3_i32_199 dim 1 : vector<24x128xf32>, i32 -> vector<24x128xf32>
    %c0_200 = arith.constant 0 : index
    %c1_201 = arith.constant 1 : index
    %438 = memref.load %arg4[%c0_200, %c1_201] : memref<2x9xf32, #tpu.memory_space<smem>>
    %439 = vector.broadcast %438 : f32 to vector<24x128xf32>
    %440 = arith.mulf %439, %437 : vector<24x128xf32>
    %441 = arith.addf %432, %440 : vector<24x128xf32>
    %c1_202 = arith.constant 1 : index
    %c1_203 = arith.constant 1 : index
    %442 = memref.load %arg4[%c1_202, %c1_203] : memref<2x9xf32, #tpu.memory_space<smem>>
    %443 = vector.broadcast %442 : f32 to vector<24x128xf32>
    %444 = arith.mulf %443, %437 : vector<24x128xf32>
    %445 = arith.addf %436, %444 : vector<24x128xf32>
    %c2_i32_204 = arith.constant 2 : i32
    %446 = tpu.dynamic_rotate %425 by %c2_i32_204 dim 1 : vector<24x128xf32>, i32 -> vector<24x128xf32>
    %c0_205 = arith.constant 0 : index
    %c2_206 = arith.constant 2 : index
    %447 = memref.load %arg4[%c0_205, %c2_206] : memref<2x9xf32, #tpu.memory_space<smem>>
    %448 = vector.broadcast %447 : f32 to vector<24x128xf32>
    %449 = arith.mulf %448, %446 : vector<24x128xf32>
    %450 = arith.addf %441, %449 : vector<24x128xf32>
    %c1_207 = arith.constant 1 : index
    %c2_208 = arith.constant 2 : index
    %451 = memref.load %arg4[%c1_207, %c2_208] : memref<2x9xf32, #tpu.memory_space<smem>>
    %452 = vector.broadcast %451 : f32 to vector<24x128xf32>
    %453 = arith.mulf %452, %446 : vector<24x128xf32>
    %454 = arith.addf %445, %453 : vector<24x128xf32>
    %c1_i32_209 = arith.constant 1 : i32
    %455 = tpu.dynamic_rotate %425 by %c1_i32_209 dim 1 : vector<24x128xf32>, i32 -> vector<24x128xf32>
    %c0_210 = arith.constant 0 : index
    %c3_211 = arith.constant 3 : index
    %456 = memref.load %arg4[%c0_210, %c3_211] : memref<2x9xf32, #tpu.memory_space<smem>>
    %457 = vector.broadcast %456 : f32 to vector<24x128xf32>
    %458 = arith.mulf %457, %455 : vector<24x128xf32>
    %459 = arith.addf %450, %458 : vector<24x128xf32>
    %c1_212 = arith.constant 1 : index
    %c3_213 = arith.constant 3 : index
    %460 = memref.load %arg4[%c1_212, %c3_213] : memref<2x9xf32, #tpu.memory_space<smem>>
    %461 = vector.broadcast %460 : f32 to vector<24x128xf32>
    %462 = arith.mulf %461, %455 : vector<24x128xf32>
    %463 = arith.addf %454, %462 : vector<24x128xf32>
    %c0_214 = arith.constant 0 : index
    %c4_215 = arith.constant 4 : index
    %464 = memref.load %arg4[%c0_214, %c4_215] : memref<2x9xf32, #tpu.memory_space<smem>>
    %465 = vector.broadcast %464 : f32 to vector<24x128xf32>
    %466 = arith.mulf %465, %425 : vector<24x128xf32>
    %467 = arith.addf %459, %466 : vector<24x128xf32>
    %c1_216 = arith.constant 1 : index
    %c4_217 = arith.constant 4 : index
    %468 = memref.load %arg4[%c1_216, %c4_217] : memref<2x9xf32, #tpu.memory_space<smem>>
    %469 = vector.broadcast %468 : f32 to vector<24x128xf32>
    %470 = arith.mulf %469, %425 : vector<24x128xf32>
    %471 = arith.addf %463, %470 : vector<24x128xf32>
    %c127_i32_218 = arith.constant 127 : i32
    %472 = tpu.dynamic_rotate %425 by %c127_i32_218 dim 1 : vector<24x128xf32>, i32 -> vector<24x128xf32>
    %c0_219 = arith.constant 0 : index
    %c5_220 = arith.constant 5 : index
    %473 = memref.load %arg4[%c0_219, %c5_220] : memref<2x9xf32, #tpu.memory_space<smem>>
    %474 = vector.broadcast %473 : f32 to vector<24x128xf32>
    %475 = arith.mulf %474, %472 : vector<24x128xf32>
    %476 = arith.addf %467, %475 : vector<24x128xf32>
    %c1_221 = arith.constant 1 : index
    %c5_222 = arith.constant 5 : index
    %477 = memref.load %arg4[%c1_221, %c5_222] : memref<2x9xf32, #tpu.memory_space<smem>>
    %478 = vector.broadcast %477 : f32 to vector<24x128xf32>
    %479 = arith.mulf %478, %472 : vector<24x128xf32>
    %480 = arith.addf %471, %479 : vector<24x128xf32>
    %c126_i32_223 = arith.constant 126 : i32
    %481 = tpu.dynamic_rotate %425 by %c126_i32_223 dim 1 : vector<24x128xf32>, i32 -> vector<24x128xf32>
    %c0_224 = arith.constant 0 : index
    %c6_225 = arith.constant 6 : index
    %482 = memref.load %arg4[%c0_224, %c6_225] : memref<2x9xf32, #tpu.memory_space<smem>>
    %483 = vector.broadcast %482 : f32 to vector<24x128xf32>
    %484 = arith.mulf %483, %481 : vector<24x128xf32>
    %485 = arith.addf %476, %484 : vector<24x128xf32>
    %c1_226 = arith.constant 1 : index
    %c6_227 = arith.constant 6 : index
    %486 = memref.load %arg4[%c1_226, %c6_227] : memref<2x9xf32, #tpu.memory_space<smem>>
    %487 = vector.broadcast %486 : f32 to vector<24x128xf32>
    %488 = arith.mulf %487, %481 : vector<24x128xf32>
    %489 = arith.addf %480, %488 : vector<24x128xf32>
    %c125_i32_228 = arith.constant 125 : i32
    %490 = tpu.dynamic_rotate %425 by %c125_i32_228 dim 1 : vector<24x128xf32>, i32 -> vector<24x128xf32>
    %c0_229 = arith.constant 0 : index
    %c7_230 = arith.constant 7 : index
    %491 = memref.load %arg4[%c0_229, %c7_230] : memref<2x9xf32, #tpu.memory_space<smem>>
    %492 = vector.broadcast %491 : f32 to vector<24x128xf32>
    %493 = arith.mulf %492, %490 : vector<24x128xf32>
    %494 = arith.addf %485, %493 : vector<24x128xf32>
    %c1_231 = arith.constant 1 : index
    %c7_232 = arith.constant 7 : index
    %495 = memref.load %arg4[%c1_231, %c7_232] : memref<2x9xf32, #tpu.memory_space<smem>>
    %496 = vector.broadcast %495 : f32 to vector<24x128xf32>
    %497 = arith.mulf %496, %490 : vector<24x128xf32>
    %498 = arith.addf %489, %497 : vector<24x128xf32>
    %c124_i32_233 = arith.constant 124 : i32
    %499 = tpu.dynamic_rotate %425 by %c124_i32_233 dim 1 : vector<24x128xf32>, i32 -> vector<24x128xf32>
    %c0_234 = arith.constant 0 : index
    %c8_235 = arith.constant 8 : index
    %500 = memref.load %arg4[%c0_234, %c8_235] : memref<2x9xf32, #tpu.memory_space<smem>>
    %501 = vector.broadcast %500 : f32 to vector<24x128xf32>
    %502 = arith.mulf %501, %499 : vector<24x128xf32>
    %503 = arith.addf %494, %502 : vector<24x128xf32>
    %c1_236 = arith.constant 1 : index
    %c8_237 = arith.constant 8 : index
    %504 = memref.load %arg4[%c1_236, %c8_237] : memref<2x9xf32, #tpu.memory_space<smem>>
    %505 = vector.broadcast %504 : f32 to vector<24x128xf32>
    %506 = arith.mulf %505, %499 : vector<24x128xf32>
    %507 = arith.addf %498, %506 : vector<24x128xf32>
    %cst_238 = arith.constant 0.000000e+00 : f32
    %508 = vector.broadcast %cst_238 : f32 to vector<16x128xf32>
    %cst_239 = arith.constant 0.000000e+00 : f32
    %509 = vector.broadcast %cst_239 : f32 to vector<16x128xf32>
    %510 = vector.extract_strided_slice %503 {offsets = [0, 0], sizes = [16, 128], strides = [1, 1]} : vector<24x128xf32> to vector<16x128xf32>
    %511 = vector.extract_strided_slice %507 {offsets = [0, 0], sizes = [16, 128], strides = [1, 1]} : vector<24x128xf32> to vector<16x128xf32>
    %c1_240 = arith.constant 1 : index
    %c0_241 = arith.constant 0 : index
    %512 = memref.load %arg4[%c1_240, %c0_241] : memref<2x9xf32, #tpu.memory_space<smem>>
    %513 = vector.broadcast %512 : f32 to vector<16x128xf32>
    %514 = arith.mulf %513, %510 : vector<16x128xf32>
    %515 = arith.addf %508, %514 : vector<16x128xf32>
    %c0_242 = arith.constant 0 : index
    %c0_243 = arith.constant 0 : index
    %516 = memref.load %arg4[%c0_242, %c0_243] : memref<2x9xf32, #tpu.memory_space<smem>>
    %517 = vector.broadcast %516 : f32 to vector<16x128xf32>
    %518 = arith.mulf %517, %511 : vector<16x128xf32>
    %519 = arith.addf %509, %518 : vector<16x128xf32>
    %520 = vector.extract_strided_slice %503 {offsets = [1, 0], sizes = [16, 128], strides = [1, 1]} : vector<24x128xf32> to vector<16x128xf32>
    %521 = vector.extract_strided_slice %507 {offsets = [1, 0], sizes = [16, 128], strides = [1, 1]} : vector<24x128xf32> to vector<16x128xf32>
    %c1_244 = arith.constant 1 : index
    %c1_245 = arith.constant 1 : index
    %522 = memref.load %arg4[%c1_244, %c1_245] : memref<2x9xf32, #tpu.memory_space<smem>>
    %523 = vector.broadcast %522 : f32 to vector<16x128xf32>
    %524 = arith.mulf %523, %520 : vector<16x128xf32>
    %525 = arith.addf %515, %524 : vector<16x128xf32>
    %c0_246 = arith.constant 0 : index
    %c1_247 = arith.constant 1 : index
    %526 = memref.load %arg4[%c0_246, %c1_247] : memref<2x9xf32, #tpu.memory_space<smem>>
    %527 = vector.broadcast %526 : f32 to vector<16x128xf32>
    %528 = arith.mulf %527, %521 : vector<16x128xf32>
    %529 = arith.addf %519, %528 : vector<16x128xf32>
    %530 = vector.extract_strided_slice %503 {offsets = [2, 0], sizes = [16, 128], strides = [1, 1]} : vector<24x128xf32> to vector<16x128xf32>
    %531 = vector.extract_strided_slice %507 {offsets = [2, 0], sizes = [16, 128], strides = [1, 1]} : vector<24x128xf32> to vector<16x128xf32>
    %c1_248 = arith.constant 1 : index
    %c2_249 = arith.constant 2 : index
    %532 = memref.load %arg4[%c1_248, %c2_249] : memref<2x9xf32, #tpu.memory_space<smem>>
    %533 = vector.broadcast %532 : f32 to vector<16x128xf32>
    %534 = arith.mulf %533, %530 : vector<16x128xf32>
    %535 = arith.addf %525, %534 : vector<16x128xf32>
    %c0_250 = arith.constant 0 : index
    %c2_251 = arith.constant 2 : index
    %536 = memref.load %arg4[%c0_250, %c2_251] : memref<2x9xf32, #tpu.memory_space<smem>>
    %537 = vector.broadcast %536 : f32 to vector<16x128xf32>
    %538 = arith.mulf %537, %531 : vector<16x128xf32>
    %539 = arith.addf %529, %538 : vector<16x128xf32>
    %540 = vector.extract_strided_slice %503 {offsets = [3, 0], sizes = [16, 128], strides = [1, 1]} : vector<24x128xf32> to vector<16x128xf32>
    %541 = vector.extract_strided_slice %507 {offsets = [3, 0], sizes = [16, 128], strides = [1, 1]} : vector<24x128xf32> to vector<16x128xf32>
    %c1_252 = arith.constant 1 : index
    %c3_253 = arith.constant 3 : index
    %542 = memref.load %arg4[%c1_252, %c3_253] : memref<2x9xf32, #tpu.memory_space<smem>>
    %543 = vector.broadcast %542 : f32 to vector<16x128xf32>
    %544 = arith.mulf %543, %540 : vector<16x128xf32>
    %545 = arith.addf %535, %544 : vector<16x128xf32>
    %c0_254 = arith.constant 0 : index
    %c3_255 = arith.constant 3 : index
    %546 = memref.load %arg4[%c0_254, %c3_255] : memref<2x9xf32, #tpu.memory_space<smem>>
    %547 = vector.broadcast %546 : f32 to vector<16x128xf32>
    %548 = arith.mulf %547, %541 : vector<16x128xf32>
    %549 = arith.addf %539, %548 : vector<16x128xf32>
    %550 = vector.extract_strided_slice %503 {offsets = [4, 0], sizes = [16, 128], strides = [1, 1]} : vector<24x128xf32> to vector<16x128xf32>
    %551 = vector.extract_strided_slice %507 {offsets = [4, 0], sizes = [16, 128], strides = [1, 1]} : vector<24x128xf32> to vector<16x128xf32>
    %c1_256 = arith.constant 1 : index
    %c4_257 = arith.constant 4 : index
    %552 = memref.load %arg4[%c1_256, %c4_257] : memref<2x9xf32, #tpu.memory_space<smem>>
    %553 = vector.broadcast %552 : f32 to vector<16x128xf32>
    %554 = arith.mulf %553, %550 : vector<16x128xf32>
    %555 = arith.addf %545, %554 : vector<16x128xf32>
    %c0_258 = arith.constant 0 : index
    %c4_259 = arith.constant 4 : index
    %556 = memref.load %arg4[%c0_258, %c4_259] : memref<2x9xf32, #tpu.memory_space<smem>>
    %557 = vector.broadcast %556 : f32 to vector<16x128xf32>
    %558 = arith.mulf %557, %551 : vector<16x128xf32>
    %559 = arith.addf %549, %558 : vector<16x128xf32>
    %560 = vector.extract_strided_slice %503 {offsets = [5, 0], sizes = [16, 128], strides = [1, 1]} : vector<24x128xf32> to vector<16x128xf32>
    %561 = vector.extract_strided_slice %507 {offsets = [5, 0], sizes = [16, 128], strides = [1, 1]} : vector<24x128xf32> to vector<16x128xf32>
    %c1_260 = arith.constant 1 : index
    %c5_261 = arith.constant 5 : index
    %562 = memref.load %arg4[%c1_260, %c5_261] : memref<2x9xf32, #tpu.memory_space<smem>>
    %563 = vector.broadcast %562 : f32 to vector<16x128xf32>
    %564 = arith.mulf %563, %560 : vector<16x128xf32>
    %565 = arith.addf %555, %564 : vector<16x128xf32>
    %c0_262 = arith.constant 0 : index
    %c5_263 = arith.constant 5 : index
    %566 = memref.load %arg4[%c0_262, %c5_263] : memref<2x9xf32, #tpu.memory_space<smem>>
    %567 = vector.broadcast %566 : f32 to vector<16x128xf32>
    %568 = arith.mulf %567, %561 : vector<16x128xf32>
    %569 = arith.addf %559, %568 : vector<16x128xf32>
    %570 = vector.extract_strided_slice %503 {offsets = [6, 0], sizes = [16, 128], strides = [1, 1]} : vector<24x128xf32> to vector<16x128xf32>
    %571 = vector.extract_strided_slice %507 {offsets = [6, 0], sizes = [16, 128], strides = [1, 1]} : vector<24x128xf32> to vector<16x128xf32>
    %c1_264 = arith.constant 1 : index
    %c6_265 = arith.constant 6 : index
    %572 = memref.load %arg4[%c1_264, %c6_265] : memref<2x9xf32, #tpu.memory_space<smem>>
    %573 = vector.broadcast %572 : f32 to vector<16x128xf32>
    %574 = arith.mulf %573, %570 : vector<16x128xf32>
    %575 = arith.addf %565, %574 : vector<16x128xf32>
    %c0_266 = arith.constant 0 : index
    %c6_267 = arith.constant 6 : index
    %576 = memref.load %arg4[%c0_266, %c6_267] : memref<2x9xf32, #tpu.memory_space<smem>>
    %577 = vector.broadcast %576 : f32 to vector<16x128xf32>
    %578 = arith.mulf %577, %571 : vector<16x128xf32>
    %579 = arith.addf %569, %578 : vector<16x128xf32>
    %580 = vector.extract_strided_slice %503 {offsets = [7, 0], sizes = [16, 128], strides = [1, 1]} : vector<24x128xf32> to vector<16x128xf32>
    %581 = vector.extract_strided_slice %507 {offsets = [7, 0], sizes = [16, 128], strides = [1, 1]} : vector<24x128xf32> to vector<16x128xf32>
    %c1_268 = arith.constant 1 : index
    %c7_269 = arith.constant 7 : index
    %582 = memref.load %arg4[%c1_268, %c7_269] : memref<2x9xf32, #tpu.memory_space<smem>>
    %583 = vector.broadcast %582 : f32 to vector<16x128xf32>
    %584 = arith.mulf %583, %580 : vector<16x128xf32>
    %585 = arith.addf %575, %584 : vector<16x128xf32>
    %c0_270 = arith.constant 0 : index
    %c7_271 = arith.constant 7 : index
    %586 = memref.load %arg4[%c0_270, %c7_271] : memref<2x9xf32, #tpu.memory_space<smem>>
    %587 = vector.broadcast %586 : f32 to vector<16x128xf32>
    %588 = arith.mulf %587, %581 : vector<16x128xf32>
    %589 = arith.addf %579, %588 : vector<16x128xf32>
    %590 = vector.extract_strided_slice %503 {offsets = [8, 0], sizes = [16, 128], strides = [1, 1]} : vector<24x128xf32> to vector<16x128xf32>
    %591 = vector.extract_strided_slice %507 {offsets = [8, 0], sizes = [16, 128], strides = [1, 1]} : vector<24x128xf32> to vector<16x128xf32>
    %c1_272 = arith.constant 1 : index
    %c8_273 = arith.constant 8 : index
    %592 = memref.load %arg4[%c1_272, %c8_273] : memref<2x9xf32, #tpu.memory_space<smem>>
    %593 = vector.broadcast %592 : f32 to vector<16x128xf32>
    %594 = arith.mulf %593, %590 : vector<16x128xf32>
    %595 = arith.addf %585, %594 : vector<16x128xf32>
    %c0_274 = arith.constant 0 : index
    %c8_275 = arith.constant 8 : index
    %596 = memref.load %arg4[%c0_274, %c8_275] : memref<2x9xf32, #tpu.memory_space<smem>>
    %597 = vector.broadcast %596 : f32 to vector<16x128xf32>
    %598 = arith.mulf %597, %591 : vector<16x128xf32>
    %599 = arith.addf %589, %598 : vector<16x128xf32>
    %cst_276 = arith.constant 9.99999974E-6 : f32
    %600 = vector.broadcast %cst_276 : f32 to vector<16x128xf32>
    %601 = arith.addf %221, %600 : vector<16x128xf32>
    %cst_277 = arith.constant 1.000000e+00 : f32
    %602 = vector.broadcast %cst_277 : f32 to vector<16x128xf32>
    %603 = arith.divf %602, %601 : vector<16x128xf32>
    %604 = arith.mulf %225, %603 : vector<16x128xf32>
    %605 = arith.mulf %604, %604 : vector<16x128xf32>
    %606 = arith.mulf %229, %603 : vector<16x128xf32>
    %607 = arith.mulf %606, %606 : vector<16x128xf32>
    %608 = arith.addf %605, %607 : vector<16x128xf32>
    %609 = arith.mulf %410, %603 : vector<16x128xf32>
    %610 = arith.mulf %609, %609 : vector<16x128xf32>
    %611 = arith.addf %608, %610 : vector<16x128xf32>
    %612 = arith.mulf %414, %603 : vector<16x128xf32>
    %613 = arith.mulf %612, %612 : vector<16x128xf32>
    %614 = arith.addf %611, %613 : vector<16x128xf32>
    %615 = arith.mulf %595, %603 : vector<16x128xf32>
    %616 = arith.mulf %615, %615 : vector<16x128xf32>
    %617 = arith.addf %614, %616 : vector<16x128xf32>
    %618 = arith.mulf %599, %603 : vector<16x128xf32>
    %619 = arith.mulf %618, %618 : vector<16x128xf32>
    %620 = arith.addf %617, %619 : vector<16x128xf32>
    %cst_278 = arith.constant 9.99999974E-6 : f32
    %621 = vector.broadcast %cst_278 : f32 to vector<16x128xf32>
    %622 = arith.addf %620, %621 : vector<16x128xf32>
    %623 = math.log %622 : vector<16x128xf32>
    %624 = tpu.iota {dimensions = array<i32: 0>} : vector<16x128xi32>
    %c16_i32 = arith.constant 16 : i32
    %625 = arith.muli %arg1, %c16_i32 : i32
    %626 = vector.broadcast %625 : i32 to vector<16x128xi32>
    %627 = arith.addi %624, %626 : vector<16x128xi32>
    %628 = tpu.iota {dimensions = array<i32: 1>} : vector<16x128xi32>
    %c16_i32_279 = arith.constant 16 : i32
    %629 = vector.broadcast %c16_i32_279 : i32 to vector<16x128xi32>
    %630 = arith.cmpi slt, %627, %629 : vector<16x128xi32>
    %c16_i32_280 = arith.constant 16 : i32
    %631 = vector.broadcast %c16_i32_280 : i32 to vector<16x128xi32>
    %632 = arith.cmpi slt, %628, %631 : vector<16x128xi32>
    %633 = arith.andi %630, %632 : vector<16x128xi1>
    %cst_281 = arith.constant 0.000000e+00 : f32
    %634 = vector.broadcast %cst_281 : f32 to vector<16x128xf32>
    %635 = arith.select %633, %623, %634 : vector<16x128xi1>, vector<16x128xf32>
    %636 = vector.shape_cast %635 : vector<16x128xf32> to vector<1x16x128xf32>
    %cst_282 = arith.constant dense<0.000000e+00> : vector<1xf32>
    %637 = vector.multi_reduction <add>, %636, %cst_282 [1, 2] : vector<1x16x128xf32> to vector<1xf32>
    %638 = vector.shape_cast %637 : vector<1xf32> to vector<1x1x1xf32>
    %639 = vector.extract %638[0, 0, 0] : f32 from vector<1x1x1xf32>
    %640 = arith.mulf %635, %635 : vector<16x128xf32>
    %641 = vector.shape_cast %640 : vector<16x128xf32> to vector<1x16x128xf32>
    %cst_283 = arith.constant dense<0.000000e+00> : vector<1xf32>
    %642 = vector.multi_reduction <add>, %641, %cst_283 [1, 2] : vector<1x16x128xf32> to vector<1xf32>
    %643 = vector.shape_cast %642 : vector<1xf32> to vector<1x1x1xf32>
    %644 = vector.extract %643[0, 0, 0] : f32 from vector<1x1x1xf32>
    %645 = tpu.iota {dimensions = array<i32: 1>} : vector<1x128xi32>
    %c0_i32 = arith.constant 0 : i32
    %646 = vector.broadcast %c0_i32 : i32 to vector<1x128xi32>
    %647 = arith.cmpi eq, %645, %646 : vector<1x128xi32>
    %c1_i32_284 = arith.constant 1 : i32
    %648 = vector.broadcast %c1_i32_284 : i32 to vector<1x128xi32>
    %649 = arith.cmpi eq, %645, %648 : vector<1x128xi32>
    %cst_285 = arith.constant 0.000000e+00 : f32
    %650 = vector.broadcast %644 : f32 to vector<1x128xf32>
    %651 = vector.broadcast %cst_285 : f32 to vector<1x128xf32>
    %652 = arith.select %649, %650, %651 : vector<1x128xi1>, vector<1x128xf32>
    %653 = vector.broadcast %639 : f32 to vector<1x128xf32>
    %654 = arith.select %647, %653, %652 : vector<1x128xi1>, vector<1x128xf32>
    %c0_286 = arith.constant 0 : index
    %c0_287 = arith.constant 0 : index
    %c0_288 = arith.constant 0 : index
    %c0_289 = arith.constant 0 : index
    %655 = vector.load %arg6[%c0_286, %c0_287, %c0_288, %c0_289] : memref<1x1x1x128xf32, #tpu.memory_space<vmem>>, vector<1x1x1x128xf32>
    %656 = vector.shape_cast %655 : vector<1x1x1x128xf32> to vector<1x128xf32>
    %657 = vector.shape_cast %654 : vector<1x128xf32> to vector<1x1x1x128xf32>
    tpu.vector_store %arg6[%c0_286, %c0_287, %c0_288, %c0_289], %657 {strides = array<i32>} : memref<1x1x1x128xf32, #tpu.memory_space<vmem>>, vector<1x1x1x128xf32>,
    %cst_290 = arith.constant 2.560000e+02 : f32
    %658 = arith.divf %639, %cst_290 : f32
    %cst_291 = arith.constant 2.560000e+02 : f32
    %659 = arith.divf %644, %cst_291 : f32
    %660 = arith.mulf %658, %658 : f32
    %661 = arith.subf %659, %660 : f32
    %cst_292 = arith.constant 0.000000e+00 : f32
    %662 = arith.maximumf %661, %cst_292 : f32
    %663 = vector.broadcast %658 : f32 to vector<16x128xf32>
    %664 = arith.subf %623, %663 : vector<16x128xf32>
    %cst_293 = arith.constant 9.99999974E-6 : f32
    %665 = arith.addf %662, %cst_293 : f32
    %666 = math.rsqrt %665 : f32
    %667 = vector.broadcast %666 : f32 to vector<16x128xf32>
    %668 = arith.mulf %664, %667 : vector<16x128xf32>
    %c0_294 = arith.constant 0 : index
    %c0_295 = arith.constant 0 : index
    %c0_296 = arith.constant 0 : index
    %669 = vector.load %arg5[%c0_294, %c0_295, %c0_296] : memref<1x16x128xf32, #tpu.memory_space<vmem>>, vector<1x16x128xf32>
    %670 = vector.shape_cast %669 : vector<1x16x128xf32> to vector<16x128xf32>
    %671 = vector.shape_cast %668 : vector<16x128xf32> to vector<1x16x128xf32>
    tpu.vector_store %arg5[%c0_294, %c0_295, %c0_296], %671 {strides = array<i32>} : memref<1x16x128xf32, #tpu.memory_space<vmem>>, vector<1x16x128xf32>,
    return
  }
  func.func @transform_0(%arg0: i32, %arg1: i32) -> (i32, i32, i32, i32, i32) {
    %c0_i32 = arith.constant 0 : i32
    %c0_i32_0 = arith.constant 0 : i32
    %c0_i32_1 = arith.constant 0 : i32
    %c0_i32_2 = arith.constant 0 : i32
    return %arg0, %arg1, %c0_i32, %c0_i32_0, %c0_i32_1 : i32, i32, i32, i32, i32
  }
  func.func @transform_1(%arg0: i32, %arg1: i32) -> (i32, i32) {
    %c0_i32 = arith.constant 0 : i32
    %c0_i32_0 = arith.constant 0 : i32
    %c0_i32_1 = arith.constant 0 : i32
    return %c0_i32, %c0_i32_0 : i32, i32
  }
  func.func @transform_2(%arg0: i32, %arg1: i32) -> (i32, i32) {
    %c0_i32 = arith.constant 0 : i32
    %c0_i32_0 = arith.constant 0 : i32
    %c0_i32_1 = arith.constant 0 : i32
    return %c0_i32, %c0_i32_0 : i32, i32
  }
  func.func @transform_3(%arg0: i32, %arg1: i32) -> (i32, i32, i32) {
    %c0_i32 = arith.constant 0 : i32
    %c0_i32_0 = arith.constant 0 : i32
    return %arg0, %arg1, %c0_i32 : i32, i32, i32
  }
  func.func @transform_4(%arg0: i32, %arg1: i32) -> (i32, i32, i32, i32) {
    %c0_i32 = arith.constant 0 : i32
    %c0_i32_0 = arith.constant 0 : i32
    %c0_i32_1 = arith.constant 0 : i32
    return %arg0, %arg1, %c0_i32, %c0_i32_0 : i32, i32, i32, i32
  }
}

</mosaic_0001>

<bundles_post_ra>
// kernel: tpu_custom_call.1
= control target key start
LH: loop header
LB: loop body
LE: loop exit
PB: predicated region body
PF: predicated region fallthrough
CT: control target
= control target key end

     0   :  { %10 = vsyncpa [#allocation3], 0  ;;  %s3760_s0 = inlined_call_operand.hbm [shape: f32[2,1,3,24,128], index: 0, kind: input, shape index: {}]   ;;  %s3761_s1 = inlined_call_operand.hbm [shape: f32[3,3], index: 1, kind: input, shape index: {}]   ;;  %s3762_s2 = inlined_call_operand.vmem [shape: f32[2,9], index: 2, kind: input, shape index: {}]   ;;  %s3763_s3 = inlined_call_operand.hbm [shape: f32[2,16,128], index: 3, kind: output, shape index: {0}]   ;;  %s3764_s4 = inlined_call_operand.hbm [shape: f32[2,1,1,128], index: 4, kind: output, shape index: {1}]  }
   0x1   :  { %12 = vsyncpa [#allocation3 + $0x1], 0 }
   0x2   :  { %13 = vsyncpa [#allocation5], 0 }
   0x3   :  { %14 = vsyncpa [#allocation6], 0 }
   0x4   :  { %15 = vsyncpa [#allocation4], 0 }
   0x5   :  { %17 = vsyncpa [#allocation4 + $0x1], 0 }
   0x6   :  { %18 = vsyncpa [#allocation11], 0 }
   0x7   :  { %20 = vsyncpa [#allocation11 + $0x1], 0  ;;  %s2320_s15 = smov 0   ;;  %s2322_s16 = smov 0  }
   0x8   :  { %s2324_s17 = smov 0   ;;  %s2326_s18 = smov 0  }
   0x9   :  { %s2328_s19 = smov 0   ;;  %s2330_s20 = smov 0  }
   0xa LB: > { %s1932_s21 = sadd.s32 4294967295, %s2275_s20   ;;  %s1933_s22 = sadd.s32 4294967294, %s2275_s20   ;;  %s2275_s20 = sphi %s2330_s20, %s26_s20   ;;  %s2271_s19 = sphi %s2328_s19, %s3865_s19   ;;  %s2267_s18 = sphi %s2326_s18, %s3864_s18   ;;  %s2263_s17 = sphi %s2324_s17, %s3863_s17   ;;  %s2259_s16 = sphi %s2322_s16, %s3862_s16   ;;  %s2255_s15 = sphi %s2320_s15, %s3861_s15  }
   0xb   : > { %s47_s23 = sadd.s32 1, %s2263_s17  ;;  %p54_p0 = scmp.ne.s32.totalorder %s2263_s17, %s2259_s16 }
   0xc   : > { %p55_p1 = scmp.eq.s32.totalorder %s2275_s20, 0  ;;  %p60_p2 = scmp.ne.s32.totalorder %s2259_s16, %s2255_s15 }
   0xd   : > { %p2358_p3 = scmp.eq.s32.totalorder %s1932_s21, 0  ;;  %p128_p4 = scmp.eq.s32.totalorder %s1932_s21, 1 }
   0xe   : > { %p56_p5 = por %p55_p1, %p54_p0  ;;  %p134_p6 = scmp.eq.s32.totalorder %s1933_s22, 1 }
   0xf   : > { %s3797_s24 = scalar_select %p2358_p3, 1, 0 }
  0x10   : > { %p2364_p7 = por %p2358_p3, %p60_p2  ;;  %p2368_p8 = por %p128_p4, %p54_p0 }
  0x11   : > { %p2372_p9 = por %p134_p6, %p60_p2  ;;  %p1934_p10 = scmp.ge.s32.totalorder %s2275_s20, 1 }
  0x12   : > { %s3798_s25 = scalar_select %p2364_p7, 1, 0 }
  0x13   : > { %s3799_s26 = scalar_select %p2368_p8, 1, 0 }
  0x14   : > { %s3800_s27 = scalar_select %p2372_p9, 1, 0 }
  0x15   : > { %p169_p11 = scmp.lt.s32.totalorder %s2275_s20, 3  ;;  %p2018_p1 = scmp.lt.s32.totalorder %s2275_s20, 2 }
  0x16   : > { %s191_s5 = sshll.u32 %s3762_s2, 4  ;;  %s202_s8 = sand.u32 1, %s2263_s17   ;;  %s192_s5 = int_to_ptr.vmem [resolvable:$true] %s191_s5 }
  0x17   : > { %p2379_p13 = pnand %p1934_p10, %p169_p11  ;;  %p2389_p4 = pnand %p2018_p1, %p56_p5 }
  0x18   : > { %s38_s9 = sadd.s32 1, %s2271_s19  ;;  %s2095_s12 = scalar_lea.hbm %s3761_s1, 64 }
  0x19   : > { %p1998_p0 = pneg %p2379_p13  ;;  %p2096_p5 = scmp.ne.s32.totalorder %s3761_s1, %s2095_s12 }
  0x1a   : > { %p2102_p1 = scmp.lt.u32.totalorder %s2095_s12, %s3761_s1 }
  0x1b   : > { %p2395_p2 = pnand %p1998_p0, %p2358_p3 }
  0x1d   : > { %p2097_p6 = pneg %p2395_p2 }
  0x1f   : > { %p2098_p10 = pnand %p2097_p6, %p2096_p5 }
  0x21   : > { %p2099_p11 = pneg %p2098_p10 }
  0x23   : > { %p2104_p0 = pnand %p2102_p1, %p2099_p11 }
  0x25   : > { %2107 = shalt.err (!%p2104_p0)
}
  0x26   : > { %s2277_s29 = smov [#allocation7]   ;;  %s2108_s11 = scalar_lea.vmem %s192_s5, 32 }
  0x27   : > { %2001 = dma.hbm_to_smem (!%p2395_p2), %s3761_s1, 64, %s2277_s29, [#allocation5]  }
  0x28   : > { %p2109_p12 = scmp.ne.s32.totalorder %s192_s5, %s2108_s11  ;;  %p2116_p3 = scmp.lt.s32.totalorder %s192_s5, %s192_s5 }
  0x29   : > { %p2117_p5 = scmp.lt.s32.totalorder %s2108_s11, %s2108_s11 }
  0x2a   : > { %p2111_p9 = pnand %p2109_p12, %p2097_p6 }
  0x2b   : > { %p2118_p10 = por %p2117_p5, %p2116_p3 }
  0x2c   : > { %p2112_p8 = pneg %p2111_p9 }
  0x2e   : > { %p2119_p7 = pnand %p2118_p10, %p2112_p8 }
  0x30   : > { %2122 = shalt.err (!%p2119_p7)
}
  0x31   : > { %s2278_s13 = smov [#allocation8]   ;;  %p40_p11 = scmp.ge.s32.totalorder %s38_s9, 2 }
  0x32   : > { %2004 = dma.vmem_to_smem (!%p2395_p2), %s192_s5, 32, %s2278_s13, [#allocation6]  }
  0x33   : > { %s1975_s12 = smul.u32 72, %s202_s8  ;;  %s3867_s9 = smov (%p40_p11, %s38_s9), 0 }
  0x34   : > { %s1976_s14 = smul.u32 1152, %s2271_s19  ;;  %s42_s21 = ssub.s32 %s2271_s19, %s3867_s9 }
  0x35   : > { %s206_s22 = scalar_lea.vmem [#allocation2], %s1975_s12  ;;  %p45_p3 = scmp.eq.s32.totalorder %s42_s21, 0 }
  0x36   : > { %s215_s29 = sshll.u32 %s206_s22, 4  ;;  %s2429_s10 = scalar_lea.hbm %s3760_s0, %s1976_s14  ;;  %s2431_s29 = int_to_ptr.vmem [resolvable:$true] %s215_s29 }
  0x37   : > { %s2436_s5 = scalar_select %p45_p3, %s2263_s17, %s47_s23  }
  0x38   : > { %s2440_s11 = scalar_lea.sflag [#allocation3], %s202_s8  ;;  %s2123_s13 = scalar_lea.hbm %s2429_s10, 1152 }
  0x39   : > { %p2124_p7 = scmp.ne.s32.totalorder %s2429_s10, %s2123_s13  ;;  %p2125_p8 = pneg %p2389_p4 }
  0x3a   : > { %s2128_s21 = scalar_lea.hbm %s3760_s0, 2304  ;;  %p2129_p2 = scmp.lt.u32.totalorder %s2429_s10, %s3760_s0 }
  0x3b   : > { %p2126_p9 = pnand %p2125_p8, %p2124_p7  ;;  %p2130_p6 = scmp.lt.u32.totalorder %s2128_s21, %s2123_s13 }
  0x3c   : > { %p2132_p0 = scmp.lt.u32.totalorder %s2123_s13, %s2429_s10 }
  0x3d   : > { %p2127_p12 = pneg %p2126_p9  ;;  %p2131_p1 = por %p2130_p6, %p2129_p2 }
  0x3f   : > { %p2133_p5 = por %p2132_p0, %p2131_p1 }
  0x41   : > { %p2134_p10 = pnand %p2133_p5, %p2127_p12 }
  0x43   : > { %2137 = shalt.err (!%p2134_p10)
}
  0x44   : > { %s2138_s23 = scalar_lea.vmem %s2431_s29, 1152  ;;  %s2279_s8 = smov [#allocation2]  }
  0x45   : > { %p2139_p11 = scmp.ne.s32.totalorder %s2431_s29, %s2138_s23  ;;  %s2143_s30 = sshll.u32 %s2279_s8, 4  ;;  %s2144_s30 = int_to_ptr.vmem [resolvable:$false] %s2143_s30 }
  0x46   : > { %s2145_s12 = scalar_lea.vmem %s2144_s30, 2304  ;;  %p2146_p9 = scmp.lt.s32.totalorder %s2431_s29, %s2144_s30 }
  0x47   : > { %p2141_p3 = pnand %p2139_p11, %p2125_p8  ;;  %p2147_p2 = scmp.lt.s32.totalorder %s2145_s12, %s2138_s23 }
  0x49   : > { %p2142_p7 = pneg %p2141_p3  ;;  %p2148_p6 = por %p2147_p2, %p2146_p9 }
  0x4b   : > { %p2149_p1 = pnand %p2148_p6, %p2142_p7 }
  0x4d   : > { %2152 = shalt.err (!%p2149_p1)
}
  0x4e   : > { %s2280_s13 = smov 128   ;;  %s2281_s14 = smov 8  }
  0x4f   : > { %2008 = dma.hbm_to_vmem [thread:$0]  (!%p2389_p4), %s2429_s10, 1152, %s2431_s29, %s2440_s11, %s2280_s13, %s2280_s13, %s2281_s14  }
  0x50   : > { %227 = sbr.rel (%p2379_p13) target bundleno = 801 (0x321), region = 32 }
  0x57   : > { %s2471_s21 = sand.u32 1, %s2259_s16   ;;  %p3804_p8 = scmp.ne.s32.totalorder %s3798_s25, 0 }
  0x58   : > { %s1977_s22 = smul.u32 72, %s2471_s21  ;;  %s230_s7 = scalar_lea.sflag [#allocation3], %s2471_s21 }
  0x5a   : > { %s233_s23 = scalar_lea.vmem [#allocation2], %s1977_s22 }
  0x5b   : > { %2234 = dma.done.wait (%p3804_p8), %s230_s7, 1152  }
  0x5c   : > { %2236 = vsyncadd (%p3804_p8), %s230_s7, 4294966144  ;;  %p3805_p12 = scmp.ne.s32.totalorder %s3797_s24, 0 }
  0x5e   : > { %2238 = dma.done.wait (%p3805_p12), [#allocation5], 64  }
  0x5f   : > { %2240 = vsyncadd (%p3805_p12), [#allocation5], 4294967232 }
  0x60   : > { %2242 = dma.done.wait (%p3805_p12), [#allocation6], 32  }
  0x61   : > { %2244 = vsyncadd (%p3805_p12), [#allocation6], 4294967264 }
  0x62   : > { %246 = sfence }
  0x63   : > { %s281_s28 = sld [smem:[#allocation7]]  ;;  %s1943_s6 = sld [smem:[#allocation7 + $0x1]]  ;;  %v2487_v0 = vld [vmem:[%s233_s23 + $0x10] sm:$0xff]  ;;  %v2489_v1 = vld [vmem:[%s233_s23 + $0x28] sm:$0xff]  ;;  %v2491_v2 = vld [vmem:[%s233_s23] sm:$0xff]  ;;  %vm512_vm0 = vcmask 1046528  }
  0x64   : > { %s1944_s29 = sld [smem:[#allocation7 + $0x2]]  ;;  %v2493_v3 = vld [vmem:[%s233_s23 + $0x40] sm:$0xff]  ;;  %v2495_v4 = vld [vmem:[%s233_s23 + $0x18] sm:$0xff]  ;;  %v2497_v5 = vld [vmem:[%s233_s23 + $0x30] sm:$0xff]  ;;  %s1965_s24 = sld [smem:[#allocation7 + $0x100]]  ;;  %vm558_vm1 = vcmask 1045504  }
  0x65   : > { %v2499_v7 = vld [vmem:[%s233_s23 + $0x8] sm:$0xff]  ;;  %v2501_v8 = vld [vmem:[%s233_s23 + $0x20] sm:$0xff]  ;;  %v2505_v13 = vld [vmem:[%s233_s23 + $0x38] sm:$0xff]  ;;  %s1966_s25 = sld [smem:[#allocation7 + $0x101]]  ;;  %s1967_s10 = sld [smem:[#allocation7 + $0x102]]  ;;  %vm604_vm2 = vcmask 1044480  }
  0x66   : > { %s2282_s11 = smov 4   ;;  %s2283_s8 = smov 3   ;;  %vm650_vm3 = vcmask 1043456   ;;  %vm696_vm4 = vcmask 1042432   ;;  %vm742_vm5 = vcmask 1041408   ;;  %vm788_vm6 = vcmask 1040384  }
  0x67   : > { %s2284_s30 = smov 2   ;;  %s2285_s12 = smov 1  }
  0x68   : > { %s2286_s13 = smov 127   ;;  %s1962_s14 = sld [smem:[#allocation7 + $0x80]] }
  0x69   : > { %v282_v6 = vstv %s281_s28  ;;  %v287_v10 = vstv %s1943_s6  ;;  %s1963_s22 = sld [smem:[#allocation7 + $0x81]]  ;;  %s2287_s7 = smov 126  }
  0x6a   : > { %v285_v9 = vmul.f32 %v282_v6, %v2487_v0  ;;  %v295_v11 = vstv %s1944_s29  ;;  %v283_v12 = vmul.f32 %v282_v6, %v2491_v2  ;;  %v290_v14 = vmul.f32 %v287_v10, %v2489_v1  ;;  %s1964_s23 = sld [smem:[#allocation7 + $0x82]]  ;;  %s2288_s28 = smov 125  }
  0x6b   : > { %v298_v15 = vmul.f32 %v295_v11, %v2493_v3  ;;  %v288_v16 = vmul.f32 %v287_v10, %v2495_v4  ;;  %v296_v17 = vmul.f32 %v295_v11, %v2497_v5  ;;  %v284_v18 = vmul.f32 %v282_v6, %v2499_v7  ;;  %s2289_s6 = smov 124   ;;  %s308_s29 = sld [smem:[#allocation8]] }
  0x6c   : > { %v289_v19 = vmul.f32 %v287_v10, %v2501_v8  ;;  %v293_v20 = vadd.f32 %v290_v14, %v285_v9  ;;  %v297_v22 = vmul.f32 %v295_v11, %v2505_v13  ;;  %v1244_v27 = vstv %s1965_s24  ;;  %s1945_s24 = sld [smem:[#allocation8 + $0x80]]  ;;  %p3858_p4 = scmp.ne.s32.totalorder %s3799_s26, 0 }
  0x6d   : > { %v291_v21 = vadd.f32 %v288_v16, %v283_v12  ;;  %v1246_v28 = vmul.f32 %v1244_v27, %v2499_v7  ;;  %v1249_v29 = vstv %s1966_s25  ;;  %v1257_v30 = vstv %s1967_s10  ;;  %s1946_s25 = sld [smem:[#allocation8 + $0x1]] }
  0x6e   : > { %v292_v23 = vadd.f32 %v289_v19, %v284_v18  ;;  %v2514_v24 = vadd.f32 %v298_v15, %v293_v20  ;;  %v1251_v31 = vmul.f32 %v1249_v29, %v2501_v8  ;;  %v1259_v32 = vmul.f32 %v1257_v30, %v2505_v13  ;;  %s1947_s10 = sld [smem:[#allocation8 + $0x81]] }
  0x6f   : > { %v2516_v25 = vadd.f32 %v296_v17, %v291_v21  ;;  %v1245_v33 = vmul.f32 %v1244_v27, %v2491_v2  ;;  %v1250_v34 = vmul.f32 %v1249_v29, %v2495_v4  ;;  %v1258_v36 = vmul.f32 %v1257_v30, %v2497_v5 }
  0x70   : > { %306 = vrot.lane.b32.xlu1 %v2514_v24, %s2282_s11  ;;  %v2522_v26 = vadd.f32 %v297_v22, %v292_v23  ;;  %v1254_v35 = vadd.f32 %v1251_v31, %v1246_v28  ;;  %v1247_v37 = vmul.f32 %v1244_v27, %v2487_v0  ;;  %v1252_v39 = vmul.f32 %v1249_v29, %v2489_v1 }
  0x71   : > { %302 = vrot.lane.b32.xlu0 %v2516_v25, %s2282_s11  ;;  %v1253_v38 = vadd.f32 %v1250_v34, %v1245_v33  ;;  %v1260_v40 = vmul.f32 %v1257_v30, %v2493_v3  ;;  %v841_v45 = vstv %s1962_s14  ;;  %v846_v46 = vstv %s1963_s22  ;;  %s2692_s14 = sld [smem:[#allocation8 + $0x84]]  ;;  %s2716_s22 = sld [smem:[#allocation8 + $0x5]] }
  0x72   : > { %v2537_v41 = vadd.f32 %v1259_v32, %v1254_v35  ;;  %v1255_v43 = vadd.f32 %v1252_v39, %v1247_v37  ;;  %v843_v47 = vmul.f32 %v841_v45, %v2499_v7  ;;  %v848_v48 = vmul.f32 %v846_v46, %v2501_v8 }
  0x73   : > { %v2543_v42 = vadd.f32 %v1258_v36, %v1253_v38  ;;  %v854_v49 = vstv %s1964_s23  ;;  %v842_v50 = vmul.f32 %v841_v45, %v2491_v2  ;;  %v847_v51 = vmul.f32 %v846_v46, %v2495_v4  ;;  %s2732_s23 = sld [smem:[#allocation8 + $0x85]] }
  0x74   : > { %324 = vrot.lane.b32.xlu1 %v2516_v25, %s2283_s8  ;;  %v2545_v44 = vadd.f32 %v1260_v40, %v1255_v43  ;;  %v851_v52 = vadd.f32 %v848_v48, %v843_v47  ;;  %v856_v53 = vmul.f32 %v854_v49, %v2505_v13  ;;  %v855_v54 = vmul.f32 %v854_v49, %v2497_v5 }
  0x75   : > { %304 = vrot.lane.b32.xlu0 %v2522_v26, %s2282_s11  ;;  %v850_v55 = vadd.f32 %v847_v51, %v842_v50  ;;  %v844_v56 = vmul.f32 %v841_v45, %v2487_v0  ;;  %v849_v57 = vmul.f32 %v846_v46, %v2489_v1  ;;  %v857_v58 = vmul.f32 %v854_v49, %v2493_v3 }
  0x76   : > { %v2592_v59 = vadd.f32 %v856_v53, %v851_v52  ;;  %v2666_v1 = vstv %s308_s29  ;;  %v2668_v2 = vstv %s1945_s24  ;;  %v2674_v3 = vstv %s1946_s25  ;;  %s2734_s29 = sld [smem:[#allocation8 + $0x6]]  ;;  %s1959_s24 = sld [smem:[#allocation8 + $0x87]] }
  0x77   : > { %v2594_v60 = vadd.f32 %v855_v54, %v850_v55  ;;  %v852_v61 = vadd.f32 %v849_v57, %v844_v56  ;;  %v2676_v4 = vstv %s1947_s10  ;;  %v2730_v43 = vstv %s2692_s14  ;;  %s1961_s25 = sld [smem:[#allocation8 + $0x88]] }
  0x78   : > { %328 = vrot.lane.b32.xlu1 %v2514_v24, %s2283_s8  ;;  %3809 = vst [vmem:[#allocation20_spill] sm:$0xff] %v2730_v43  ;;  %v400_v56 = vmul.f32 %v2730_v43, %v2516_v25 }
  0x79   : > { %326 = vrot.lane.b32.xlu0 %v2522_v26, %s2283_s8  ;;  %v2600_v62 = vadd.f32 %v857_v58, %v852_v61 }
  0x7c   : > { %348 = vrot.lane.b32.xlu1 %v2522_v26, %s2284_s30 }
  0x7d   : > { %346 = vrot.lane.b32.xlu0 %v2516_v25, %s2284_s30 }
  0x80   : > { %368 = vrot.lane.b32.xlu1 %v2516_v25, %s2285_s12 }
  0x81   : > { %350 = vrot.lane.b32.xlu0 %v2514_v24, %s2284_s30 }
  0x84   : > { %372 = vrot.lane.b32.xlu1 %v2514_v24, %s2285_s12 }
  0x85   : > { %370 = vrot.lane.b32.xlu0 %v2522_v26, %s2285_s12 }
  0x88   : > { %408 = vrot.lane.b32.xlu1 %v2522_v26, %s2286_s13 }
  0x89   : > { %406 = vrot.lane.b32.xlu0 %v2516_v25, %s2286_s13 }
  0x8c   : > { %428 = vrot.lane.b32.xlu1 %v2516_v25, %s2287_s7 }
  0x8d   : > { %410 = vrot.lane.b32.xlu0 %v2514_v24, %s2286_s13 }
  0x90   : > { %432 = vrot.lane.b32.xlu1 %v2514_v24, %s2287_s7 }
  0x91   : > { %430 = vrot.lane.b32.xlu0 %v2522_v26, %s2287_s7 }
  0x94   : > { %452 = vrot.lane.b32.xlu1 %v2522_v26, %s2288_s28 }
  0x95   : > { %450 = vrot.lane.b32.xlu0 %v2516_v25, %s2288_s28 }
  0x98   : > { %472 = vrot.lane.b32.xlu1 %v2516_v25, %s2289_s6 }
  0x99   : > { %454 = vrot.lane.b32.xlu0 %v2514_v24, %s2288_s28 }
  0x9c   : > { %476 = vrot.lane.b32.xlu1 %v2514_v24, %s2289_s6 }
  0x9d   : > { %474 = vrot.lane.b32.xlu0 %v2522_v26, %s2289_s6 }
  0xa0   : > { %863 = vrot.lane.b32.xlu1 %v2592_v59, %s2282_s11 }
  0xa1   : > { %861 = vrot.lane.b32.xlu0 %v2594_v60, %s2282_s11 }
  0xa4   : > { %879 = vrot.lane.b32.xlu1 %v2594_v60, %s2283_s8 }
  0xa5   : > { %865 = vrot.lane.b32.xlu0 %v2600_v62, %s2282_s11 }
  0xa8   : > { %883 = vrot.lane.b32.xlu1 %v2600_v62, %s2283_s8 }
  0xa9   : > { %881 = vrot.lane.b32.xlu0 %v2592_v59, %s2283_s8 }
  0xac   : > { %899 = vrot.lane.b32.xlu1 %v2592_v59, %s2284_s30 }
  0xad   : > { %897 = vrot.lane.b32.xlu0 %v2594_v60, %s2284_s30 }
  0xb0   : > { %915 = vrot.lane.b32.xlu1 %v2594_v60, %s2285_s12 }
  0xb1   : > { %901 = vrot.lane.b32.xlu0 %v2600_v62, %s2284_s30 }
  0xb4   : > { %919 = vrot.lane.b32.xlu1 %v2600_v62, %s2285_s12 }
  0xb5   : > { %917 = vrot.lane.b32.xlu0 %v2592_v59, %s2285_s12 }
  0xb8   : > { %1266 = vrot.lane.b32.xlu1 %v2537_v41, %s2282_s11 }
  0xb9   : > { %1264 = vrot.lane.b32.xlu0 %v2543_v42, %s2282_s11 }
  0xbc   : > { %1282 = vrot.lane.b32.xlu1 %v2543_v42, %s2283_s8 }
  0xbd   : > { %1268 = vrot.lane.b32.xlu0 %v2545_v44, %s2282_s11  ;;  %s1948_s11 = sld [smem:[#allocation8 + $0x2]] }
  0xc0   : > { %1286 = vrot.lane.b32.xlu1 %v2545_v44, %s2283_s8 }
  0xc1   : > { %1284 = vrot.lane.b32.xlu0 %v2537_v41, %s2283_s8  ;;  %s1949_s8 = sld [smem:[#allocation8 + $0x82]] }
  0xc3   : > { %v2706_v23 = vstv %s1948_s11  ;;  %s1971_s11 = sshll.u32 %s2267_s18, 4 }
  0xc4   : > { %1302 = vrot.lane.b32.xlu1 %v2537_v41, %s2284_s30 }
  0xc5   : > { %1300 = vrot.lane.b32.xlu0 %v2543_v42, %s2284_s30 }
  0xc7   : > { %v2708_v27 = vstv %s1949_s8 }
  0xc8   : > { %945 = vrot.lane.b32.xlu1 %v2594_v60, %s2286_s13 }
  0xc9   : > { %1304 = vrot.lane.b32.xlu0 %v2545_v44, %s2284_s30  ;;  %s2678_s30 = sld [smem:[#allocation8 + $0x3]] }
  0xcc   : > { %949 = vrot.lane.b32.xlu1 %v2600_v62, %s2286_s13 }
  0xcd   : > { %947 = vrot.lane.b32.xlu0 %v2592_v59, %s2286_s13 }
  0xcf   : > { %v2711_v34 = vstv %s2678_s30  ;;  %s270_s30 = scalar_lea.vmem [#allocation10], %s2471_s21 }
  0xd0   : > { %1320 = vrot.lane.b32.xlu1 %v2537_v41, %s2285_s12  ;;  %3806 = vst [vmem:[#allocation17_spill] sm:$0xff] %v2711_v34 }
  0xd1   : > { %1318 = vrot.lane.b32.xlu0 %v2543_v42, %s2285_s12 }
  0xd4   : > { %963 = vrot.lane.b32.xlu1 %v2594_v60, %s2287_s7 }
  0xd5   : > { %1322 = vrot.lane.b32.xlu0 %v2545_v44, %s2285_s12  ;;  %s2680_s12 = sld [smem:[#allocation8 + $0x83]] }
  0xd8   : > { %967 = vrot.lane.b32.xlu1 %v2600_v62, %s2287_s7 }
  0xd9   : > { %965 = vrot.lane.b32.xlu0 %v2592_v59, %s2287_s7 }
  0xdb   : > { %v2714_v35 = vstv %s2680_s12  ;;  %s1795_s12 = sshll.u32 %s270_s30, 4  ;;  %s3674_s12 = int_to_ptr.vmem [resolvable:$true] %s1795_s12 }
  0xdc   : > { %983 = vrot.lane.b32.xlu1 %v2592_v59, %s2288_s28  ;;  %3807 = vst [vmem:[#allocation18_spill] sm:$0xff] %v2714_v35 }
  0xdd   : > { %981 = vrot.lane.b32.xlu0 %v2594_v60, %s2288_s28 }
  0xe0   : > { %1348 = vrot.lane.b32.xlu1 %v2543_v42, %s2286_s13 }
  0xe1   : > { %985 = vrot.lane.b32.xlu0 %v2600_v62, %s2288_s28 }
  0xe2   : > { %v307_v63 = vpop.permute.xlu1 %306 }
  0xe3   : > { %v303_v0 = vpop.permute.xlu0 %302  ;;  %v312_v13 = vmul.f32 %v2666_v1, %v307_v63  ;;  %v320_v14 = vmul.f32 %v2668_v2, %v307_v63 }
  0xe4   : > { %1352 = vrot.lane.b32.xlu1 %v2545_v44, %s2286_s13  ;;  %v310_v7 = vmul.f32 %v2666_v1, %v303_v0  ;;  %v318_v8 = vmul.f32 %v2668_v2, %v303_v0 }
  0xe5   : > { %1350 = vrot.lane.b32.xlu0 %v2537_v41, %s2286_s13  ;;  %s2690_s13 = sld [smem:[#allocation8 + $0x4]] }
  0xe6   : > { %v325_v5 = vpop.permute.xlu1 %324 }
  0xe7   : > { %v305_v6 = vpop.permute.xlu0 %304  ;;  %v332_v9 = vmul.f32 %v2674_v3, %v325_v5  ;;  %v340_v10 = vmul.f32 %v2676_v4, %v325_v5 }
  0xe8   : > { %1001 = vrot.lane.b32.xlu1 %v2592_v59, %s2289_s6  ;;  %v311_v15 = vmul.f32 %v2666_v1, %v305_v6  ;;  %v319_v16 = vmul.f32 %v2668_v2, %v305_v6 }
  0xe9   : > { %999 = vrot.lane.b32.xlu0 %v2594_v60, %s2289_s6  ;;  %v335_v11 = vadd.f32 %v332_v9, %v310_v7  ;;  %v343_v12 = vadd.f32 %v340_v10, %v318_v8  ;;  %v401_v7 = vmul.f32 %v2730_v43, %v2522_v26  ;;  %v2755_v8 = vstv %s2716_s22 }
  0xea   : > { %v329_v17 = vpop.permute.xlu1 %328  ;;  %3810 = vst [vmem:[#allocation21_spill] sm:$0xff] %v2755_v8 }
  0xeb   : > { %v327_v18 = vpop.permute.xlu0 %326  ;;  %v334_v19 = vmul.f32 %v2674_v3, %v329_v17  ;;  %v342_v20 = vmul.f32 %v2676_v4, %v329_v17  ;;  %v2727_v40 = vstv %s2690_s13 }
  0xec   : > { %v333_v21 = vmul.f32 %v2674_v3, %v327_v18  ;;  %v341_v22 = vmul.f32 %v2676_v4, %v327_v18  ;;  %1366 = vrot.lane.b32.xlu1 %v2543_v42, %s2287_s7  ;;  %3808 = vst [vmem:[#allocation19_spill] sm:$0xff] %v2727_v40  ;;  %v392_v55 = vmul.f32 %v2727_v40, %v2516_v25 }
  0xed   : > { %1003 = vrot.lane.b32.xlu0 %v2600_v62, %s2289_s6  ;;  %v337_v28 = vadd.f32 %v334_v19, %v312_v13  ;;  %v345_v29 = vadd.f32 %v342_v20, %v320_v14  ;;  %v393_v6 = vmul.f32 %v2727_v40, %v2522_v26  ;;  %v394_v25 = vmul.f32 %v2727_v40, %v2514_v24 }
  0xee   : > { %v336_v30 = vadd.f32 %v333_v21, %v311_v15  ;;  %v344_v31 = vadd.f32 %v341_v22, %v319_v16  ;;  %v349_v32 = vpop.permute.xlu1 %348  ;;  %v2768_v26 = vstv %s2732_s23  ;;  %v402_v15 = vmul.f32 %v2730_v43, %v2514_v24 }
  0xef   : > { %v347_v33 = vpop.permute.xlu0 %346  ;;  %v355_v36 = vmul.f32 %v2706_v23, %v349_v32  ;;  %v363_v37 = vmul.f32 %v2708_v27, %v349_v32  ;;  %3811 = vst [vmem:[#allocation22_spill] sm:$0xff] %v2768_v26  ;;  %v2773_v22 = vstv %s2734_s29  ;;  %s3672_s29 = scalar_lea.hbm %s3764_s4, %s1971_s11 }
  0xf0   : > { %v354_v38 = vmul.f32 %v2706_v23, %v347_v33  ;;  %v362_v39 = vmul.f32 %v2708_v27, %v347_v33  ;;  %1370 = vrot.lane.b32.xlu1 %v2545_v44, %s2287_s7  ;;  %3812 = vst [vmem:[#allocation23_spill] sm:$0xff] %v2773_v22 }
  0xf1   : > { %1368 = vrot.lane.b32.xlu0 %v2537_v41, %s2287_s7  ;;  %v358_v45 = vadd.f32 %v355_v36, %v336_v30  ;;  %v366_v46 = vadd.f32 %v363_v37, %v344_v31  ;;  %s2748_s7 = sld [smem:[#allocation8 + $0x86]] }
  0xf2   : > { %v357_v47 = vadd.f32 %v354_v38, %v335_v11  ;;  %v365_v48 = vadd.f32 %v362_v39, %v343_v12  ;;  %v369_v49 = vpop.permute.xlu1 %368 }
  0xf3   : > { %v351_v50 = vpop.permute.xlu0 %350  ;;  %v376_v51 = vmul.f32 %v2711_v34, %v369_v49  ;;  %v384_v52 = vmul.f32 %v2714_v35, %v369_v49 }
  0xf4   : > { %v356_v53 = vmul.f32 %v2706_v23, %v351_v50  ;;  %v364_v54 = vmul.f32 %v2708_v27, %v351_v50  ;;  %1386 = vrot.lane.b32.xlu1 %v2537_v41, %s2288_s28 }
  0xf5   : > { %1384 = vrot.lane.b32.xlu0 %v2543_v42, %s2288_s28  ;;  %v379_v57 = vadd.f32 %v376_v51, %v357_v47  ;;  %v387_v58 = vadd.f32 %v384_v52, %v365_v48 }
  0xf6   : > { %v359_v61 = vadd.f32 %v356_v53, %v337_v28  ;;  %v367_v63 = vadd.f32 %v364_v54, %v345_v29  ;;  %v373_v0 = vpop.permute.xlu1 %372 }
  0xf7   : > { %v371_v5 = vpop.permute.xlu0 %370  ;;  %v378_v9 = vmul.f32 %v2711_v34, %v373_v0  ;;  %v386_v10 = vmul.f32 %v2714_v35, %v373_v0  ;;  %v395_v13 = vadd.f32 %v392_v55, %v379_v57  ;;  %v403_v14 = vadd.f32 %v400_v56, %v387_v58 }
  0xf8   : > { %v377_v11 = vmul.f32 %v2711_v34, %v371_v5  ;;  %v385_v12 = vmul.f32 %v2714_v35, %v371_v5  ;;  %1402 = vrot.lane.b32.xlu1 %v2543_v42, %s2289_s6  ;;  %v2784_v24 = vstv %s2748_s7 }
  0xf9   : > { %1388 = vrot.lane.b32.xlu0 %v2545_v44, %s2288_s28  ;;  %v381_v16 = vadd.f32 %v378_v9, %v359_v61  ;;  %v389_v17 = vadd.f32 %v386_v10, %v367_v63  ;;  %3813 = vst [vmem:[#allocation24_spill] sm:$0xff] %v2784_v24  ;;  %s1958_s28 = sld [smem:[#allocation8 + $0x7]] }
  0xfa   : > { %v380_v18 = vadd.f32 %v377_v11, %v358_v45  ;;  %v388_v19 = vadd.f32 %v385_v12, %v366_v46  ;;  %v409_v20 = vpop.permute.xlu1 %408 }
  0xfb   : > { %v407_v21 = vpop.permute.xlu0 %406  ;;  %v415_v30 = vmul.f32 %v2755_v8, %v409_v20  ;;  %v423_v31 = vmul.f32 %v2768_v26, %v409_v20  ;;  %v397_v36 = vadd.f32 %v394_v25, %v381_v16  ;;  %v405_v39 = vadd.f32 %v402_v15, %v389_v17 }
  0xfc   : > { %v396_v28 = vadd.f32 %v393_v6, %v380_v18  ;;  %v404_v29 = vadd.f32 %v401_v7, %v388_v19  ;;  %v414_v32 = vmul.f32 %v2755_v8, %v407_v21  ;;  %v422_v33 = vmul.f32 %v2768_v26, %v407_v21  ;;  %1406 = vrot.lane.b32.xlu1 %v2545_v44, %s2289_s6 }
  0xfd   : > { %1404 = vrot.lane.b32.xlu0 %v2537_v41, %s2289_s6  ;;  %s1960_s6 = sld [smem:[#allocation8 + $0x8]]  ;;  %v2796_v7 = vstv %s1959_s24  ;;  %v2804_v19 = vstv %s1961_s25  ;;  %s1764_s24 = scalar_lea.sflag [#allocation11], %s2471_s21 }
  0xfe   : > { %v418_v37 = vadd.f32 %v415_v30, %v396_v28  ;;  %v426_v38 = vadd.f32 %v423_v31, %v404_v29  ;;  %v417_v45 = vadd.f32 %v414_v32, %v395_v13  ;;  %v425_v46 = vadd.f32 %v422_v33, %v403_v14  ;;  %v429_v47 = vpop.permute.xlu1 %428  ;;  %3815 = vst [vmem:[#allocation26_spill] sm:$0xff] %v2796_v7  ;;  %s2290_s25 = smov [#allocation10]  }
  0xff   : > { %v411_v48 = vpop.permute.xlu0 %410  ;;  %v436_v49 = vmul.f32 %v2773_v22, %v429_v47  ;;  %v444_v50 = vmul.f32 %v2784_v24, %v429_v47  ;;  %v2794_v6 = vstv %s1958_s28  ;;  %3817 = vst [vmem:[#allocation28_spill] sm:$0xff] %v2804_v19  ;;  %s2157_s11 = sshll.u32 %s2290_s25, 4  ;;  %s2158_s11 = int_to_ptr.vmem [resolvable:$false] %s2157_s11 }
 0x100   : > { %v416_v51 = vmul.f32 %v2755_v8, %v411_v48  ;;  %v424_v52 = vmul.f32 %v2768_v26, %v411_v48  ;;  %3814 = vst [vmem:[#allocation25_spill] sm:$0xff] %v2794_v6  ;;  %p2160_p10 = scmp.lt.s32.totalorder %s3674_s12, %s2158_s11 }
 0x101   : > { %v439_v53 = vadd.f32 %v436_v49, %v417_v45  ;;  %v447_v54 = vadd.f32 %v444_v50, %v425_v46  ;;  %v2820_v50 = vmul.f32 %v2594_v60, %v2730_v43 }
 0x102   : > { %v419_v55 = vadd.f32 %v416_v51, %v397_v36  ;;  %v427_v56 = vadd.f32 %v424_v52, %v405_v39  ;;  %v433_v57 = vpop.permute.xlu1 %432  ;;  %v2824_v51 = vmul.f32 %v2600_v62, %v2727_v40  ;;  %v2828_v52 = vmul.f32 %v2600_v62, %v2730_v43 }
 0x103   : > { %v431_v58 = vpop.permute.xlu0 %430  ;;  %v438_v61 = vmul.f32 %v2773_v22, %v433_v57  ;;  %v446_v63 = vmul.f32 %v2784_v24, %v433_v57  ;;  %v2802_v18 = vstv %s1960_s6  ;;  %v2848_v62 = vmul.f32 %v2543_v42, %v2730_v43  ;;  %s2153_s6 = scalar_lea.vmem %s3674_s12, 16 }
 0x104   : > { %v437_v0 = vmul.f32 %v2773_v22, %v431_v58  ;;  %v445_v5 = vmul.f32 %v2784_v24, %v431_v58  ;;  %3816 = vst [vmem:[#allocation27_spill] sm:$0xff] %v2802_v18  ;;  %p2154_p13 = scmp.ne.s32.totalorder %s3674_s12, %s2153_s6 }
 0x105   : > { %v441_v25 = vadd.f32 %v438_v61, %v419_v55  ;;  %v449_v9 = vadd.f32 %v446_v63, %v427_v56  ;;  %v2844_v55 = vmul.f32 %v2543_v42, %v2727_v40  ;;  %3819 = vst [vmem:[#allocation30_spill] sm:$0xff] %v2848_v62  ;;  %v2860_v63 = vmul.f32 %v2545_v44, %v2727_v40 }
 0x106   : > { %v440_v10 = vadd.f32 %v437_v0, %v418_v37  ;;  %v448_v11 = vadd.f32 %v445_v5, %v426_v38  ;;  %v453_v12 = vpop.permute.xlu1 %452  ;;  %v2812_v38 = vmul.f32 %v2594_v60, %v2727_v40  ;;  %v2840_v60 = vmul.f32 %v2592_v59, %v2730_v43  ;;  %p2155_p0 = pnand %p2154_p13, %p3858_p4 }
 0x107   : > { %v451_v13 = vpop.permute.xlu0 %450  ;;  %v459_v14 = vmul.f32 %v2794_v6, %v453_v12  ;;  %v467_v15 = vmul.f32 %v2796_v7, %v453_v12  ;;  %3818 = vst [vmem:[#allocation29_spill] sm:$0xff] %v2844_v55  ;;  %3820 = vst [vmem:[#allocation31_spill] sm:$0xff] %v2860_v63  ;;  %v2864_v42 = vmul.f32 %v2537_v41, %v2727_v40 }
 0x108   : > { %v458_v16 = vmul.f32 %v2794_v6, %v451_v13  ;;  %v466_v17 = vmul.f32 %v2796_v7, %v451_v13  ;;  %v2868_v0 = vmul.f32 %v2537_v41, %v2730_v43  ;;  %p2156_p5 = pneg %p2155_p0 }
 0x109   : > { %v462_v20 = vadd.f32 %v459_v14, %v440_v10  ;;  %v470_v21 = vadd.f32 %v467_v15, %v448_v11  ;;  %3821 = vst [vmem:[#allocation32_spill] sm:$0xff] %v2864_v42 }
 0x10a   : > { %v461_v28 = vadd.f32 %v458_v16, %v439_v53  ;;  %v469_v29 = vadd.f32 %v466_v17, %v447_v54  ;;  %v473_v30 = vpop.permute.xlu1 %472  ;;  %v2832_v53 = vmul.f32 %v2592_v59, %v2727_v40  ;;  %3822 = vst [vmem:[#allocation33_spill] sm:$0xff] %v2868_v0 }
 0x10b   : > { %v455_v31 = vpop.permute.xlu0 %454  ;;  %v480_v32 = vmul.f32 %v2802_v18, %v473_v30  ;;  %v488_v33 = vmul.f32 %v2804_v19, %v473_v30 }
 0x10c   : > { %v460_v36 = vmul.f32 %v2794_v6, %v455_v31  ;;  %v468_v37 = vmul.f32 %v2796_v7, %v455_v31 }
 0x10d   : > { %v2814_v39 = vadd.f32 %v480_v32, %v461_v28  ;;  %v2816_v45 = vadd.f32 %v488_v33, %v469_v29 }
 0x10e   : > { %v463_v46 = vadd.f32 %v460_v36, %v441_v25  ;;  %v471_v47 = vadd.f32 %v468_v37, %v449_v9  ;;  %v477_v48 = vpop.permute.xlu1 %476 }
 0x10f   : > { %v475_v49 = vpop.permute.xlu0 %474  ;;  %v2836_v54 = vmul.f32 %v2816_v45, %v2674_v3  ;;  %v482_v56 = vmul.f32 %v2802_v18, %v477_v48  ;;  %v490_v57 = vmul.f32 %v2804_v19, %v477_v48  ;;  %v2856_v59 = vmul.f32 %v2816_v45, %v2666_v1 }
 0x110   : > { %v481_v58 = vmul.f32 %v2802_v18, %v475_v49  ;;  %v489_v61 = vmul.f32 %v2804_v19, %v475_v49  ;;  %v494_v15 = vmul.f32 %v2814_v39, %v2666_v1  ;;  %v498_v41 = vmul.f32 %v2814_v39, %v2668_v2 }
 0x111   : > { %v2870_v5 = vadd.f32 %v482_v56, %v463_v46  ;;  %v2872_v25 = vadd.f32 %v490_v57, %v471_v47  ;;  %v543_v13 = vrot.slane %v2836_v54, 1  ;;  %v506_v30 = vmul.f32 %v2814_v39, %v2674_v3 }
 0x112   : > { %v2874_v9 = vadd.f32 %v481_v58, %v462_v20  ;;  %v2876_v10 = vadd.f32 %v489_v61, %v470_v21  ;;  %v864_v11 = vpop.permute.xlu1 %863  ;;  %v522_v47 = vmul.f32 %v2814_v39, %v2676_v4 }
 0x113   : > { %v862_v12 = vpop.permute.xlu0 %861  ;;  %v868_v14 = vmul.f32 %v864_v11, %v2666_v1  ;;  %v539_v16 = vmul.f32 %v2872_v25, %v2674_v3  ;;  %v874_v17 = vmul.f32 %v864_v11, %v2668_v2  ;;  %v508_v46 = vmul.f32 %v2870_v5, %v2674_v3 }
 0x114   : > { %v867_v20 = vmul.f32 %v862_v12, %v2666_v1  ;;  %v873_v21 = vmul.f32 %v862_v12, %v2668_v2  ;;  %v495_v28 = vmul.f32 %v2874_v9, %v2666_v1  ;;  %v499_v29 = vmul.f32 %v2874_v9, %v2668_v2 }
 0x115   : > { %v507_v31 = vmul.f32 %v2874_v9, %v2674_v3  ;;  %v546_v32 = vrot.slane %v539_v16, 1  ;;  %v503_v37 = vmul.f32 %v2876_v10, %v2666_v1  ;;  %v513_v57 = vrot.slane %v506_v30, 1 }
 0x116   : > { %v880_v33 = vpop.permute.xlu1 %879  ;;  %v516_v61 = vrot.slane %v508_v46, 1  ;;  %v523_v11 = vmul.f32 %v2874_v9, %v2676_v4  ;;  %v524_v19 = vmul.f32 %v2870_v5, %v2676_v4  ;;  %v528_v18 = vrot.slane %v522_v47, 1 }
 0x117   : > { %v866_v36 = vpop.permute.xlu0 %865  ;;  %v885_v48 = vmul.f32 %v880_v33, %v2674_v3  ;;  %v891_v49 = vmul.f32 %v880_v33, %v2676_v4  ;;  %v514_v58 = vrot.slane %v507_v31, 1  ;;  %v538_v30 = vmul.f32 %v2876_v10, %v2674_v3 }
 0x118   : > { %v869_v54 = vmul.f32 %v866_v36, %v2666_v1  ;;  %v875_v56 = vmul.f32 %v866_v36, %v2668_v2  ;;  %v529_v0 = vrot.slane %v523_v11, 1 }
 0x119   : > { %v888_v12 = vadd.f32 %v885_v48, %v867_v20  ;;  %v894_v16 = vadd.f32 %v891_v49, %v873_v21  ;;  %v515_v33 = vsel %vm512_vm0, %v513_v57, %v514_v58  ;;  %v517_v63 = vsel %vm512_vm0, %v514_v58, %v516_v61 }
 0x11a   : > { %v884_v7 = vpop.permute.xlu1 %883  ;;  %v520_v46 = vadd.f32 %v515_v33, %v494_v15  ;;  %v521_v47 = vadd.f32 %v517_v63, %v495_v28  ;;  %v530_v48 = vsel %vm512_vm0, %v528_v18, %v529_v0  ;;  %v531_v49 = vrot.slane %v524_v19, 1 }
 0x11b   : > { %v882_v6 = vpop.permute.xlu0 %881  ;;  %v887_v31 = vmul.f32 %v884_v7, %v2674_v3  ;;  %v893_v36 = vmul.f32 %v884_v7, %v2676_v4  ;;  %v2921_v24 = vadd.f32 %v530_v48, %v498_v41  ;;  %v544_v7 = vrot.slane %v538_v30, 1 }
 0x11c   : > { %v886_v20 = vmul.f32 %v882_v6, %v2674_v3  ;;  %v892_v21 = vmul.f32 %v882_v6, %v2676_v4  ;;  %v532_v55 = vsel %vm512_vm0, %v529_v0, %v531_v49  ;;  %v552_v6 = vmul.f32 %v2814_v39, %v2706_v23 }
 0x11d   : > { %v890_v57 = vadd.f32 %v887_v31, %v869_v54  ;;  %v896_v58 = vadd.f32 %v893_v36, %v875_v56  ;;  %v547_v0 = vsel %vm512_vm0, %v544_v7, %v546_v32  ;;  %v553_v41 = vmul.f32 %v2874_v9, %v2706_v23 }
 0x11e   : > { %v889_v61 = vadd.f32 %v886_v20, %v868_v14  ;;  %v895_v11 = vadd.f32 %v892_v21, %v874_v17  ;;  %v900_v42 = vpop.permute.xlu1 %899  ;;  %v2929_v14 = vadd.f32 %v532_v55, %v499_v29  ;;  %v545_v17 = vsel %vm512_vm0, %v543_v13, %v544_v7 }
 0x11f   : > { %v898_v62 = vpop.permute.xlu0 %897  ;;  %v904_v15 = vmul.f32 %v900_v42, %v2706_v23  ;;  %v910_v63 = vmul.f32 %v900_v42, %v2708_v27  ;;  %v2937_v42 = vmul.f32 %v2545_v44, %v2730_v43  ;;  %v2940_v55 = vadd.f32 %v545_v17, %v2856_v59 }
 0x120   : > { %v903_v18 = vmul.f32 %v898_v62, %v2706_v23  ;;  %v909_v19 = vmul.f32 %v898_v62, %v2708_v27  ;;  %v2942_v62 = vadd.f32 %v547_v0, %v503_v37  ;;  %v554_v13 = vmul.f32 %v2870_v5, %v2706_v23 }
 0x121   : > { %v907_v28 = vadd.f32 %v904_v15, %v889_v61  ;;  %v913_v54 = vadd.f32 %v910_v63, %v895_v11  ;;  %3823 = vst [vmem:[#allocation34_spill] sm:$0xff] %v2937_v42  ;;  %v583_v29 = vmul.f32 %v2816_v45, %v2706_v23  ;;  %v2950_v32 = vmul.f32 %v2816_v45, %v2711_v34 }
 0x122   : > { %v906_v56 = vadd.f32 %v903_v18, %v888_v12  ;;  %v912_v33 = vadd.f32 %v909_v19, %v894_v16  ;;  %v916_v30 = vpop.permute.xlu1 %915  ;;  %v585_v59 = vmul.f32 %v2872_v25, %v2706_v23  ;;  %v559_v16 = vrot.slane %v552_v6, 2 }
 0x123   : > { %v902_v31 = vpop.permute.xlu0 %901  ;;  %v921_v12 = vmul.f32 %v916_v30, %v2711_v34  ;;  %v927_v44 = vmul.f32 %v916_v30, %v2714_v35  ;;  %v560_v37 = vrot.slane %v553_v41, 2  ;;  %v562_v36 = vrot.slane %v554_v13, 2 }
 0x124   : > { %v905_v21 = vmul.f32 %v902_v31, %v2706_v23  ;;  %v911_v48 = vmul.f32 %v902_v31, %v2708_v27  ;;  %v568_v49 = vmul.f32 %v2814_v39, %v2708_v27  ;;  %v569_v63 = vmul.f32 %v2874_v9, %v2708_v27 }
 0x125   : > { %v930_v20 = vadd.f32 %v927_v44, %v912_v33  ;;  %v561_v7 = vsel %vm558_vm1, %v559_v16, %v560_v37  ;;  %v563_v15 = vsel %vm558_vm1, %v560_v37, %v562_v36  ;;  %v570_v6 = vmul.f32 %v2870_v5, %v2708_v27 }
 0x126   : > { %v920_v61 = vpop.permute.xlu1 %919  ;;  %v589_v18 = vrot.slane %v583_v29, 2  ;;  %v924_v19 = vadd.f32 %v921_v12, %v906_v56  ;;  %v566_v30 = vadd.f32 %v561_v7, %v520_v46  ;;  %v567_v31 = vadd.f32 %v563_v15, %v521_v47 }
 0x127   : > { %v918_v11 = vpop.permute.xlu0 %917  ;;  %v923_v17 = vmul.f32 %v920_v61, %v2711_v34  ;;  %v929_v0 = vmul.f32 %v920_v61, %v2714_v35  ;;  %v592_v13 = vrot.slane %v585_v59, 2  ;;  %v2972_v44 = vmul.f32 %v2872_v25, %v2711_v34 }
 0x128   : > { %v922_v41 = vmul.f32 %v918_v11, %v2711_v34  ;;  %v928_v33 = vmul.f32 %v918_v11, %v2714_v35  ;;  %v908_v16 = vadd.f32 %v905_v21, %v890_v57  ;;  %v914_v37 = vadd.f32 %v911_v48, %v896_v58 }
 0x129   : > { %v574_v12 = vrot.slane %v568_v49, 2  ;;  %v575_v36 = vrot.slane %v569_v63, 2  ;;  %v577_v42 = vrot.slane %v570_v6, 2  ;;  %v584_v61 = vmul.f32 %v2876_v10, %v2706_v23 }
 0x12a   : > { %v1267_v29 = vpop.permute.xlu1 %1266  ;;  %v926_v22 = vadd.f32 %v923_v17, %v908_v16  ;;  %v2977_v11 = vadd.f32 %v2812_v38, %v924_v19  ;;  %v2980_v46 = vadd.f32 %v2820_v50, %v930_v20  ;;  %v598_v47 = vmul.f32 %v2814_v39, %v2711_v34 }
 0x12b   : > { %v1265_v56 = vpop.permute.xlu0 %1264  ;;  %v932_v57 = vadd.f32 %v929_v0, %v914_v37  ;;  %v925_v58 = vadd.f32 %v922_v41, %v907_v28  ;;  %v931_v59 = vadd.f32 %v928_v33, %v913_v54  ;;  %v1271_v21 = vmul.f32 %v1267_v29, %v2666_v1 }
 0x12c   : > { %v576_v48 = vsel %vm558_vm1, %v574_v12, %v575_v36  ;;  %v578_v49 = vsel %vm558_vm1, %v575_v36, %v577_v42  ;;  %v590_v7 = vrot.slane %v584_v61, 2  ;;  %v599_v38 = vmul.f32 %v2874_v9, %v2711_v34 }
 0x12d   : > { %v1277_v15 = vmul.f32 %v1267_v29, %v2668_v2  ;;  %v581_v63 = vadd.f32 %v576_v48, %v2921_v24  ;;  %v582_v6 = vadd.f32 %v578_v49, %v2929_v14  ;;  %v600_v28 = vmul.f32 %v2870_v5, %v2711_v34 }
 0x12e   : > { %v1283_v50 = vpop.permute.xlu1 %1282  ;;  %v1270_v54 = vmul.f32 %v1265_v56, %v2666_v1  ;;  %v1276_v19 = vmul.f32 %v1265_v56, %v2668_v2  ;;  %v2997_v42 = vadd.f32 %v2824_v51, %v926_v22  ;;  %v605_v17 = vrot.slane %v598_v47, 3 }
 0x12f   : > { %v1269_v20 = vpop.permute.xlu0 %1268  ;;  %v591_v0 = vsel %vm558_vm1, %v589_v18, %v590_v7  ;;  %v593_v41 = vsel %vm558_vm1, %v590_v7, %v592_v13  ;;  %v606_v33 = vrot.slane %v599_v38, 3  ;;  %v608_v16 = vrot.slane %v600_v28, 3 }
 0x130   : > { %v1288_v24 = vmul.f32 %v1283_v50, %v2674_v3  ;;  %v3003_v14 = vadd.f32 %v2828_v52, %v932_v57  ;;  %v596_v37 = vadd.f32 %v591_v0, %v2940_v55  ;;  %v597_v29 = vadd.f32 %v593_v41, %v2942_v62 }
 0x131   : > { %v607_v22 = vsel %vm604_vm2, %v605_v17, %v606_v33  ;;  %v609_v51 = vsel %vm604_vm2, %v606_v33, %v608_v16  ;;  %v614_v18 = vmul.f32 %v2814_v39, %v2714_v35  ;;  %v615_v13 = vmul.f32 %v2874_v9, %v2714_v35 }
 0x132   : > { %v1287_v56 = vpop.permute.xlu1 %1286  ;;  %v1294_v36 = vmul.f32 %v1283_v50, %v2676_v4  ;;  %v3016_v55 = vadd.f32 %v2832_v53, %v925_v58  ;;  %v3019_v62 = vadd.f32 %v2840_v60, %v931_v59  ;;  %v1272_v61 = vmul.f32 %v1269_v20, %v2666_v1 }
 0x133   : > { %v1285_v12 = vpop.permute.xlu0 %1284  ;;  %v1290_v52 = vmul.f32 %v1287_v56, %v2674_v3  ;;  %v3022_v47 = vadd.f32 %v607_v22, %v566_v30  ;;  %v3024_v57 = vadd.f32 %v609_v51, %v567_v31  ;;  %v616_v48 = vmul.f32 %v2870_v5, %v2714_v35 }
 0x134   : > { %v1291_v49 = vadd.f32 %v1288_v24, %v1270_v54  ;;  %v1278_v7 = vmul.f32 %v1269_v20, %v2668_v2  ;;  %v1296_v38 = vmul.f32 %v1287_v56, %v2676_v4  ;;  %v1289_v53 = vmul.f32 %v1285_v12, %v2674_v3 }
 0x135   : > { %v620_v59 = vrot.slane %v614_v18, 3  ;;  %v621_v50 = vrot.slane %v615_v13, 3  ;;  %v623_v28 = vrot.slane %v616_v48, 3  ;;  %v630_v30 = vmul.f32 %v2876_v10, %v2711_v34 }
 0x136   : > { %v1303_v58 = vpop.permute.xlu1 %1302  ;;  %v1297_v31 = vadd.f32 %v1294_v36, %v1276_v19  ;;  %v1293_v17 = vadd.f32 %v1290_v52, %v1272_v61  ;;  %v1295_v0 = vmul.f32 %v1285_v12, %v2676_v4  ;;  %v635_v54 = vrot.slane %v2950_v32, 3 }
 0x137   : > { %v1301_v60 = vpop.permute.xlu0 %1300  ;;  %v622_v20 = vsel %vm604_vm2, %v620_v59, %v621_v50  ;;  %v624_v41 = vsel %vm604_vm2, %v621_v50, %v623_v28  ;;  %v636_v33 = vrot.slane %v630_v30, 3  ;;  %v638_v16 = vrot.slane %v2972_v44, 3 }
 0x138   : > { %v1299_v24 = vadd.f32 %v1296_v38, %v1278_v7  ;;  %v1292_v56 = vadd.f32 %v1289_v53, %v1271_v21  ;;  %v1307_v22 = vmul.f32 %v1303_v58, %v2706_v23  ;;  %v1313_v51 = vmul.f32 %v1303_v58, %v2708_v27 }
 0x139   : > { %v627_v13 = vadd.f32 %v622_v20, %v581_v63  ;;  %v3040_v36 = vadd.f32 %v624_v41, %v582_v6  ;;  %v637_v32 = vsel %vm604_vm2, %v635_v54, %v636_v33  ;;  %v639_v12 = vsel %vm604_vm2, %v636_v33, %v638_v16 }
 0x13a   : > { %v946_v18 = vpop.permute.xlu1 %945  ;;  %v1298_v52 = vadd.f32 %v1295_v0, %v1277_v15  ;;  %v1306_v61 = vmul.f32 %v1301_v60, %v2706_v23  ;;  %v1312_v44 = vmul.f32 %v1301_v60, %v2708_v27  ;;  %v3047_v48 = vadd.f32 %v637_v32, %v596_v37 }
 0x13b   : > { %v1305_v19 = vpop.permute.xlu0 %1304  ;;  %v951_v21 = vmul.f32 %v946_v18, %v2755_v8  ;;  %v3049_v7 = vadd.f32 %v639_v12, %v597_v29  ;;  %v644_v63 = vmul.f32 %v2814_v39, %v2727_v40  ;;  %v645_v6 = vmul.f32 %v2874_v9, %v2727_v40 }
 0x13c   : > { %v1310_v38 = vadd.f32 %v1307_v22, %v1292_v56  ;;  %v1316_v53 = vadd.f32 %v1313_v51, %v1298_v52  ;;  %v957_v15 = vmul.f32 %v946_v18, %v2768_v26  ;;  %v1308_v58 = vmul.f32 %v1305_v19, %v2706_v23 }
 0x13d   : > { %v646_v37 = vmul.f32 %v2870_v5, %v2727_v40  ;;  %v651_v50 = vrot.slane %v644_v63, 4  ;;  %v652_v29 = vrot.slane %v645_v6, 4  ;;  %v660_v28 = vmul.f32 %v2814_v39, %v2730_v43 }
 0x13e   : > { %v950_v59 = vpop.permute.xlu1 %949  ;;  %v1309_v30 = vadd.f32 %v1306_v61, %v1291_v49  ;;  %v1315_v0 = vadd.f32 %v1312_v44, %v1297_v31  ;;  %v954_v54 = vadd.f32 %v951_v21, %v2977_v11  ;;  %v1314_v20 = vmul.f32 %v1305_v19, %v2708_v27 }
 0x13f   : > { %v948_v60 = vpop.permute.xlu0 %947  ;;  %v653_v41 = vsel %vm650_vm3, %v651_v50, %v652_v29  ;;  %v654_v33 = vrot.slane %v646_v37, 4  ;;  %v661_v16 = vmul.f32 %v2874_v9, %v2730_v43  ;;  %v662_v56 = vmul.f32 %v2870_v5, %v2730_v43 }
 0x140   : > { %v3069_v22 = vadd.f32 %v957_v15, %v2980_v46  ;;  %v1311_v51 = vadd.f32 %v1308_v58, %v1293_v17  ;;  %v953_v49 = vmul.f32 %v950_v59, %v2755_v8  ;;  %v959_v31 = vmul.f32 %v950_v59, %v2768_v26 }
 0x141   : > { %v655_v19 = vsel %vm650_vm3, %v652_v29, %v654_v33  ;;  %v3075_v32 = vadd.f32 %v653_v41, %v3022_v47  ;;  %v666_v12 = vrot.slane %v660_v28, 4  ;;  %v667_v52 = vrot.slane %v661_v16, 4 }
 0x142   : > { %v1321_v11 = vpop.permute.xlu1 %1320  ;;  %v952_v61 = vmul.f32 %v948_v60, %v2755_v8  ;;  %v3083_v63 = vadd.f32 %v655_v19, %v3024_v57  ;;  %v669_v15 = vrot.slane %v662_v56, 4  ;;  %v1317_v47 = vadd.f32 %v1314_v20, %v1299_v24  ;;  %v3824_v19 = vld [vmem:[#allocation23_spill] sm:$0xff] }
 0x143   : > { %v1319_v18 = vpop.permute.xlu0 %1318  ;;  %v1325_v44 = vmul.f32 %v1321_v11, %v2711_v34  ;;  %v1331_v21 = vmul.f32 %v1321_v11, %v2714_v35  ;;  %v668_v6 = vsel %vm650_vm3, %v666_v12, %v667_v52  ;;  %v958_v58 = vmul.f32 %v948_v60, %v2768_v26 }
 0x144   : > { %v1324_v46 = vmul.f32 %v1319_v18, %v2711_v34  ;;  %v1330_v17 = vmul.f32 %v1319_v18, %v2714_v35  ;;  %v675_v37 = vmul.f32 %v2816_v45, %v2727_v40  ;;  %v670_v28 = vsel %vm650_vm3, %v667_v52, %v669_v15  ;;  %v3825_v52 = vld [vmem:[#allocation24_spill] sm:$0xff] }
 0x145   : > { %v3090_v41 = vadd.f32 %v668_v6, %v627_v13  ;;  %v676_v57 = vmul.f32 %v2876_v10, %v2727_v40  ;;  %v677_v33 = vmul.f32 %v2872_v25, %v2727_v40  ;;  %v956_v24 = vadd.f32 %v953_v49, %v2997_v42  ;;  %v3826_v6 = vld [vmem:[#allocation29_spill] sm:$0xff] }
 0x146   : > { %v1327_v59 = vadd.f32 %v1324_v46, %v1309_v30  ;;  %v964_v50 = vpop.permute.xlu1 %963  ;;  %v1333_v20 = vadd.f32 %v1330_v17, %v1315_v0  ;;  %v962_v16 = vadd.f32 %v959_v31, %v3003_v14  ;;  %v955_v56 = vadd.f32 %v952_v61, %v3016_v55 }
 0x147   : > { %v1323_v29 = vpop.permute.xlu0 %1322  ;;  %v1328_v13 = vadd.f32 %v1325_v44, %v1310_v38  ;;  %v1334_v11 = vadd.f32 %v1331_v21, %v1316_v53  ;;  %v961_v18 = vadd.f32 %v958_v58, %v3019_v62  ;;  %v969_v12 = vmul.f32 %v964_v50, %v3824_v19  ;;  %v3827_v62 = vld [vmem:[#allocation30_spill] sm:$0xff]  ;;  %v3828_v44 = vld [vmem:[#allocation32_spill] sm:$0xff]  ;;  %v3829_v58 = vld [vmem:[#allocation33_spill] sm:$0xff] }
 0x148   : > { %v1326_v60 = vmul.f32 %v1323_v29, %v2711_v34  ;;  %v1332_v30 = vmul.f32 %v1323_v29, %v2714_v35  ;;  %v975_v46 = vmul.f32 %v964_v50, %v3825_v52  ;;  %v3105_v42 = vadd.f32 %v3826_v6, %v1327_v59  ;;  %v3831_v6 = vld [vmem:[#allocation34_spill] sm:$0xff] }
 0x149   : > { %v3108_v17 = vadd.f32 %v670_v28, %v3040_v36  ;;  %v681_v15 = vrot.slane %v675_v37, 4  ;;  %v682_v14 = vrot.slane %v676_v57, 4  ;;  %v684_v31 = vrot.slane %v677_v33, 4 }
 0x14a   : > { %v968_v0 = vpop.permute.xlu1 %967  ;;  %v1329_v55 = vadd.f32 %v1326_v60, %v1311_v51  ;;  %v1335_v38 = vadd.f32 %v1332_v30, %v1317_v47  ;;  %v1345_v61 = vadd.f32 %v3827_v62, %v1333_v20  ;;  %v3113_v21 = vadd.f32 %v3828_v44, %v1328_v13  ;;  %v3832_v44 = vld [vmem:[#allocation25_spill] sm:$0xff] }
 0x14b   : > { %v966_v49 = vpop.permute.xlu0 %965  ;;  %v971_v53 = vmul.f32 %v968_v0, %v3824_v19  ;;  %v3116_v59 = vadd.f32 %v3829_v58, %v1334_v11  ;;  %v683_v50 = vsel %vm650_vm3, %v681_v15, %v682_v14  ;;  %v685_v36 = vsel %vm650_vm3, %v682_v14, %v684_v31  ;;  %v3830_v11 = vld [vmem:[#allocation31_spill] sm:$0xff] }
 0x14c   : > { %v972_v29 = vadd.f32 %v969_v12, %v954_v54  ;;  %v977_v37 = vmul.f32 %v968_v0, %v3825_v52  ;;  %v970_v51 = vmul.f32 %v966_v49, %v3824_v19  ;;  %v976_v47 = vmul.f32 %v966_v49, %v3825_v52 }
 0x14d   : > { %v3124_v33 = vadd.f32 %v683_v50, %v3047_v48  ;;  %v3127_v20 = vadd.f32 %v685_v36, %v3049_v7  ;;  %v690_v60 = vmul.f32 %v2814_v39, %v2755_v8  ;;  %v691_v54 = vmul.f32 %v2874_v9, %v2755_v8  ;;  %v3833_v50 = vld [vmem:[#allocation26_spill] sm:$0xff] }
 0x14e   : > { %v984_v28 = vpop.permute.xlu1 %983  ;;  %v978_v30 = vadd.f32 %v975_v46, %v3069_v22  ;;  %v974_v13 = vadd.f32 %v971_v53, %v956_v24  ;;  %v1341_v12 = vadd.f32 %v3830_v11, %v1329_v55  ;;  %v3136_v0 = vadd.f32 %v3831_v6, %v1335_v38 }
 0x14f   : > { %v982_v57 = vpop.permute.xlu0 %981  ;;  %v692_v48 = vmul.f32 %v2870_v5, %v2755_v8  ;;  %v697_v49 = vrot.slane %v690_v60, 5  ;;  %v698_v7 = vrot.slane %v691_v54, 5  ;;  %v706_v15 = vmul.f32 %v2814_v39, %v2768_v26 }
 0x150   : > { %v980_v14 = vadd.f32 %v977_v37, %v962_v16  ;;  %v973_v31 = vadd.f32 %v970_v51, %v955_v56  ;;  %v979_v62 = vadd.f32 %v976_v47, %v961_v18  ;;  %v988_v58 = vmul.f32 %v984_v28, %v3832_v44 }
 0x151   : > { %v699_v46 = vsel %vm696_vm4, %v697_v49, %v698_v7  ;;  %v700_v55 = vrot.slane %v692_v48, 5  ;;  %v707_v38 = vmul.f32 %v2874_v9, %v2768_v26  ;;  %v708_v53 = vmul.f32 %v2870_v5, %v2768_v26 }
 0x152   : > { %v1349_v22 = vpop.permute.xlu1 %1348  ;;  %v994_v36 = vmul.f32 %v984_v28, %v3833_v50  ;;  %v987_v60 = vmul.f32 %v982_v57, %v3832_v44  ;;  %v993_v16 = vmul.f32 %v982_v57, %v3833_v50  ;;  %v3154_v37 = vadd.f32 %v699_v46, %v3075_v32 }
 0x153   : > { %v986_v24 = vpop.permute.xlu0 %985  ;;  %v1354_v56 = vmul.f32 %v1349_v22, %v2755_v8  ;;  %v701_v18 = vsel %vm696_vm4, %v698_v7, %v700_v55  ;;  %v712_v51 = vrot.slane %v706_v15, 5  ;;  %v713_v47 = vrot.slane %v707_v38, 5 }
 0x154   : > { %v991_v54 = vadd.f32 %v988_v58, %v973_v31  ;;  %v1360_v11 = vmul.f32 %v1349_v22, %v2768_v26  ;;  %v989_v6 = vmul.f32 %v986_v24, %v3832_v44  ;;  %v995_v28 = vmul.f32 %v986_v24, %v3833_v50 }
 0x155   : > { %v3160_v57 = vadd.f32 %v701_v18, %v3083_v63  ;;  %v714_v40 = vsel %vm696_vm4, %v712_v51, %v713_v47  ;;  %v715_v7 = vrot.slane %v708_v53, 5  ;;  %v721_v32 = vmul.f32 %v2816_v45, %v2755_v8 }
 0x156   : > { %v1353_v48 = vpop.permute.xlu1 %1352  ;;  %v997_v15 = vadd.f32 %v994_v36, %v979_v62  ;;  %v990_v46 = vadd.f32 %v987_v60, %v972_v29  ;;  %v996_v31 = vadd.f32 %v993_v16, %v978_v30  ;;  %v1357_v58 = vadd.f32 %v1354_v56, %v3105_v42  ;;  %v3834_v56 = vld [vmem:[#allocation27_spill] sm:$0xff] }
 0x157   : > { %v1351_v49 = vpop.permute.xlu0 %1350  ;;  %v716_v22 = vsel %vm696_vm4, %v713_v47, %v715_v7  ;;  %v3168_v24 = vadd.f32 %v714_v40, %v3090_v41  ;;  %v722_v63 = vmul.f32 %v2876_v10, %v2755_v8  ;;  %v723_v55 = vmul.f32 %v2872_v25, %v2755_v8  ;;  %v3835_v47 = vld [vmem:[#allocation28_spill] sm:$0xff] }
 0x158   : > { %v1363_v38 = vadd.f32 %v1360_v11, %v1345_v61  ;;  %v992_v53 = vadd.f32 %v989_v6, %v974_v13  ;;  %v998_v18 = vadd.f32 %v995_v28, %v980_v14  ;;  %v1356_v29 = vmul.f32 %v1353_v48, %v2755_v8 }
 0x159   : > { %v3176_v42 = vadd.f32 %v716_v22, %v3108_v17  ;;  %v727_v36 = vrot.slane %v721_v32, 5  ;;  %v728_v60 = vrot.slane %v722_v63, 5  ;;  %v730_v40 = vrot.slane %v723_v55, 5 }
 0x15a   : > { %v1002_v30 = vpop.permute.xlu1 %1001  ;;  %v1362_v41 = vmul.f32 %v1353_v48, %v2768_v26  ;;  %v1355_v16 = vmul.f32 %v1351_v49, %v2755_v8  ;;  %v736_v11 = vmul.f32 %v2814_v39, %v3824_v19  ;;  %v737_v17 = vmul.f32 %v2874_v9, %v3824_v19 }
 0x15b   : > { %v1000_v62 = vpop.permute.xlu0 %999  ;;  %v729_v13 = vsel %vm696_vm4, %v727_v36, %v728_v60  ;;  %v731_v14 = vsel %vm696_vm4, %v728_v60, %v730_v40  ;;  %v1359_v6 = vadd.f32 %v1356_v29, %v1341_v12  ;;  %v1361_v28 = vmul.f32 %v1351_v49, %v2768_v26 }
 0x15c   : > { %v1005_v51 = vmul.f32 %v1000_v62, %v3834_v56  ;;  %v1011_v61 = vmul.f32 %v1000_v62, %v3835_v47  ;;  %v1006_v48 = vmul.f32 %v1002_v30, %v3834_v56  ;;  %v1012_v32 = vmul.f32 %v1002_v30, %v3835_v47 }
 0x15d   : > { %v3194_v55 = vadd.f32 %v729_v13, %v3124_v33  ;;  %v3197_v62 = vadd.f32 %v731_v14, %v3127_v20  ;;  %v738_v36 = vmul.f32 %v2870_v5, %v3824_v19  ;;  %v1365_v12 = vadd.f32 %v1362_v41, %v3136_v0 }
 0x15e   : > { %v3190_v7 = vadd.f32 %v1005_v51, %v990_v46  ;;  %v1367_v22 = vpop.permute.xlu1 %1366  ;;  %v1358_v49 = vadd.f32 %v1355_v16, %v3113_v21  ;;  %v3203_v29 = vadd.f32 %v1011_v61, %v996_v31  ;;  %v743_v46 = vrot.slane %v736_v11, 6 }
 0x15f   : > { %v1004_v63 = vpop.permute.xlu0 %1003  ;;  %v744_v20 = vrot.slane %v737_v17, 6  ;;  %v1364_v40 = vadd.f32 %v1361_v28, %v3116_v59  ;;  %v1372_v51 = vmul.f32 %v1367_v22, %v3824_v19  ;;  %v1378_v0 = vmul.f32 %v1367_v22, %v3825_v52 }
 0x160   : > { %v3207_v30 = vmul.f32 %v3190_v7, %v2676_v4  ;;  %v1007_v33 = vmul.f32 %v1004_v63, %v3834_v56  ;;  %v1013_v60 = vmul.f32 %v1004_v63, %v3835_v47  ;;  %v746_v41 = vrot.slane %v738_v36, 6 }
 0x161   : > { %v3214_v21 = vadd.f32 %v1006_v48, %v991_v54  ;;  %v3216_v31 = vadd.f32 %v1012_v32, %v997_v15  ;;  %v745_v14 = vsel %vm742_vm5, %v743_v46, %v744_v20  ;;  %v3223_v11 = vmul.f32 %v3203_v29, %v2674_v3 }
 0x162   : > { %v3218_v16 = vadd.f32 %v1007_v33, %v992_v53  ;;  %v1371_v61 = vpop.permute.xlu1 %1370  ;;  %v3225_v59 = vadd.f32 %v1013_v60, %v998_v18  ;;  %v3232_v15 = vmul.f32 %v3190_v7, %v2708_v27  ;;  %v747_v53 = vsel %vm742_vm5, %v744_v20, %v746_v41 }
 0x163   : > { %v1369_v13 = vpop.permute.xlu0 %1368  ;;  %v1374_v17 = vmul.f32 %v1371_v61, %v3824_v19  ;;  %v1380_v28 = vmul.f32 %v1371_v61, %v3825_v52  ;;  %v752_v48 = vmul.f32 %v2814_v39, %v3825_v52  ;;  %v1375_v32 = vadd.f32 %v1372_v51, %v1357_v58 }
 0x164   : > { %3836 = vst [vmem:[#allocation29_spill] sm:$0xff] %v3218_v16  ;;  %v1381_v22 = vadd.f32 %v1378_v0, %v1363_v38  ;;  %v1373_v18 = vmul.f32 %v1369_v13, %v3824_v19  ;;  %v1379_v63 = vmul.f32 %v1369_v13, %v3825_v52  ;;  %v3241_v36 = vmul.f32 %v3218_v16, %v2676_v4 }
 0x165   : > { %v3244_v60 = vadd.f32 %v745_v14, %v3154_v37  ;;  %v3247_v20 = vadd.f32 %v747_v53, %v3160_v57  ;;  %v753_v58 = vmul.f32 %v2874_v9, %v3825_v52  ;;  %v3253_v38 = vmul.f32 %v3225_v59, %v2674_v3 }
 0x166   : > { %v1387_v46 = vpop.permute.xlu1 %1386  ;;  %v3257_v51 = vmul.f32 %v3218_v16, %v2708_v27  ;;  %v1377_v0 = vadd.f32 %v1374_v17, %v1359_v6  ;;  %v1383_v41 = vadd.f32 %v1380_v28, %v1365_v12  ;;  %v754_v37 = vmul.f32 %v2870_v5, %v3825_v52 }
 0x167   : > { %v1385_v33 = vpop.permute.xlu0 %1384  ;;  %v758_v61 = vrot.slane %v752_v48, 6  ;;  %v759_v13 = vrot.slane %v753_v58, 6  ;;  %v767_v57 = vmul.f32 %v2816_v45, %v3824_v19  ;;  %v1376_v14 = vadd.f32 %v1373_v18, %v1358_v49 }
 0x168   : > { %v1391_v53 = vmul.f32 %v1387_v46, %v3832_v44  ;;  %v1397_v54 = vmul.f32 %v1387_v46, %v3833_v50  ;;  %v1390_v8 = vmul.f32 %v1385_v33, %v3832_v44  ;;  %v761_v12 = vrot.slane %v754_v37, 6 }
 0x169   : > { %v760_v6 = vsel %vm742_vm5, %v758_v61, %v759_v13  ;;  %v768_v17 = vmul.f32 %v2876_v10, %v3824_v19  ;;  %v769_v28 = vmul.f32 %v2872_v25, %v3824_v19  ;;  %v1382_v48 = vadd.f32 %v1379_v63, %v1364_v40 }
 0x16a   : > { %v1403_v26 = vpop.permute.xlu1 %1402  ;;  %v1396_v18 = vmul.f32 %v1385_v33, %v3833_v50  ;;  %v762_v58 = vsel %vm742_vm5, %v759_v13, %v761_v12  ;;  %v765_v52 = vadd.f32 %v760_v6, %v3168_v24  ;;  %v773_v34 = vrot.slane %v767_v57, 6 }
 0x16b   : > { %v1389_v43 = vpop.permute.xlu0 %1388  ;;  %v774_v61 = vrot.slane %v768_v17, 6  ;;  %v3276_v37 = vadd.f32 %v1391_v53, %v1376_v14  ;;  %v3278_v16 = vadd.f32 %v1397_v54, %v1382_v48  ;;  %v3280_v35 = vadd.f32 %v1390_v8, %v1375_v32 }
 0x16c   : > { %v1392_v46 = vmul.f32 %v1389_v43, %v3832_v44  ;;  %v1398_v19 = vmul.f32 %v1389_v43, %v3833_v50  ;;  %v766_v63 = vadd.f32 %v762_v58, %v3176_v42  ;;  %v776_v13 = vrot.slane %v769_v28, 6 }
 0x16d   : > { %v775_v33 = vsel %vm742_vm5, %v773_v34, %v774_v61  ;;  %v782_v24 = vmul.f32 %v2814_v39, %v3832_v44  ;;  %v3289_v57 = vadd.f32 %v1396_v18, %v1381_v22  ;;  %v3292_v54 = vmul.f32 %v1403_v26, %v3834_v56 }
 0x16e   : > { %v3283_v49 = vpop.permute.xlu1 %1406  ;;  %v3295_v8 = vmul.f32 %v1403_v26, %v3835_v47  ;;  %v3297_v43 = vadd.f32 %v1392_v46, %v1377_v0  ;;  %v777_v32 = vsel %vm742_vm5, %v774_v61, %v776_v13  ;;  %v780_v42 = vadd.f32 %v775_v33, %v3194_v55 }
 0x16f   : > { %v1405_v40 = vpop.permute.xlu0 %1404  ;;  %v783_v34 = vmul.f32 %v2874_v9, %v3832_v44  ;;  %v784_v14 = vmul.f32 %v2870_v5, %v3832_v44  ;;  %v3305_v22 = vadd.f32 %v1398_v19, %v1383_v41  ;;  %v3309_v53 = vmul.f32 %v3283_v49, %v3834_v56 }
 0x170   : > { %v3312_v26 = vmul.f32 %v1405_v40, %v3834_v56  ;;  %v3315_v0 = vmul.f32 %v1405_v40, %v3835_v47  ;;  %v781_v55 = vadd.f32 %v777_v32, %v3197_v62  ;;  %v789_v6 = vrot.slane %v782_v24, 7 }
 0x171   : > { %v790_v12 = vrot.slane %v783_v34, 7  ;;  %v792_v17 = vrot.slane %v784_v14, 7  ;;  %v798_v28 = vmul.f32 %v2814_v39, %v3833_v50  ;;  %v799_v19 = vmul.f32 %v2874_v9, %v3833_v50 }
 0x172   : > { %v800_v41 = vmul.f32 %v2870_v5, %v3833_v50  ;;  %v813_v48 = vmul.f32 %v2816_v45, %v3832_v44  ;;  %v814_v62 = vmul.f32 %v2876_v10, %v3832_v44  ;;  %v815_v58 = vmul.f32 %v2872_v25, %v3832_v44 }
 0x173   : > { %v791_v18 = vsel %vm788_vm6, %v789_v6, %v790_v12  ;;  %v793_v46 = vsel %vm788_vm6, %v790_v12, %v792_v17  ;;  %v804_v40 = vrot.slane %v798_v28, 7  ;;  %v805_v33 = vrot.slane %v799_v19, 7 }
 0x174   : > { %v796_v39 = vadd.f32 %v791_v18, %v3244_v60  ;;  %v797_v61 = vadd.f32 %v793_v46, %v3247_v20  ;;  %v807_v13 = vrot.slane %v800_v41, 7  ;;  %v819_v24 = vrot.slane %v813_v48, 7 }
 0x175   : > { %v820_v32 = vrot.slane %v814_v62, 7  ;;  %v822_v45 = vrot.slane %v815_v58, 7  ;;  %v806_v34 = vsel %vm788_vm6, %v804_v40, %v805_v33  ;;  %v828_v14 = vmul.f32 %v2874_v9, %v3834_v56 }
 0x176   : > { %v829_v6 = vmul.f32 %v2870_v5, %v3834_v56  ;;  %v832_v12 = vmul.f32 %v3835_v47, %v2874_v9  ;;  %v808_v60 = vsel %vm788_vm6, %v805_v33, %v807_v13  ;;  %v811_v20 = vadd.f32 %v806_v34, %v765_v52 }
 0x177   : > { %v821_v17 = vsel %vm788_vm6, %v819_v24, %v820_v32  ;;  %v823_v28 = vsel %vm788_vm6, %v820_v32, %v822_v45  ;;  %v812_v19 = vadd.f32 %v808_v60, %v766_v63  ;;  %v3344_v18 = vadd.f32 %v828_v14, %v796_v39 }
 0x178   : > { %v826_v41 = vadd.f32 %v821_v17, %v780_v42  ;;  %v827_v48 = vadd.f32 %v823_v28, %v781_v55  ;;  %v3346_v46 = vadd.f32 %v829_v6, %v797_v61  ;;  %v833_v62 = vmul.f32 %v3835_v47, %v2870_v5 }
 0x179   : > { %v3350_v58 = vadd.f32 %v832_v12, %v811_v20  ;;  %v836_v9 = vmul.f32 %v2876_v10, %v3834_v56  ;;  %v837_v52 = vmul.f32 %v2872_v25, %v3834_v56  ;;  %v1017_v63 = vmul.f32 %v3190_v7, %v2668_v2 }
 0x17a   : > { %3837 = vst [vmem:[#allocation30_spill] sm:$0xff] %v3346_v46  ;;  %v1018_v42 = vmul.f32 %v3214_v21, %v2668_v2  ;;  %v1021_v55 = vmul.f32 %v3203_v29, %v2666_v1  ;;  %v3362_v39 = vadd.f32 %v833_v62, %v812_v19  ;;  %v1022_v61 = vmul.f32 %v3216_v31, %v2666_v1 }
 0x17b   : > { %3838 = vst [vmem:[#allocation32_spill] sm:$0xff] %v3350_v58  ;;  %v3364_v5 = vadd.f32 %v836_v9, %v826_v41  ;;  %v1026_v10 = vmul.f32 %v3214_v21, %v2676_v4  ;;  %v3370_v25 = vadd.f32 %v837_v52, %v827_v48  ;;  %v1041_v40 = vmul.f32 %v3216_v31, %v2674_v3  ;;  %v3850_v58 = vld [vmem:[#allocation21_spill] sm:$0xff] }
 0x17c   : > { %3839 = vst [vmem:[#allocation33_spill] sm:$0xff] %v3362_v39  ;;  %v1046_v33 = vrot.slane %v3223_v11, 1  ;;  %v1049_v13 = vrot.slane %v3253_v38, 1  ;;  %v1056_v32 = vmul.f32 %v3214_v21, %v2708_v27  ;;  %v1061_v45 = vrot.slane %v3232_v15, 2 }
 0x17d   : > { %3840 = vst [vmem:[#allocation31_spill] sm:$0xff] %v3364_v5  ;;  %3841 = vst [vmem:[#allocation34_spill] sm:$0xff] %v3370_v25  ;;  %v1032_v24 = vrot.slane %v1026_v10, 1  ;;  %v1064_v34 = vrot.slane %v3257_v51, 2  ;;  %v1047_v14 = vrot.slane %v1041_v40, 1  ;;  %v1070_v6 = vmul.f32 %v3203_v29, %v2706_v23  ;;  %v3844_v51 = vld [vmem:[#allocation18_spill] sm:$0xff] }
 0x17e   : > { %v1071_v12 = vmul.f32 %v3216_v31, %v2706_v23  ;;  %v1072_v11 = vmul.f32 %v3225_v59, %v2706_v23  ;;  %v3842_v38 = vrot.slane %v3207_v30, 1  ;;  %v3843_v20 = vrot.slane %v3241_v36, 1 }
 0x17f   : > { %v1062_v17 = vrot.slane %v1056_v32, 2  ;;  %v1085_v28 = vmul.f32 %v3190_v7, %v3844_v51  ;;  %v1048_v48 = vsel %vm512_vm0, %v1046_v33, %v1047_v14  ;;  %v1050_v62 = vsel %vm512_vm0, %v1047_v14, %v1049_v13 }
 0x180   : > { %v1033_v60 = vsel %vm512_vm0, %v3842_v38, %v1032_v24  ;;  %v1035_v15 = vsel %vm512_vm0, %v1032_v24, %v3843_v20  ;;  %v1053_v9 = vadd.f32 %v1048_v48, %v1021_v55  ;;  %v1054_v52 = vadd.f32 %v1050_v62, %v1022_v61  ;;  %v3846_v55 = vld [vmem:[#allocation17_spill] sm:$0xff]  ;;  %v3847_v48 = vld [vmem:[#allocation20_spill] sm:$0xff] }
 0x181   : > { %v1038_v19 = vadd.f32 %v1033_v60, %v1017_v63  ;;  %v1039_v41 = vadd.f32 %v1035_v15, %v1018_v42  ;;  %v1063_v30 = vsel %vm558_vm1, %v1061_v45, %v1062_v17  ;;  %v1065_v10 = vsel %vm558_vm1, %v1062_v17, %v1064_v34  ;;  %v3845_v63 = vld [vmem:[#allocation29_spill] sm:$0xff] }
 0x182   : > { %v1076_v38 = vrot.slane %v1070_v6, 2  ;;  %v1077_v24 = vrot.slane %v1071_v12, 2  ;;  %v1079_v32 = vrot.slane %v1072_v11, 2  ;;  %v1086_v20 = vmul.f32 %v3214_v21, %v3844_v51 }
 0x183   : > { %v1068_v40 = vadd.f32 %v1063_v30, %v1038_v19  ;;  %v1069_v36 = vadd.f32 %v1065_v10, %v1039_v41  ;;  %v1087_v42 = vmul.f32 %v3845_v63, %v3844_v51  ;;  %v1091_v33 = vrot.slane %v1085_v28, 3 }
 0x184   : > { %v1078_v13 = vsel %vm558_vm1, %v1076_v38, %v1077_v24  ;;  %v1100_v61 = vmul.f32 %v3203_v29, %v3846_v55  ;;  %v1101_v45 = vmul.f32 %v3216_v31, %v3846_v55  ;;  %v1102_v34 = vmul.f32 %v3225_v59, %v3846_v55 }
 0x185   : > { %v1080_v14 = vsel %vm558_vm1, %v1077_v24, %v1079_v32  ;;  %v1083_v6 = vadd.f32 %v1078_v13, %v1053_v9  ;;  %v1092_v12 = vrot.slane %v1086_v20, 3  ;;  %v1094_v11 = vrot.slane %v1087_v42, 3  ;;  %v3848_v13 = vld [vmem:[#allocation19_spill] sm:$0xff] }
 0x186   : > { %v1084_v60 = vadd.f32 %v1080_v14, %v1054_v52  ;;  %v1106_v15 = vrot.slane %v1100_v61, 3  ;;  %v1107_v17 = vrot.slane %v1101_v45, 3  ;;  %v1109_v28 = vrot.slane %v1102_v34, 3  ;;  %v3849_v34 = vld [vmem:[#allocation22_spill] sm:$0xff] }
 0x187   : > { %v1093_v19 = vsel %vm604_vm2, %v1091_v33, %v1092_v12  ;;  %v1095_v41 = vsel %vm604_vm2, %v1092_v12, %v1094_v11  ;;  %v1115_v62 = vmul.f32 %v3190_v7, %v3847_v48  ;;  %v1116_v30 = vmul.f32 %v3214_v21, %v3847_v48 }
 0x188   : > { %v1098_v10 = vadd.f32 %v1093_v19, %v1068_v40  ;;  %v1099_v38 = vadd.f32 %v1095_v41, %v1069_v36  ;;  %v1108_v9 = vsel %vm604_vm2, %v1106_v15, %v1107_v17  ;;  %v1110_v24 = vsel %vm604_vm2, %v1107_v17, %v1109_v28 }
 0x189   : > { %v1113_v52 = vadd.f32 %v1108_v9, %v1083_v6  ;;  %v1114_v32 = vadd.f32 %v1110_v24, %v1084_v60  ;;  %v1117_v20 = vmul.f32 %v3845_v63, %v3847_v48  ;;  %v1121_v42 = vrot.slane %v1115_v62, 4 }
 0x18a   : > { %v1122_v33 = vrot.slane %v1116_v30, 4  ;;  %v1130_v61 = vmul.f32 %v3203_v29, %v3848_v13  ;;  %v1131_v45 = vmul.f32 %v3216_v31, %v3848_v13  ;;  %v1132_v40 = vmul.f32 %v3225_v59, %v3848_v13 }
 0x18b   : > { %v1124_v36 = vrot.slane %v1117_v20, 4  ;;  %v1145_v14 = vmul.f32 %v3190_v7, %v3849_v34  ;;  %v1146_v6 = vmul.f32 %v3214_v21, %v3849_v34  ;;  %v1147_v12 = vmul.f32 %v3845_v63, %v3849_v34 }
 0x18c   : > { %v1123_v11 = vsel %vm650_vm3, %v1121_v42, %v1122_v33  ;;  %v1136_v60 = vrot.slane %v1130_v61, 4  ;;  %v1137_v15 = vrot.slane %v1131_v45, 4  ;;  %v1139_v17 = vrot.slane %v1132_v40, 4 }
 0x18d   : > { %v1125_v28 = vsel %vm650_vm3, %v1122_v33, %v1124_v36  ;;  %v1128_v19 = vadd.f32 %v1123_v11, %v1098_v10  ;;  %v1151_v41 = vrot.slane %v1145_v14, 5  ;;  %v1152_v62 = vrot.slane %v1146_v6, 5  ;;  %v3851_v36 = vld [vmem:[#allocation24_spill] sm:$0xff] }
 0x18e   : > { %v1129_v30 = vadd.f32 %v1125_v28, %v1099_v38  ;;  %v1138_v9 = vsel %vm650_vm3, %v1136_v60, %v1137_v15  ;;  %v1140_v24 = vsel %vm650_vm3, %v1137_v15, %v1139_v17  ;;  %v1154_v20 = vrot.slane %v1147_v12, 5 }
 0x18f   : > { %v1143_v25 = vadd.f32 %v1138_v9, %v1113_v52  ;;  %v1144_v39 = vadd.f32 %v1140_v24, %v1114_v32  ;;  %v1153_v5 = vsel %vm696_vm4, %v1151_v41, %v1152_v62  ;;  %v1160_v42 = vmul.f32 %v3203_v29, %v3850_v58 }
 0x190   : > { %v1155_v61 = vsel %vm696_vm4, %v1152_v62, %v1154_v20  ;;  %v1158_v45 = vadd.f32 %v1153_v5, %v1128_v19  ;;  %v1161_v10 = vmul.f32 %v3216_v31, %v3850_v58  ;;  %v1162_v38 = vmul.f32 %v3225_v59, %v3850_v58  ;;  %v3852_v5 = vld [vmem:[#allocation23_spill] sm:$0xff] }
 0x191   : > { %v1159_v33 = vadd.f32 %v1155_v61, %v1129_v30  ;;  %v1166_v40 = vrot.slane %v1160_v42, 5  ;;  %v1175_v52 = vmul.f32 %v3190_v7, %v3851_v36  ;;  %v1176_v32 = vmul.f32 %v3214_v21, %v3851_v36 }
 0x192   : > { %v1167_v14 = vrot.slane %v1161_v10, 5  ;;  %v1169_v6 = vrot.slane %v1162_v38, 5  ;;  %v1177_v12 = vmul.f32 %v3845_v63, %v3851_v36  ;;  %v1190_v11 = vmul.f32 %v3203_v29, %v3852_v5 }
 0x193   : > { %v1181_v60 = vrot.slane %v1175_v52, 6  ;;  %v1182_v15 = vrot.slane %v1176_v32, 6  ;;  %v1191_v17 = vmul.f32 %v3216_v31, %v3852_v5  ;;  %v1192_v28 = vmul.f32 %v3225_v59, %v3852_v5 }
 0x194   : > { %v1168_v19 = vsel %vm696_vm4, %v1166_v40, %v1167_v14  ;;  %v1170_v41 = vsel %vm696_vm4, %v1167_v14, %v1169_v6  ;;  %v1184_v62 = vrot.slane %v1177_v12, 6  ;;  %v1196_v30 = vrot.slane %v1190_v11, 6 }
 0x195   : > { %v1173_v9 = vadd.f32 %v1168_v19, %v1143_v25  ;;  %v1174_v24 = vadd.f32 %v1170_v41, %v1144_v39  ;;  %v1183_v20 = vsel %vm742_vm5, %v1181_v60, %v1182_v15  ;;  %v1197_v42 = vrot.slane %v1191_v17, 6 }
 0x196   : > { %v1185_v61 = vsel %vm742_vm5, %v1182_v15, %v1184_v62  ;;  %v1188_v10 = vadd.f32 %v1183_v20, %v1158_v45  ;;  %v1199_v38 = vrot.slane %v1192_v28, 6  ;;  %v1205_v52 = vmul.f32 %v3190_v7, %v3833_v50 }
 0x197   : > { %v1189_v32 = vadd.f32 %v1185_v61, %v1159_v33  ;;  %v1198_v46 = vsel %vm742_vm5, %v1196_v30, %v1197_v42  ;;  %v1206_v40 = vmul.f32 %v3214_v21, %v3833_v50  ;;  %v1207_v25 = vmul.f32 %v3845_v63, %v3833_v50 }
 0x198   : > { %v1200_v39 = vsel %vm742_vm5, %v1197_v42, %v1199_v38  ;;  %v1203_v14 = vadd.f32 %v1198_v46, %v1173_v9  ;;  %v1211_v6 = vrot.slane %v1205_v52, 7  ;;  %v1220_v45 = vmul.f32 %v3203_v29, %v3832_v44 }
 0x199   : > { %v1204_v12 = vadd.f32 %v1200_v39, %v1174_v24  ;;  %v1212_v11 = vrot.slane %v1206_v40, 7  ;;  %v1214_v60 = vrot.slane %v1207_v25, 7  ;;  %v1221_v7 = vmul.f32 %v3216_v31, %v3832_v44 }
 0x19a   : > { %v3474_v33 = vadd.f32 %v3309_v53, %v3297_v43  ;;  %v1416_v15 = vmul.f32 %v3283_v49, %v3835_v47  ;;  %v1222_v46 = vmul.f32 %v3225_v59, %v3832_v44  ;;  %v1226_v17 = vrot.slane %v1220_v45, 7 }
 0x19b   : > { %v1213_v28 = vsel %vm788_vm6, %v1211_v6, %v1212_v11  ;;  %v1215_v29 = vsel %vm788_vm6, %v1212_v11, %v1214_v60  ;;  %v1227_v19 = vrot.slane %v1221_v7, 7  ;;  %v1235_v41 = vmul.f32 %v3214_v21, %v3835_v47 }
 0x19c   : > { %v1218_v62 = vadd.f32 %v1213_v28, %v1188_v10  ;;  %v1219_v30 = vadd.f32 %v1215_v29, %v1189_v32  ;;  %v1229_v9 = vrot.slane %v1222_v46, 7  ;;  %v1236_v43 = vmul.f32 %v3845_v63, %v3835_v47 }
 0x19d   : > { %v3488_v49 = vadd.f32 %v3312_v26, %v3276_v37  ;;  %v3492_v53 = vadd.f32 %v3315_v0, %v3278_v16  ;;  %v1228_v24 = vsel %vm788_vm6, %v1226_v17, %v1227_v19  ;;  %v1239_v20 = vmul.f32 %v3216_v31, %v3834_v56 }
 0x19e   : > { %v1230_v21 = vsel %vm788_vm6, %v1227_v19, %v1229_v9  ;;  %v1233_v42 = vadd.f32 %v1228_v24, %v1203_v14  ;;  %v3498_v61 = vadd.f32 %v1235_v41, %v1218_v62  ;;  %v3500_v10 = vadd.f32 %v1236_v43, %v1219_v30 }
 0x19f   : > { %v3503_v63 = vadd.f32 %v1416_v15, %v3305_v22  ;;  %v1234_v37 = vadd.f32 %v1230_v21, %v1204_v12  ;;  %v1240_v16 = vmul.f32 %v3225_v59, %v3834_v56  ;;  %v3509_v26 = vadd.f32 %v3292_v54, %v3280_v35 }
 0x1a0   : > { %v3513_v31 = vadd.f32 %v3295_v8, %v3289_v57  ;;  %v3515_v0 = vadd.f32 %v1239_v20, %v1233_v42  ;;  %v1429_v22 = vmul.f32 %v3488_v49, %v2676_v4  ;;  %v1430_v52 = vmul.f32 %v3474_v33, %v2676_v4 }
 0x1a1   : > { %v3517_v38 = vadd.f32 %v1240_v16, %v1234_v37  ;;  %v1444_v59 = vmul.f32 %v3492_v53, %v2674_v3  ;;  %v1445_v35 = vmul.f32 %v3503_v63, %v2674_v3  ;;  %v1428_v57 = vmul.f32 %v3509_v26, %v2676_v4 }
 0x1a2   : > { %v1443_v54 = vmul.f32 %v3513_v31, %v2674_v3  ;;  %v1435_v8 = vrot.slane %v1429_v22, 1  ;;  %v1437_v32 = vrot.slane %v1430_v52, 1  ;;  %v1459_v39 = vmul.f32 %v3488_v49, %v2708_v27 }
 0x1a3   : > { %v1450_v40 = vrot.slane %v1444_v59, 1  ;;  %v1452_v25 = vrot.slane %v1445_v35, 1  ;;  %v1460_v14 = vmul.f32 %v3474_v33, %v2708_v27  ;;  %v1434_v6 = vrot.slane %v1428_v57, 1 }
 0x1a4   : > { %v1449_v45 = vrot.slane %v1443_v54, 1  ;;  %v1420_v12 = vmul.f32 %v3509_v26, %v2668_v2  ;;  %v1421_v4 = vmul.f32 %v3488_v49, %v2668_v2  ;;  %v1458_v3 = vmul.f32 %v3509_v26, %v2708_v27 }
 0x1a5   : > { %v1474_v11 = vmul.f32 %v3492_v53, %v2706_v23  ;;  %v1436_v60 = vsel %vm512_vm0, %v1434_v6, %v1435_v8  ;;  %v1438_v7 = vsel %vm512_vm0, %v1435_v8, %v1437_v32  ;;  %v1475_v46 = vmul.f32 %v3503_v63, %v2706_v23 }
 0x1a6   : > { %v1451_v15 = vsel %vm512_vm0, %v1449_v45, %v1450_v40  ;;  %v1453_v17 = vsel %vm512_vm0, %v1450_v40, %v1452_v25  ;;  %v1465_v28 = vrot.slane %v1459_v39, 2  ;;  %v1467_v29 = vrot.slane %v1460_v14, 2 }
 0x1a7   : > { %v1473_v2 = vmul.f32 %v3513_v31, %v2706_v23  ;;  %v1424_v27 = vmul.f32 %v3513_v31, %v2666_v1  ;;  %v1425_v19 = vmul.f32 %v3492_v53, %v2666_v1  ;;  %v1489_v41 = vmul.f32 %v3488_v49, %v3844_v51 }
 0x1a8   : > { %v1490_v62 = vmul.f32 %v3474_v33, %v3844_v51  ;;  %v1441_v30 = vadd.f32 %v1436_v60, %v1420_v12  ;;  %v1442_v9 = vadd.f32 %v1438_v7, %v1421_v4  ;;  %v1464_v43 = vrot.slane %v1458_v3, 2 }
 0x1a9   : > { %v1480_v24 = vrot.slane %v1474_v11, 2  ;;  %v1456_v20 = vadd.f32 %v1451_v15, %v1424_v27  ;;  %v1457_v21 = vadd.f32 %v1453_v17, %v1425_v19  ;;  %v1482_v42 = vrot.slane %v1475_v46, 2 }
 0x1aa   : > { %v1488_v23 = vmul.f32 %v3509_v26, %v3844_v51  ;;  %v1466_v37 = vsel %vm558_vm1, %v1464_v43, %v1465_v28  ;;  %v1468_v1 = vsel %vm558_vm1, %v1465_v28, %v1467_v29  ;;  %v1479_v16 = vrot.slane %v1473_v2, 2 }
 0x1ab   : > { %v1504_v22 = vmul.f32 %v3492_v53, %v3846_v55  ;;  %v1495_v52 = vrot.slane %v1489_v41, 3  ;;  %v1497_v59 = vrot.slane %v1490_v62, 3  ;;  %v1503_v35 = vmul.f32 %v3513_v31, %v3846_v55 }
 0x1ac   : > { %v1505_v57 = vmul.f32 %v3503_v63, %v3846_v55  ;;  %v1471_v54 = vadd.f32 %v1466_v37, %v1441_v30  ;;  %v1472_v8 = vadd.f32 %v1468_v1, %v1442_v9  ;;  %v1481_v51 = vsel %vm558_vm1, %v1479_v16, %v1480_v24 }
 0x1ad   : > { %v1519_v32 = vmul.f32 %v3488_v49, %v3847_v48  ;;  %v1483_v40 = vsel %vm558_vm1, %v1480_v24, %v1482_v42  ;;  %v1486_v25 = vadd.f32 %v1481_v51, %v1456_v20  ;;  %v1494_v39 = vrot.slane %v1488_v23, 3 }
 0x1ae   : > { %v1520_v14 = vmul.f32 %v3474_v33, %v3847_v48  ;;  %v1487_v6 = vadd.f32 %v1483_v40, %v1457_v21  ;;  %v1510_v45 = vrot.slane %v1504_v22, 3  ;;  %v1518_v12 = vmul.f32 %v3509_v26, %v3847_v48 }
 0x1af   : > { %v1534_v55 = vmul.f32 %v3492_v53, %v3848_v13  ;;  %v1496_v4 = vsel %vm604_vm2, %v1494_v39, %v1495_v52  ;;  %v1498_v3 = vsel %vm604_vm2, %v1495_v52, %v1497_v59  ;;  %v1509_v11 = vrot.slane %v1503_v35, 3 }
 0x1b0   : > { %v1512_v60 = vrot.slane %v1505_v57, 3  ;;  %v1501_v7 = vadd.f32 %v1496_v4, %v1471_v54  ;;  %v1525_v15 = vrot.slane %v1519_v32, 4  ;;  %v1533_v46 = vmul.f32 %v3513_v31, %v3848_v13 }
 0x1b1   : > { %v1535_v17 = vmul.f32 %v3503_v63, %v3848_v13  ;;  %v1502_v28 = vadd.f32 %v1498_v3, %v1472_v8  ;;  %v1527_v29 = vrot.slane %v1520_v14, 4  ;;  %v1549_v48 = vmul.f32 %v3488_v49, %v3849_v34 }
 0x1b2   : > { %v1550_v2 = vmul.f32 %v3474_v33, %v3849_v34  ;;  %v1511_v27 = vsel %vm604_vm2, %v1509_v11, %v1510_v45  ;;  %v1524_v19 = vrot.slane %v1518_v12, 4  ;;  %v1540_v41 = vrot.slane %v1534_v55, 4 }
 0x1b3   : > { %v1548_v62 = vmul.f32 %v3509_v26, %v3849_v34  ;;  %v1513_v30 = vsel %vm604_vm2, %v1510_v45, %v1512_v60  ;;  %v1516_v9 = vadd.f32 %v1511_v27, %v1486_v25  ;;  %v1564_v13 = vmul.f32 %v3492_v53, %v3850_v58 }
 0x1b4   : > { %v1565_v43 = vmul.f32 %v3503_v63, %v3850_v58  ;;  %v1517_v24 = vadd.f32 %v1513_v30, %v1487_v6  ;;  %v1526_v20 = vsel %vm650_vm3, %v1524_v19, %v1525_v15  ;;  %v1539_v21 = vrot.slane %v1533_v46, 4 }
 0x1b5   : > { %v1542_v42 = vrot.slane %v1535_v17, 4  ;;  %v1528_v23 = vsel %vm650_vm3, %v1525_v15, %v1527_v29  ;;  %v1555_v37 = vrot.slane %v1549_v48, 5  ;;  %v1557_v1 = vrot.slane %v1550_v2, 5 }
 0x1b6   : > { %v1563_v34 = vmul.f32 %v3513_v31, %v3850_v58  ;;  %v1531_v16 = vadd.f32 %v1526_v20, %v1501_v7  ;;  %v1532_v22 = vadd.f32 %v1528_v23, %v1502_v28  ;;  %v1541_v52 = vsel %vm650_vm3, %v1539_v21, %v1540_v41 }
 0x1b7   : > { %v1554_v59 = vrot.slane %v1548_v62, 5  ;;  %v1570_v35 = vrot.slane %v1564_v13, 5  ;;  %v1572_v57 = vrot.slane %v1565_v43, 5  ;;  %v1579_v54 = vmul.f32 %v3488_v49, %v3851_v36 }
 0x1b8   : > { %v1580_v8 = vmul.f32 %v3474_v33, %v3851_v36  ;;  %v1543_v51 = vsel %vm650_vm3, %v1540_v41, %v1542_v42  ;;  %v1546_v32 = vadd.f32 %v1541_v52, %v1516_v9  ;;  %v1594_v40 = vmul.f32 %v3492_v53, %v3852_v5  ;;  %v3853_v41 = vld [vmem:[#allocation30_spill] sm:$0xff] }
 0x1b9   : > { %v1595_v58 = vmul.f32 %v3503_v63, %v3852_v5  ;;  %v1556_v25 = vsel %vm696_vm4, %v1554_v59, %v1555_v37  ;;  %v1558_v39 = vsel %vm696_vm4, %v1555_v37, %v1557_v1  ;;  %v1569_v14 = vrot.slane %v1563_v34, 5 }
 0x1ba   : > { %v1578_v6 = vmul.f32 %v3509_v26, %v3851_v36  ;;  %v1547_v45 = vadd.f32 %v1543_v51, %v1517_v24  ;;  %v1561_v12 = vadd.f32 %v1556_v25, %v1531_v16  ;;  %v1562_v55 = vadd.f32 %v1558_v39, %v1532_v22 }
 0x1bb   : > { %v1593_v4 = vmul.f32 %v3513_v31, %v3852_v5  ;;  %v1571_v3 = vsel %vm696_vm4, %v1569_v14, %v1570_v35  ;;  %v1573_v11 = vsel %vm696_vm4, %v1570_v35, %v1572_v57  ;;  %v1585_v60 = vrot.slane %v1579_v54, 6 }
 0x1bc   : > { %v1587_v7 = vrot.slane %v1580_v8, 6  ;;  %v1576_v15 = vadd.f32 %v1571_v3, %v1546_v32  ;;  %v1600_v46 = vrot.slane %v1594_v40, 6  ;;  %v1602_v17 = vrot.slane %v1595_v58, 6 }
 0x1bd   : > { %v1609_v28 = vmul.f32 %v3488_v49, %v3833_v50  ;;  %v1584_v29 = vrot.slane %v1578_v6, 6  ;;  %v1610_v36 = vmul.f32 %v3474_v33, %v3833_v50  ;;  %v1624_v48 = vmul.f32 %v3492_v53, %v3832_v44 }
 0x1be   : > { %v1625_v5 = vmul.f32 %v3503_v63, %v3832_v44  ;;  %v1577_v2 = vadd.f32 %v1573_v11, %v1547_v45  ;;  %v1599_v27 = vrot.slane %v1593_v4, 6  ;;  %v1646_v19 = vadd.f32 1e-05, %v3344_v18  ;;  %v3855_v4 = vld [vmem:[#allocation31_spill] sm:$0xff] }
 0x1bf   : > { %v1647_v62 = vadd.f32 1e-05, %v3853_v41  ;;  %v1586_v30 = vsel %vm742_vm5, %v1584_v29, %v1585_v60  ;;  %v1588_v9 = vsel %vm742_vm5, %v1585_v60, %v1587_v7  ;;  %v1608_v13 = vmul.f32 %v3509_v26, %v3833_v50 }
 0x1c0   : > { %v1623_v43 = vmul.f32 %v3513_v31, %v3832_v44  ;;  %v1601_v24 = vsel %vm742_vm5, %v1599_v27, %v1600_v46  ;;  %v1603_v20 = vsel %vm742_vm5, %v1600_v46, %v1602_v17  ;;  %v1615_v21 = vrot.slane %v1609_v28, 7 }
 0x1c1   : > { %2085 = vrcp.f32 %v1646_v19  ;;  %v1617_v42 = vrot.slane %v1610_v36, 7  ;;  %v1630_v18 = vrot.slane %v1624_v48, 7  ;;  %v1632_v23 = vrot.slane %v1625_v5, 7 }
 0x1c2   : > { %2087 = vrcp.f32 %v1647_v62  ;;  %v1591_v37 = vadd.f32 %v1586_v30, %v1561_v12  ;;  %v1592_v1 = vadd.f32 %v1588_v9, %v1562_v55  ;;  %v1606_v34 = vadd.f32 %v1601_v24, %v1576_v15  ;;  %v3854_v12 = vld [vmem:[#allocation32_spill] sm:$0xff] }
 0x1c3   : > { %v1607_v16 = vadd.f32 %v1603_v20, %v1577_v2  ;;  %v1614_v22 = vrot.slane %v1608_v13, 7  ;;  %v1629_v52 = vrot.slane %v1623_v43, 7  ;;  %v1618_v44 = vsel %vm788_vm6, %v1615_v21, %v1617_v42 }
 0x1c4   : > { %v1633_v31 = vsel %vm788_vm6, %v1630_v18, %v1632_v23  ;;  %v1622_v35 = vadd.f32 %v1618_v44, %v1592_v1  ;;  %v1638_v8 = vmul.f32 %v3488_v49, %v3835_v47  ;;  %v1639_v51 = vmul.f32 %v3474_v33, %v3835_v47  ;;  %v3856_v33 = vld [vmem:[#allocation33_spill] sm:$0xff] }
 0x1c5   : > { %v1616_v50 = vsel %vm788_vm6, %v1614_v22, %v1615_v21  ;;  %v1631_v26 = vsel %vm788_vm6, %v1629_v52, %v1630_v18  ;;  %v1637_v54 = vadd.f32 %v1633_v31, %v1607_v16  ;;  %v1642_v32 = vmul.f32 %v3492_v53, %v3834_v56  ;;  %v3857_v53 = vld [vmem:[#allocation34_spill] sm:$0xff] }
 0x1c6   : > { %v1621_v59 = vadd.f32 %v1616_v50, %v1591_v37  ;;  %v1636_v57 = vadd.f32 %v1631_v26, %v1606_v34  ;;  %v1643_v40 = vmul.f32 %v3503_v63, %v3834_v56  ;;  %v1641_v39 = vadd.f32 %v1639_v51, %v1622_v35 }
 0x1c7   : > { %v1699_v37 = vlaneseq }
 0x1c8   : > { %v1640_v25 = vadd.f32 %v1638_v8, %v1621_v59  ;;  %v1644_v14 = vadd.f32 %v1642_v32, %v1636_v57  ;;  %v1645_v6 = vadd.f32 %v1643_v40, %v1637_v54 }
 0x1c9   : > { %v1700_v1 = vand.u32 127, %v1699_v37 }
 0x1cb   : > { %v2086_v58 = vpop.eup %2085  ;;  %vm1703_vm7 = vcmp.lt.s32.totalorder %v1700_v1, 16  ;;  %vm1731_vm8 = vcmp.eq.s32.totalorder %v1700_v1, 1  ;;  %vm1730_vm9 = vcmp.eq.s32.totalorder %v1700_v1, 0 }
 0x1cc   : > { %v2088_v45 = vpop.eup %2087  ;;  %v1652_v55 = vmul.f32 %v2086_v58, %v3854_v12  ;;  %v1656_v3 = vmul.f32 %v2086_v58, %v3855_v4  ;;  %v1662_v49 = vmul.f32 %v2086_v58, %v3498_v61  ;;  %v1668_v47 = vmul.f32 %v2086_v58, %v3515_v0 }
 0x1cd   : > { %v1653_v11 = vmul.f32 %v2088_v45, %v3856_v33  ;;  %v1657_v60 = vmul.f32 %v2088_v45, %v3857_v53  ;;  %v1663_v56 = vmul.f32 %v2088_v45, %v3500_v10  ;;  %v1669_v63 = vmul.f32 %v2088_v45, %v3517_v38 }
 0x1ce   : > { %v1654_v7 = vmul.f32 %v1652_v55, %v1652_v55  ;;  %v1658_v15 = vmul.f32 %v1656_v3, %v1656_v3  ;;  %v1664_v46 = vmul.f32 %v1662_v49, %v1662_v49  ;;  %v1674_v48 = vmul.f32 %v2086_v58, %v1640_v25 }
 0x1cf   : > { %v1655_v17 = vmul.f32 %v1653_v11, %v1653_v11  ;;  %v1659_v28 = vmul.f32 %v1657_v60, %v1657_v60  ;;  %v1665_v29 = vmul.f32 %v1663_v56, %v1663_v56  ;;  %v1675_v5 = vmul.f32 %v2088_v45, %v1641_v39 }
 0x1d0   : > { %v1660_v36 = vadd.f32 %v1658_v15, %v1654_v7  ;;  %v1680_v61 = vmul.f32 %v2086_v58, %v1644_v14  ;;  %v1681_v0 = vmul.f32 %v2088_v45, %v1645_v6  ;;  %v1670_v19 = vmul.f32 %v1668_v47, %v1668_v47 }
 0x1d1   : > { %v1661_v2 = vadd.f32 %v1659_v28, %v1655_v17  ;;  %v1676_v41 = vmul.f32 %v1674_v48, %v1674_v48  ;;  %v1671_v30 = vmul.f32 %v1669_v63, %v1669_v63  ;;  %v1677_v10 = vmul.f32 %v1675_v5, %v1675_v5 }
 0x1d2   : > { %v1666_v27 = vadd.f32 %v1664_v46, %v1660_v36  ;;  %v1682_v43 = vmul.f32 %v1680_v61, %v1680_v61  ;;  %v1683_v20 = vmul.f32 %v1681_v0, %v1681_v0 }
 0x1d3   : > { %v1667_v62 = vadd.f32 %v1665_v29, %v1661_v2 }
 0x1d4   : > { %v1672_v9 = vadd.f32 %v1670_v19, %v1666_v27 }
 0x1d5   : > { %v1673_v38 = vadd.f32 %v1671_v30, %v1667_v62 }
 0x1d6   : > { %v1678_v13 = vadd.f32 %v1676_v41, %v1672_v9 }
 0x1d7   : > { %v1679_v24 = vadd.f32 %v1677_v10, %v1673_v38 }
 0x1d8   : > { %v1684_v21 = vadd.f32 %v1682_v43, %v1678_v13 }
 0x1d9   : > { %v1685_v42 = vadd.f32 %v1683_v20, %v1679_v24 }
 0x1da   : > { %v1686_v18 = vadd.f32 1e-05, %v1684_v21 }
 0x1db   : > { %v1687_v23 = vadd.f32 1e-05, %v1685_v42 }
 0x1dc   : > { %2089 = vlog2.f32 %v1686_v18 }
 0x1dd   : > { %2091 = vlog2.f32 %v1687_v23 }
 0x1e6   : > { %v2090_v34 = vpop.eup %2089 }
 0x1e7   : > { %v2092_v16 = vpop.eup %2091  ;;  %v3657_v22 = vmul.f32 0.6931472, %v2090_v34 }
 0x1e8   : > { %v3659_v52 = vmul.f32 0.6931472, %v2092_v16 }
 0x1e9   : > { %v1706_v50 = vsel %vm1703_vm7, %v3657_v22, 0.0 }
 0x1ea   : > { %v1707_v44 = vsel %vm1703_vm7, %v3659_v52, 0.0  ;;  %v1718_v26 = vmul.f32 %v1706_v50, %v1706_v50 }
 0x1eb   : > { %v1708_v31 = vadd.f32 %v1707_v44, %v1706_v50  ;;  %v1719_v59 = vmul.f32 %v1707_v44, %v1707_v44 }
 0x1ed   : > { %1709 = vadd.xlane.f32.xlu0 %v1708_v31  ;;  %v1720_v35 = vadd.f32 %v1719_v59, %v1718_v26 }
 0x1ef   : > { %1721 = vadd.xlane.f32.xlu1 %v1720_v35 }
 0x27a   : > { %v1710_v57 = vpop.xlane.xlu0 %1709 }
 0x27b   : > { %v1711_v54 = vrot.slane %v1710_v57, 4 }
 0x27c   : > { %v1722_v8 = vpop.xlane.xlu1 %1721 }
 0x27d   : > { %v1712_v51 = vadd.f32 %v1711_v54, %v1710_v57  ;;  %v1723_v32 = vrot.slane %v1722_v8, 4 }
 0x27f   : > { %v1713_v40 = vrot.slane %v1712_v51, 2  ;;  %v1724_v58 = vadd.f32 %v1723_v32, %v1722_v8 }
 0x281   : > { %v1725_v25 = vrot.slane %v1724_v58, 2  ;;  %v1714_v39 = vadd.f32 %v1713_v40, %v1712_v51 }
 0x283   : > { %v1726_v14 = vadd.f32 %v1725_v25, %v1724_v58  ;;  %v1715_v6 = vrot.slane %v1714_v39, 1 }
 0x285   : > { %v1716_v45 = vadd.f32 %v1715_v6, %v1714_v39  ;;  %v1727_v12 = vrot.slane %v1726_v14, 1 }
 0x287   : > { %1978 = vpush %v1716_v45  ;;  %v1728_v55 = vadd.f32 %v1727_v12, %v1726_v14 }
 0x289   : > { %1980 = vpush %v1728_v55 }
 0x2b8   : > { %s1979_s10 = spop %1978 }
 0x2b9   : > { %s3664_s8 = smul.f32 0.00390625, %s1979_s10  ;;  %v1734_v3 = vstv %s1979_s10  ;;  %s2159_s10 = scalar_lea.vmem %s2158_s11, 32 }
 0x2ba   : > { %s1981_s13 = spop %1980  ;;  %p2161_p11 = scmp.lt.s32.totalorder %s2159_s10, %s2153_s6 }
 0x2bb   : > { %s1743_s14 = smul.f32 %s3664_s8, %s3664_s8  ;;  %v1732_v4 = vstv %s1981_s13 }
 0x2bc   : > { %v1733_v49 = vsel %vm1731_vm8, %v1732_v4, 0.0  ;;  %s1742_s7 = smul.f32 0.00390625, %s1981_s13  ;;  %p2162_p3 = por %p2161_p11, %p2160_p10 }
 0x2bd   : > { %v1735_v47 = vsel %vm1730_vm9, %v1734_v3, %v1733_v49 }
 0x2be   : > { %s3676_s28 = ssub.f32 %s1742_s7, %s1743_s14  ;;  %1736 = vst [vmem:[%s270_s30] sm:$0x1] %v1735_v47  ;;  %p2163_p7 = pnand %p2162_p3, %p2156_p5 }
 0x2c0   : > { %2166 = shalt.err (!%p2163_p7)
}
 0x2c1   : > { %s2167_s30 = scalar_lea.hbm %s3672_s29, 16  ;;  %s2171_s22 = scalar_lea.hbm %s3764_s4, 32 }
 0x2c2   : > { %p2168_p9 = scmp.ne.s32.totalorder %s3672_s29, %s2167_s30  ;;  %p2172_p1 = scmp.lt.u32.totalorder %s3672_s29, %s3764_s4 }
 0x2c3   : > { %p2173_p8 = scmp.lt.u32.totalorder %s2171_s22, %s2167_s30  ;;  %p2175_p13 = scmp.lt.u32.totalorder %s2167_s30, %s3672_s29 }
 0x2c4   : > { %p2169_p2 = pnand %p2168_p9, %p3858_p4 }
 0x2c5   : > { %p2174_p12 = por %p2173_p8, %p2172_p1 }
 0x2c6   : > { %p2170_p6 = pneg %p2169_p2 }
 0x2c7   : > { %p2176_p0 = por %p2175_p13, %p2174_p12 }
 0x2c9   : > { %p2177_p5 = pnand %p2176_p0, %p2170_p6 }
 0x2cb   : > { %2180 = shalt.err (!%p2177_p5)
}
 0x2cc   : > { %1995 = dma.vmem_to_hbm [thread:$0]  (%p3858_p4), %s3674_s12, 16, %s3672_s29, %s1764_s24   ;;  %v1746_v53 = vstv %s3664_s8 }
 0x2cd   : > { %s2291_s6 = smov 0.0   ;;  %s1942_s10 = sshll.u32 %s2471_s21, 4  ;;  %v1747_v60 = vsub.f32 %v3657_v22, %v1746_v53  ;;  %v1748_v56 = vsub.f32 %v3659_v52, %v1746_v53 }
 0x2ce   : > { %s1745_s25 = smax.f32 %s2291_s6, %s3676_s28  ;;  %s264_s30 = scalar_lea.vmem [#allocation9], %s1942_s10 }
 0x2cf   : > { %s1749_s11 = sadd.f32 1e-05, %s1745_s25  ;;  %s1778_s13 = sshll.u32 %s264_s30, 4  ;;  %s3706_s13 = int_to_ptr.vmem [resolvable:$true] %s1778_s13 }
 0x2d0   : > { %s1974_s14 = sshll.u32 %s2267_s18, 8  ;;  %s1759_s18 = scalar_lea.sflag [#allocation4], %s2471_s21 }
 0x2d1   : > { %v1750_v33 = vstv %s1749_s11  ;;  %s3711_s28 = scalar_lea.hbm %s3763_s3, %s1974_s14  ;;  %s2181_s8 = scalar_lea.vmem %s3706_s13, 256 }
 0x2d2   : > { %2093 = vrsqrt.f32 %v1750_v33  ;;  %p2182_p10 = scmp.ne.s32.totalorder %s3706_s13, %s2181_s8  ;;  %s2292_s24 = smov [#allocation9]  }
 0x2d3   : > { %s2185_s23 = sshll.u32 %s2292_s24, 4  ;;  %s2186_s23 = int_to_ptr.vmem [resolvable:$false] %s2185_s23 }
 0x2d4   : > { %p2183_p11 = pnand %p2182_p10, %p3858_p4  ;;  %s2187_s7 = scalar_lea.vmem %s2186_s23, 512 }
 0x2d5   : > { %p2188_p7 = scmp.lt.s32.totalorder %s3706_s13, %s2186_s23  ;;  %p2189_p9 = scmp.lt.s32.totalorder %s2187_s7, %s2181_s8 }
 0x2d6   : > { %p2184_p3 = pneg %p2183_p11 }
 0x2d7   : > { %p2190_p2 = por %p2189_p9, %p2188_p7 }
 0x2d9   : > { %p2191_p6 = pnand %p2190_p2, %p2184_p3 }
 0x2dc   : > { %v2094_v11 = vpop.eup %2093 }
 0x2dd   : > { %1982 = vpush %v2094_v11 }
 0x30e   : > { %s1983_s22 = spop %1982 }
 0x30f   : > { %v1753_v63 = vstv %s1983_s22 }
 0x310   : > { %v1754_v7 = vmul.f32 %v1753_v63, %v1747_v60  ;;  %v1755_v15 = vmul.f32 %v1753_v63, %v1748_v56 }
 0x312   : > { %1756 = vst [vmem:[%s264_s30] sm:$0xff] %v1754_v7  ;;  %1757 = vst [vmem:[%s264_s30 + $0x8] sm:$0xff] %v1755_v15 }
 0x313   : > { %2194 = shalt.err (!%p2191_p6)
}
 0x314   : > { %s2195_s6 = scalar_lea.hbm %s3711_s28, 256  ;;  %s2199_s10 = scalar_lea.hbm %s3763_s3, 512 }
 0x315   : > { %p2196_p1 = scmp.ne.s32.totalorder %s3711_s28, %s2195_s6  ;;  %p2200_p13 = scmp.lt.u32.totalorder %s3711_s28, %s3763_s3 }
 0x316   : > { %p2201_p0 = scmp.lt.u32.totalorder %s2199_s10, %s2195_s6  ;;  %p2203_p10 = scmp.lt.u32.totalorder %s2195_s6, %s3711_s28 }
 0x317   : > { %p2197_p8 = pnand %p2196_p1, %p3858_p4 }
 0x318   : > { %p2202_p5 = por %p2201_p0, %p2200_p13 }
 0x319   : > { %p2198_p12 = pneg %p2197_p8 }
 0x31a   : > { %p2204_p11 = por %p2203_p10, %p2202_p5 }
 0x31c   : > { %p2205_p3 = pnand %p2204_p11, %p2198_p12 }
 0x31e   : > { %2208 = shalt.err (!%p2205_p3)
}
 0x31f   : > { %s2293_s22 = smov 128   ;;  %s2294_s12 = smov 8  }
 0x320   : > { %1994 = dma.vmem_to_hbm [thread:$0]  (%p3858_p4), %s3706_s13, 256, %s3711_s28, %s1759_s18, %s2293_s22, %s2293_s22, %s2294_s12  }
 0x321 PF: > { %s1807_s29 = sand.u32 1, %s2255_s15   ;;  %p3859_p7 = scmp.ne.s32.totalorder %s3800_s27, 0 }
 0x322   : > { %p3860_p9 = scmp.ge.s32.totalorder %s2275_s20, 2  ;;  %s1808_s8 = scalar_lea.sflag [#allocation4], %s1807_s29 }
 0x324   : > { %p2010_p2 = pnand %p3860_p9, %p3859_p7 }
 0x326   : > { %2246 = dma.done.wait (!%p2010_p2), %s1808_s8, 256  }
 0x327   : > { %2248 = vsyncadd (!%p2010_p2), %s1808_s8, 4294967040  ;;  %s1817_s24 = scalar_lea.sflag [#allocation11], %s1807_s29 }
 0x328   : > { %2250 = dma.done.wait (!%p2010_p2), %s1817_s24, 16  }
 0x329   : > { %2252 = vsyncadd (!%p2010_p2), %s1817_s24, 4294967280  ;;  %s26_s20 = sadd.s32 1, %s2275_s20   ;;  %s3861_s15 = smov %s2259_s16 }
 0x32a   : > { %p23_p6 = scmp.ge.s32.totalorder %s26_s20, 4   ;;  %s3862_s16 = smov %s2263_s17 }
 0x32b   : > { %s3863_s17 = smov %s2436_s5  ;;  %s3864_s18 = smov %s2271_s19 }
 0x32c   : > { %s3865_s19 = smov %s3867_s9  ;;  %25 = sbr.rel (!%p23_p6) target bundleno = 10 (0xa), region = 104 }
 0x333   :  { %1821 = vsyncpa [#allocation3], 1 }
 0x334   :  { %1823 = vsyncpa [#allocation3 + $0x1], 1 }
 0x335   :  { %1824 = vsyncpa [#allocation4], 1 }
 0x336   :  { %1826 = vsyncpa [#allocation4 + $0x1], 1 }
 0x337   :  { %1827 = vsyncpa [#allocation11], 1 }
 0x338   :  { %1829 = vsyncpa [#allocation11 + $0x1], 1 }
 0x339   :  { %1830 = vsyncpa [#allocation5], 1 }
 0x33a   :  { %1832 = vsyncpa [#allocation5 + $0x1], 1 }
 0x33b   :  { %1833 = vsyncpa [#allocation6], 1 }
 0x33c   :  { %1835 = vsyncpa [#allocation6 + $0x1], 1 }

</bundles_post_ra>
